<compile_context>
chip_gen: v6e
topology: v6e:2x2x1
jax: 0.10.0
libtpu: 0.0.40
codegen_flags: <defaults>
</compile_context>

<pallas_src>
import math

import jax
import jax.numpy as jnp
from jax.experimental import pallas as pl
from jax.experimental.pallas import tpu as pltpu


# ------------------------------ small helpers --------------------------------

def _round_up(n, m):
    return ((n + m - 1) // m) * m


def _padded_bytes(shape, itemsize=4):
    """Bytes of an array once its last-2 dims are padded to the (8,128) tile."""
    if len(shape) == 0:
        return itemsize
    dims = list(shape)
    dims[-1] = _round_up(dims[-1], 128)
    if len(dims) >= 2:
        dims[-2] = _round_up(dims[-2], 8)
    n = 1
    for d in dims:
        n *= d
    return n * itemsize


# ----------------------------- fused model kernel ---------------------------

def _make_kernel(nhead):
    """Build the fused forward kernel (nhead is baked in via closure)."""

    def kernel(*refs):
        it = iter(refs)
        src = next(it)[...]
        trg = next(it)[...]

        # ---- global parameters ----
        enc_w = next(it)[...]
        enc_b = next(it)[...]
        dec_w = next(it)[...]
        dec_b = next(it)[...]
        pe_src = next(it)[...]
        pe_trg = next(it)[...]
        enc_nw = next(it)[...]
        enc_nb = next(it)[...]
        dec_nw = next(it)[...]
        dec_nb = next(it)[...]
        fc_w = next(it)[...]          # (E, out_pad)  lane-dense
        fc_b = next(it)[...]          # (1, out_pad)

        # ---- per-layer stacked parameters (kept as refs, indexed per layer) ----
        (e_wqkv, e_bqkv, e_wo, e_bo, e_ln1w, e_ln1b,
         e_ff1w, e_ff1b, e_ff2w, e_ff2b, e_ln2w, e_ln2b) = [next(it) for _ in range(12)]

        (d_sa_wqkv, d_sa_bqkv, d_sa_wo, d_sa_bo, d_ln1w, d_ln1b,
         d_ca_wq, d_ca_bq, d_ca_wkv, d_ca_bkv, d_ca_wo, d_ca_bo, d_ln2w, d_ln2b,
         d_ff1w, d_ff1b, d_ff2w, d_ff2b, d_ln3w, d_ln3b) = [next(it) for _ in range(20)]

        out_ref = next(it)

        n_enc = e_wo.shape[0]
        n_dec = d_sa_wo.shape[0]
        E = e_wo.shape[1]
        H = nhead
        Dh = E // H
        scale = 1.0 / math.sqrt(Dh)
        sqrt_h = math.sqrt(E)

        def dot(a, b):
            return jnp.dot(a, b, preferred_element_type=jnp.float32)

        def layer_norm(x, w, b):          # biased variance, eps=1e-5 (PyTorch)
            mu = jnp.mean(x, axis=-1, keepdims=True)
            var = jnp.mean(jnp.square(x - mu), axis=-1, keepdims=True)
            return (x - mu) * jax.lax.rsqrt(var + 1e-5) * w + b

        def split_heads(x):               # (L, E) -> (H, L, Dh): lane slices, leading-axis stack
            return jnp.stack([x[:, h * Dh:(h + 1) * Dh] for h in range(H)], axis=0)

        def attention(q, k, v, wo, bo, mask):
            """Head-batched attention; one fused softmax, one out-proj matmul."""
            qh = split_heads(q)                                   # (H, Lq, Dh)
            kh = split_heads(k)                                   # (H, Lk, Dh)
            vh = split_heads(v)                                   # (H, Lk, Dh)
            s = jnp.einsum("hqd,hkd->hqk", qh, kh,
                           preferred_element_type=jnp.float32) * scale
            if mask is not None:
                s = s + mask                                      # (Lq, Lk) bcast over heads
            m = jnp.max(s, axis=-1, keepdims=True)
            p = jnp.exp(s - m)
            p = p * pl.reciprocal(jnp.sum(p, axis=-1, keepdims=True), approx=True)
            ctx = jnp.einsum("hqk,hkd->hqd", p, vh,
                             preferred_element_type=jnp.float32)  # (H, Lq, Dh)
            ctx = jnp.concatenate([ctx[h] for h in range(H)], axis=-1)  # (Lq, E)
            return dot(ctx, wo) + bo                              # single (Lq,E)x(E,E) matmul

        def ffn(x, w1, b1, w2, b2):
            return dot(jnp.maximum(dot(x, w1) + b1, 0.0), w2) + b2

        # ---- embeddings: relu(Linear(x)) * sqrt(hidden) + positional encoding ----
        src_e = jnp.maximum(dot(src, enc_w) + enc_b, 0.0) * sqrt_h + pe_src
        trg_e = jnp.maximum(dot(trg, dec_w) + dec_b, 0.0) * sqrt_h + pe_trg

        # ---- causal (square subsequent) mask, generated in-kernel ----
        t_len = trg_e.shape[0]
        r = jax.lax.broadcasted_iota(jnp.int32, (t_len, t_len), 0)
        c = jax.lax.broadcasted_iota(jnp.int32, (t_len, t_len), 1)
        causal = jnp.where(c > r, jnp.float32(-1e30), jnp.float32(0.0))

        # ---- encoder stack (post-norm TransformerEncoderLayer) ----
        mem = src_e
        for l in range(n_enc):
            qkv = dot(mem, e_wqkv[l]) + e_bqkv[l]                 # fused QKV matmul
            sa = attention(qkv[:, :E], qkv[:, E:2 * E], qkv[:, 2 * E:3 * E],
                           e_wo[l], e_bo[l], None)
            mem = layer_norm(mem + sa, e_ln1w[l], e_ln1b[l])
            ff = ffn(mem, e_ff1w[l], e_ff1b[l], e_ff2w[l], e_ff2b[l])
            mem = layer_norm(mem + ff, e_ln2w[l], e_ln2b[l])
        mem = layer_norm(mem, enc_nw, enc_nb)

        # ---- decoder stack (post-norm TransformerDecoderLayer) ----
        out = trg_e
        for l in range(n_dec):
            qkv = dot(out, d_sa_wqkv[l]) + d_sa_bqkv[l]           # fused QKV matmul
            sa = attention(qkv[:, :E], qkv[:, E:2 * E], qkv[:, 2 * E:3 * E],
                           d_sa_wo[l], d_sa_bo[l], causal)
            out = layer_norm(out + sa, d_ln1w[l], d_ln1b[l])
            q = dot(out, d_ca_wq[l]) + d_ca_bq[l]                 # cross-attn query
            kv = dot(mem, d_ca_wkv[l]) + d_ca_bkv[l]              # fused K/V matmul
            ca = attention(q, kv[:, :E], kv[:, E:2 * E],
                           d_ca_wo[l], d_ca_bo[l], None)
            out = layer_norm(out + ca, d_ln2w[l], d_ln2b[l])
            ff = ffn(out, d_ff1w[l], d_ff1b[l], d_ff2w[l], d_ff2b[l])
            out = layer_norm(out + ff, d_ln3w[l], d_ln3b[l])
        out = layer_norm(out, dec_nw, dec_nb)

        # ---- fc_out (lane-dense, padded to 128) + sigmoid (EUP reciprocal) ----
        y = dot(out, fc_w) + fc_b
        out_ref[...] = pl.reciprocal(1.0 + jnp.exp(-y), approx=True)

    return kernel


# --------------------- parameter packing for the fused kernel ---------------

def pack_params(params):
    """Canonical param dict -> lane-dense arrays laid out for the fused kernel.

    Self-attention: wq|wk|wv concatenated along the output (lane) dim into a
    single (E, pad128(3E)) matrix per layer (biases likewise).  Cross-attention:
    wq kept (E, E); wk|wv concatenated into (E, pad128(2E)).  Output projection
    stays the original lane-dense (E, E).  Vectors become (1, N) rows; fc_out is
    zero-padded to a 128-multiple.  Layer params are stacked along a leading
    layer axis.
    """
    E = params["enc_norm"]["w"].shape[0]
    qkv_pad = _round_up(3 * E, 128)
    kv_pad = _round_up(2 * E, 128)

    def row(v):
        return v.reshape(1, -1)

    def pad_lanes(a, n):
        extra = n - a.shape[-1]
        if extra == 0:
            return a
        widths = [(0, 0)] * (a.ndim - 1) + [(0, extra)]
        return jnp.pad(a, widths)

    def pack_self_attn(p):
        wqkv = pad_lanes(jnp.concatenate([p["wq"], p["wk"], p["wv"]], axis=1), qkv_pad)
        bqkv = pad_lanes(row(jnp.concatenate([p["bq"], p["bk"], p["bv"]])), qkv_pad)
        return wqkv, bqkv, p["wo"], row(p["bo"])

    def pack_cross_attn(p):
        wkv = pad_lanes(jnp.concatenate([p["wk"], p["wv"]], axis=1), kv_pad)
        bkv = pad_lanes(row(jnp.concatenate([p["bk"], p["bv"]])), kv_pad)
        return p["wq"], row(p["bq"]), wkv, bkv, p["wo"], row(p["bo"])

    def pack_enc_layer(lyr):
        return (*pack_self_attn(lyr["self_attn"]),
                row(lyr["norm1"]["w"]), row(lyr["norm1"]["b"]),
                lyr["l1w"], row(lyr["l1b"]), lyr["l2w"], row(lyr["l2b"]),
                row(lyr["norm2"]["w"]), row(lyr["norm2"]["b"]))

    def pack_dec_layer(lyr):
        return (*pack_self_attn(lyr["self_attn"]),
                row(lyr["norm1"]["w"]), row(lyr["norm1"]["b"]),
                *pack_cross_attn(lyr["cross_attn"]),
                row(lyr["norm2"]["w"]), row(lyr["norm2"]["b"]),
                lyr["l1w"], row(lyr["l1b"]), lyr["l2w"], row(lyr["l2b"]),
                row(lyr["norm3"]["w"]), row(lyr["norm3"]["b"]))

    enc_stack = tuple(jnp.stack(a) for a in zip(*[pack_enc_layer(l) for l in params["enc_layers"]]))
    dec_stack = tuple(jnp.stack(a) for a in zip(*[pack_dec_layer(l) for l in params["dec_layers"]]))

    outtoken = params["fc_w"].shape[1]
    opad = _round_up(outtoken, 128)
    fc_w = pad_lanes(params["fc_w"], opad)
    fc_b = pad_lanes(row(params["fc_b"]), opad)

    return dict(
        enc_w=params["enc_w"], enc_b=row(params["enc_b"]),
        dec_w=params["dec_w"], dec_b=row(params["dec_b"]),
        pe=params["pe"],
        enc_norm_w=row(params["enc_norm"]["w"]), enc_norm_b=row(params["enc_norm"]["b"]),
        dec_norm_w=row(params["dec_norm"]["w"]), dec_norm_b=row(params["dec_norm"]["b"]),
        fc_w=fc_w, fc_b=fc_b,
        enc_stack=enc_stack, dec_stack=dec_stack,
    )


def make_forward(outtoken, nhead):
    kernel = _make_kernel(nhead)

    def forward(packed, src, trg):
        seq_s, seq_t = src.shape[0], trg.shape[0]
        out_pad = packed["fc_w"].shape[1]
        flat_inputs = (
            src, trg,
            packed["enc_w"], packed["enc_b"], packed["dec_w"], packed["dec_b"],
            packed["pe"][:seq_s], packed["pe"][:seq_t],
            packed["enc_norm_w"], packed["enc_norm_b"],
            packed["dec_norm_w"], packed["dec_norm_b"],
            packed["fc_w"], packed["fc_b"],
            *packed["enc_stack"], *packed["dec_stack"],
        )
        out_shape = jax.ShapeDtypeStruct((seq_t, out_pad), jnp.float32)
        # Size the scoped-VMEM request from the actual tile-padded resident
        # bytes (2x + margin for activations/temporaries), clamped to the v7x
        # 64 MiB physical ceiling so the same kernel is portable on v5e/v6e/v7x.
        resident = sum(_padded_bytes(a.shape) for a in flat_inputs) + _padded_bytes(out_shape.shape)
        vmem_limit = int(min(64 * 1024 * 1024,
                             max(32 * 1024 * 1024, 2 * resident + (8 << 20))))
        y = pl.pallas_call(
            kernel,
            out_shape=out_shape,
            compiler_params=pltpu.CompilerParams(vmem_limit_bytes=vmem_limit),
        )(*flat_inputs)
        return y[:, :outtoken]            # drop lane padding of fc_out
    return forward


# ----------------------------- parameter init --------------------------------

def init_params(key, intoken, outtoken, hidden, nhead, enc_layers, dec_layers,
                max_len=64):
    keys = iter(jax.random.split(key, 512))

    def u(shape, a=0.1):
        return jax.random.uniform(next(keys), shape, jnp.float32, -a, a)

    def zeros(shape):
        return jnp.zeros(shape, jnp.float32)

    def ones(shape):
        return jnp.ones(shape, jnp.float32)

    def mha_params():
        return dict(wq=u((hidden, hidden)), bq=zeros((hidden,)),
                    wk=u((hidden, hidden)), bk=zeros((hidden,)),
                    wv=u((hidden, hidden)), bv=zeros((hidden,)),
                    wo=u((hidden, hidden)), bo=zeros((hidden,)))

    def ln():
        return dict(w=ones((hidden,)), b=zeros((hidden,)))

    def enc_layer():
        return dict(self_attn=mha_params(),
                    l1w=u((hidden, hidden)), l1b=zeros((hidden,)),
                    l2w=u((hidden, hidden)), l2b=zeros((hidden,)),
                    norm1=ln(), norm2=ln())

    def dec_layer():
        return dict(self_attn=mha_params(), cross_attn=mha_params(),
                    l1w=u((hidden, hidden)), l1b=zeros((hidden,)),
                    l2w=u((hidden, hidden)), l2b=zeros((hidden,)),
                    norm1=ln(), norm2=ln(), norm3=ln())

    # sinusoidal positional-encoding table (same formula as the reference)
    position = jnp.arange(max_len, dtype=jnp.float32)[:, None]
    div_term = jnp.exp(jnp.arange(0, hidden, 2, dtype=jnp.float32)
                       * (-math.log(10000.0) / hidden))
    pe = jnp.zeros((max_len, hidden), jnp.float32)
    pe = pe.at[:, 0::2].set(jnp.sin(position * div_term))
    pe = pe.at[:, 1::2].set(jnp.cos(position * div_term))

    return dict(
        enc_w=u((intoken, hidden)), enc_b=zeros((hidden,)),
        dec_w=u((outtoken, hidden)), dec_b=zeros((hidden,)),
        pe=pe,
        enc_layers=[enc_layer() for _ in range(enc_layers)],
        dec_layers=[dec_layer() for _ in range(dec_layers)],
        enc_norm=ln(), dec_norm=ln(),
        fc_w=u((hidden, outtoken)), fc_b=zeros((outtoken,)),
    )


# ------------------------- pure-JAX reference (checking) ---------------------

def reference_forward(params, src, trg, nhead):
    E = params["enc_w"].shape[1]
    Dh = E // nhead
    sqrt_h = math.sqrt(E)

    def ln(x, p):
        mu = x.mean(-1, keepdims=True)
        var = ((x - mu) ** 2).mean(-1, keepdims=True)
        return (x - mu) / jnp.sqrt(var + 1e-5) * p["w"] + p["b"]

    def mha(q_in, kv_in, p, mask):
        lq, lk = q_in.shape[0], kv_in.shape[0]
        q = (q_in @ p["wq"] + p["bq"]).reshape(lq, nhead, Dh).transpose(1, 0, 2)
        k = (kv_in @ p["wk"] + p["bk"]).reshape(lk, nhead, Dh).transpose(1, 0, 2)
        v = (kv_in @ p["wv"] + p["bv"]).reshape(lk, nhead, Dh).transpose(1, 0, 2)
        s = jnp.einsum("hqd,hkd->hqk", q, k) / math.sqrt(Dh)
        if mask is not None:
            s = s + mask
        a = jax.nn.softmax(s, axis=-1)
        o = jnp.einsum("hqk,hkd->hqd", a, v).transpose(1, 0, 2).reshape(lq, E)
        return o @ p["wo"] + p["bo"]

    def ffn(x, l):
        return jnp.maximum(x @ l["l1w"] + l["l1b"], 0.0) @ l["l2w"] + l["l2b"]

    S, T = src.shape[0], trg.shape[0]
    src_e = jnp.maximum(src @ params["enc_w"] + params["enc_b"], 0.0) * sqrt_h + params["pe"][:S]
    trg_e = jnp.maximum(trg @ params["dec_w"] + params["dec_b"], 0.0) * sqrt_h + params["pe"][:T]
    i = jnp.arange(T)
    causal = jnp.where(i[None, :] > i[:, None], -1e30, 0.0).astype(jnp.float32)

    mem = src_e
    for l in params["enc_layers"]:
        mem = ln(mem + mha(mem, mem, l["self_attn"], None), l["norm1"])
        mem = ln(mem + ffn(mem, l), l["norm2"])
    mem = ln(mem, params["enc_norm"])

    out = trg_e
    for l in params["dec_layers"]:
        out = ln(out + mha(out, out, l["self_attn"], causal), l["norm1"])
        out = ln(out + mha(out, mem, l["cross_attn"], None), l["norm2"])
        out = ln(out + ffn(out, l), l["norm3"])
    out = ln(out, params["dec_norm"])
    return jax.nn.sigmoid(out @ params["fc_w"] + params["fc_b"])


# ---------------------------------- main --------------------------------------

if __name__ == "__main__":
    # small, shape-consistent config
    intoken, outtoken = 8, 4
    nhead, hidden = 4, 32
    n_enc, n_dec = 2, 2
    S, T = 8, 8

    key = jax.random.PRNGKey(0)
    k_params, k_src, k_trg = jax.random.split(key, 3)

    params = init_params(k_params, intoken, outtoken, hidden, nhead, n_enc, n_dec)
    packed = pack_params(params)

    src = jax.random.normal(k_src, (S, intoken), jnp.float32)
    trg = jax.random.normal(k_trg, (T, outtoken), jnp.float32)

    forward = jax.jit(make_forward(outtoken, nhead))
    out = jax.block_until_ready(forward(packed, src, trg))

    assert out.shape == (T, outtoken), out.shape
    assert bool(jnp.all(jnp.isfinite(out)))
    # sigmoid range (small slack for the EUP approx reciprocal)
    assert bool(jnp.all((out >= 0.0) & (out <= 1.0 + 1e-3)))

    # correctness vs. pure-JAX reference (loose tol: approx reciprocal + MXU precision)
    ref = reference_forward(params, src, trg, nhead)
    max_err = float(jnp.max(jnp.abs(out - ref)))
    assert max_err < 2e-2, max_err

    print("KERNEL_OK")
</pallas_src>

<mosaic_0001>
module attributes {stable_mosaic.version = 11 : i64} {
  func.func @kernel(%arg0: memref<8x8xf32, #tpu.memory_space<vmem>>, %arg1: memref<8x4xf32, #tpu.memory_space<vmem>>, %arg2: memref<8x32xf32, #tpu.memory_space<vmem>>, %arg3: memref<1x32xf32, #tpu.memory_space<vmem>>, %arg4: memref<4x32xf32, #tpu.memory_space<vmem>>, %arg5: memref<1x32xf32, #tpu.memory_space<vmem>>, %arg6: memref<8x32xf32, #tpu.memory_space<vmem>>, %arg7: memref<8x32xf32, #tpu.memory_space<vmem>>, %arg8: memref<1x32xf32, #tpu.memory_space<vmem>>, %arg9: memref<1x32xf32, #tpu.memory_space<vmem>>, %arg10: memref<1x32xf32, #tpu.memory_space<vmem>>, %arg11: memref<1x32xf32, #tpu.memory_space<vmem>>, %arg12: memref<32x128xf32, #tpu.memory_space<vmem>>, %arg13: memref<1x128xf32, #tpu.memory_space<vmem>>, %arg14: memref<2x32x128xf32, #tpu.memory_space<vmem>>, %arg15: memref<2x1x128xf32, #tpu.memory_space<vmem>>, %arg16: memref<2x32x32xf32, #tpu.memory_space<vmem>>, %arg17: memref<2x1x32xf32, #tpu.memory_space<vmem>>, %arg18: memref<2x1x32xf32, #tpu.memory_space<vmem>>, %arg19: memref<2x1x32xf32, #tpu.memory_space<vmem>>, %arg20: memref<2x32x32xf32, #tpu.memory_space<vmem>>, %arg21: memref<2x1x32xf32, #tpu.memory_space<vmem>>, %arg22: memref<2x32x32xf32, #tpu.memory_space<vmem>>, %arg23: memref<2x1x32xf32, #tpu.memory_space<vmem>>, %arg24: memref<2x1x32xf32, #tpu.memory_space<vmem>>, %arg25: memref<2x1x32xf32, #tpu.memory_space<vmem>>, %arg26: memref<2x32x128xf32, #tpu.memory_space<vmem>>, %arg27: memref<2x1x128xf32, #tpu.memory_space<vmem>>, %arg28: memref<2x32x32xf32, #tpu.memory_space<vmem>>, %arg29: memref<2x1x32xf32, #tpu.memory_space<vmem>>, %arg30: memref<2x1x32xf32, #tpu.memory_space<vmem>>, %arg31: memref<2x1x32xf32, #tpu.memory_space<vmem>>, %arg32: memref<2x32x32xf32, #tpu.memory_space<vmem>>, %arg33: memref<2x1x32xf32, #tpu.memory_space<vmem>>, %arg34: memref<2x32x128xf32, #tpu.memory_space<vmem>>, %arg35: memref<2x1x128xf32, #tpu.memory_space<vmem>>, %arg36: memref<2x32x32xf32, #tpu.memory_space<vmem>>, %arg37: memref<2x1x32xf32, #tpu.memory_space<vmem>>, %arg38: memref<2x1x32xf32, #tpu.memory_space<vmem>>, %arg39: memref<2x1x32xf32, #tpu.memory_space<vmem>>, %arg40: memref<2x32x32xf32, #tpu.memory_space<vmem>>, %arg41: memref<2x1x32xf32, #tpu.memory_space<vmem>>, %arg42: memref<2x32x32xf32, #tpu.memory_space<vmem>>, %arg43: memref<2x1x32xf32, #tpu.memory_space<vmem>>, %arg44: memref<2x1x32xf32, #tpu.memory_space<vmem>>, %arg45: memref<2x1x32xf32, #tpu.memory_space<vmem>>, %arg46: memref<8x128xf32, #tpu.memory_space<vmem>>) attributes {dimension_semantics = [], scalar_prefetch = 0 : i64, scratch_operands = 0 : i64, tpu.core_type = #tpu.core_type<tc>} {
    %c0 = arith.constant 0 : index
    %c0_0 = arith.constant 0 : index
    %0 = vector.load %arg0[%c0, %c0_0] : memref<8x8xf32, #tpu.memory_space<vmem>>, vector<8x8xf32>
    %c0_1 = arith.constant 0 : index
    %c0_2 = arith.constant 0 : index
    %1 = vector.load %arg1[%c0_1, %c0_2] : memref<8x4xf32, #tpu.memory_space<vmem>>, vector<8x4xf32>
    %c0_3 = arith.constant 0 : index
    %c0_4 = arith.constant 0 : index
    %2 = vector.load %arg2[%c0_3, %c0_4] : memref<8x32xf32, #tpu.memory_space<vmem>>, vector<8x32xf32>
    %c0_5 = arith.constant 0 : index
    %c0_6 = arith.constant 0 : index
    %3 = vector.load %arg3[%c0_5, %c0_6] : memref<1x32xf32, #tpu.memory_space<vmem>>, vector<1x32xf32>
    %c0_7 = arith.constant 0 : index
    %c0_8 = arith.constant 0 : index
    %4 = vector.load %arg4[%c0_7, %c0_8] : memref<4x32xf32, #tpu.memory_space<vmem>>, vector<4x32xf32>
    %c0_9 = arith.constant 0 : index
    %c0_10 = arith.constant 0 : index
    %5 = vector.load %arg5[%c0_9, %c0_10] : memref<1x32xf32, #tpu.memory_space<vmem>>, vector<1x32xf32>
    %c0_11 = arith.constant 0 : index
    %c0_12 = arith.constant 0 : index
    %6 = vector.load %arg6[%c0_11, %c0_12] : memref<8x32xf32, #tpu.memory_space<vmem>>, vector<8x32xf32>
    %c0_13 = arith.constant 0 : index
    %c0_14 = arith.constant 0 : index
    %7 = vector.load %arg7[%c0_13, %c0_14] : memref<8x32xf32, #tpu.memory_space<vmem>>, vector<8x32xf32>
    %c0_15 = arith.constant 0 : index
    %c0_16 = arith.constant 0 : index
    %8 = vector.load %arg8[%c0_15, %c0_16] : memref<1x32xf32, #tpu.memory_space<vmem>>, vector<1x32xf32>
    %c0_17 = arith.constant 0 : index
    %c0_18 = arith.constant 0 : index
    %9 = vector.load %arg9[%c0_17, %c0_18] : memref<1x32xf32, #tpu.memory_space<vmem>>, vector<1x32xf32>
    %c0_19 = arith.constant 0 : index
    %c0_20 = arith.constant 0 : index
    %10 = vector.load %arg10[%c0_19, %c0_20] : memref<1x32xf32, #tpu.memory_space<vmem>>, vector<1x32xf32>
    %c0_21 = arith.constant 0 : index
    %c0_22 = arith.constant 0 : index
    %11 = vector.load %arg11[%c0_21, %c0_22] : memref<1x32xf32, #tpu.memory_space<vmem>>, vector<1x32xf32>
    %c0_23 = arith.constant 0 : index
    %c0_24 = arith.constant 0 : index
    %12 = vector.load %arg12[%c0_23, %c0_24] : memref<32x128xf32, #tpu.memory_space<vmem>>, vector<32x128xf32>
    %c0_25 = arith.constant 0 : index
    %c0_26 = arith.constant 0 : index
    %13 = vector.load %arg13[%c0_25, %c0_26] : memref<1x128xf32, #tpu.memory_space<vmem>>, vector<1x128xf32>
    %cst = arith.constant dense<0.000000e+00> : vector<8x32xf32>
    %14 = tpu.matmul %0, %2, %cst {dimension_numbers = #tpu.dot_dimension_numbers<[1], [0], [0], [1], [0, 0, 1, 1], [], []>} : vector<8x8xf32>, vector<8x32xf32>, vector<8x32xf32> -> vector<8x32xf32>
    %15 = vector.broadcast %3 : vector<1x32xf32> to vector<8x32xf32>
    %16 = arith.addf %14, %15 : vector<8x32xf32>
    %cst_27 = arith.constant 0.000000e+00 : f32
    %17 = vector.broadcast %cst_27 : f32 to vector<8x32xf32>
    %18 = arith.maximumf %16, %17 : vector<8x32xf32>
    %cst_28 = arith.constant 5.65685415 : f32
    %19 = vector.broadcast %cst_28 : f32 to vector<8x32xf32>
    %20 = arith.mulf %18, %19 : vector<8x32xf32>
    %21 = arith.addf %20, %6 : vector<8x32xf32>
    %cst_29 = arith.constant dense<0.000000e+00> : vector<8x32xf32>
    %22 = tpu.matmul %1, %4, %cst_29 {dimension_numbers = #tpu.dot_dimension_numbers<[1], [0], [0], [1], [0, 0, 1, 1], [], []>} : vector<8x4xf32>, vector<4x32xf32>, vector<8x32xf32> -> vector<8x32xf32>
    %23 = vector.broadcast %5 : vector<1x32xf32> to vector<8x32xf32>
    %24 = arith.addf %22, %23 : vector<8x32xf32>
    %cst_30 = arith.constant 0.000000e+00 : f32
    %25 = vector.broadcast %cst_30 : f32 to vector<8x32xf32>
    %26 = arith.maximumf %24, %25 : vector<8x32xf32>
    %cst_31 = arith.constant 5.65685415 : f32
    %27 = vector.broadcast %cst_31 : f32 to vector<8x32xf32>
    %28 = arith.mulf %26, %27 : vector<8x32xf32>
    %29 = arith.addf %28, %7 : vector<8x32xf32>
    %30 = tpu.iota {dimensions = array<i32: 0>} : vector<8x8xi32>
    %31 = tpu.iota {dimensions = array<i32: 1>} : vector<8x8xi32>
    %32 = arith.cmpi sgt, %31, %30 : vector<8x8xi32>
    %cst_32 = arith.constant -1.000000e+30 : f32
    %cst_33 = arith.constant 0.000000e+00 : f32
    %33 = vector.broadcast %cst_32 : f32 to vector<8x8xf32>
    %34 = vector.broadcast %cst_33 : f32 to vector<8x8xf32>
    %35 = arith.select %32, %33, %34 : vector<8x8xi1>, vector<8x8xf32>
    %c0_34 = arith.constant 0 : index
    %c0_35 = arith.constant 0 : index
    %c0_36 = arith.constant 0 : index
    %36 = vector.load %arg14[%c0_34, %c0_35, %c0_36] : memref<2x32x128xf32, #tpu.memory_space<vmem>>, vector<1x32x128xf32>
    %37 = vector.shape_cast %36 : vector<1x32x128xf32> to vector<32x128xf32>
    %cst_37 = arith.constant dense<0.000000e+00> : vector<8x128xf32>
    %38 = tpu.matmul %21, %37, %cst_37 {dimension_numbers = #tpu.dot_dimension_numbers<[1], [0], [0], [1], [0, 0, 1, 1], [], []>} : vector<8x32xf32>, vector<32x128xf32>, vector<8x128xf32> -> vector<8x128xf32>
    %c0_38 = arith.constant 0 : index
    %c0_39 = arith.constant 0 : index
    %c0_40 = arith.constant 0 : index
    %39 = vector.load %arg15[%c0_38, %c0_39, %c0_40] : memref<2x1x128xf32, #tpu.memory_space<vmem>>, vector<1x1x128xf32>
    %40 = vector.shape_cast %39 : vector<1x1x128xf32> to vector<1x128xf32>
    %41 = vector.broadcast %40 : vector<1x128xf32> to vector<8x128xf32>
    %42 = arith.addf %38, %41 : vector<8x128xf32>
    %43 = vector.extract_strided_slice %42 {offsets = [0, 0], sizes = [8, 32], strides = [1, 1]} : vector<8x128xf32> to vector<8x32xf32>
    %44 = vector.extract_strided_slice %42 {offsets = [0, 32], sizes = [8, 32], strides = [1, 1]} : vector<8x128xf32> to vector<8x32xf32>
    %45 = vector.extract_strided_slice %42 {offsets = [0, 64], sizes = [8, 32], strides = [1, 1]} : vector<8x128xf32> to vector<8x32xf32>
    %c0_41 = arith.constant 0 : index
    %c0_42 = arith.constant 0 : index
    %c0_43 = arith.constant 0 : index
    %46 = vector.load %arg16[%c0_41, %c0_42, %c0_43] : memref<2x32x32xf32, #tpu.memory_space<vmem>>, vector<1x32x32xf32>
    %47 = vector.shape_cast %46 : vector<1x32x32xf32> to vector<32x32xf32>
    %c0_44 = arith.constant 0 : index
    %c0_45 = arith.constant 0 : index
    %c0_46 = arith.constant 0 : index
    %48 = vector.load %arg17[%c0_44, %c0_45, %c0_46] : memref<2x1x32xf32, #tpu.memory_space<vmem>>, vector<1x1x32xf32>
    %49 = vector.shape_cast %48 : vector<1x1x32xf32> to vector<1x32xf32>
    %50 = vector.extract_strided_slice %43 {offsets = [0, 0], sizes = [8, 8], strides = [1, 1]} : vector<8x32xf32> to vector<8x8xf32>
    %51 = vector.extract_strided_slice %43 {offsets = [0, 8], sizes = [8, 8], strides = [1, 1]} : vector<8x32xf32> to vector<8x8xf32>
    %52 = vector.extract_strided_slice %43 {offsets = [0, 16], sizes = [8, 8], strides = [1, 1]} : vector<8x32xf32> to vector<8x8xf32>
    %53 = vector.extract_strided_slice %43 {offsets = [0, 24], sizes = [8, 8], strides = [1, 1]} : vector<8x32xf32> to vector<8x8xf32>
    %54 = vector.shape_cast %50 : vector<8x8xf32> to vector<1x8x8xf32>
    %55 = vector.shape_cast %51 : vector<8x8xf32> to vector<1x8x8xf32>
    %56 = vector.shape_cast %52 : vector<8x8xf32> to vector<1x8x8xf32>
    %57 = vector.shape_cast %53 : vector<8x8xf32> to vector<1x8x8xf32>
    %58 = tpu.concatenate %54, %55, %56, %57 in 0 : vector<1x8x8xf32>, vector<1x8x8xf32>, vector<1x8x8xf32>, vector<1x8x8xf32> -> vector<4x8x8xf32>
    %59 = vector.extract_strided_slice %44 {offsets = [0, 0], sizes = [8, 8], strides = [1, 1]} : vector<8x32xf32> to vector<8x8xf32>
    %60 = vector.extract_strided_slice %44 {offsets = [0, 8], sizes = [8, 8], strides = [1, 1]} : vector<8x32xf32> to vector<8x8xf32>
    %61 = vector.extract_strided_slice %44 {offsets = [0, 16], sizes = [8, 8], strides = [1, 1]} : vector<8x32xf32> to vector<8x8xf32>
    %62 = vector.extract_strided_slice %44 {offsets = [0, 24], sizes = [8, 8], strides = [1, 1]} : vector<8x32xf32> to vector<8x8xf32>
    %63 = vector.shape_cast %59 : vector<8x8xf32> to vector<1x8x8xf32>
    %64 = vector.shape_cast %60 : vector<8x8xf32> to vector<1x8x8xf32>
    %65 = vector.shape_cast %61 : vector<8x8xf32> to vector<1x8x8xf32>
    %66 = vector.shape_cast %62 : vector<8x8xf32> to vector<1x8x8xf32>
    %67 = tpu.concatenate %63, %64, %65, %66 in 0 : vector<1x8x8xf32>, vector<1x8x8xf32>, vector<1x8x8xf32>, vector<1x8x8xf32> -> vector<4x8x8xf32>
    %68 = vector.extract_strided_slice %45 {offsets = [0, 0], sizes = [8, 8], strides = [1, 1]} : vector<8x32xf32> to vector<8x8xf32>
    %69 = vector.extract_strided_slice %45 {offsets = [0, 8], sizes = [8, 8], strides = [1, 1]} : vector<8x32xf32> to vector<8x8xf32>
    %70 = vector.extract_strided_slice %45 {offsets = [0, 16], sizes = [8, 8], strides = [1, 1]} : vector<8x32xf32> to vector<8x8xf32>
    %71 = vector.extract_strided_slice %45 {offsets = [0, 24], sizes = [8, 8], strides = [1, 1]} : vector<8x32xf32> to vector<8x8xf32>
    %72 = vector.shape_cast %68 : vector<8x8xf32> to vector<1x8x8xf32>
    %73 = vector.shape_cast %69 : vector<8x8xf32> to vector<1x8x8xf32>
    %74 = vector.shape_cast %70 : vector<8x8xf32> to vector<1x8x8xf32>
    %75 = vector.shape_cast %71 : vector<8x8xf32> to vector<1x8x8xf32>
    %76 = tpu.concatenate %72, %73, %74, %75 in 0 : vector<1x8x8xf32>, vector<1x8x8xf32>, vector<1x8x8xf32>, vector<1x8x8xf32> -> vector<4x8x8xf32>
    "tpu.trace_start"() <{level = 10 : i32, message = "hqd,hkd->hqk"}> : () -> ()
    %cst_47 = arith.constant dense<0.000000e+00> : vector<4x8x8xf32>
    %77 = tpu.matmul %58, %67, %cst_47 {dimension_numbers = #tpu.dot_dimension_numbers<[2], [2], [1], [1], [0, 0, 0, 1, 1, 1], [0], [0]>} : vector<4x8x8xf32>, vector<4x8x8xf32>, vector<4x8x8xf32> -> vector<4x8x8xf32>
    "tpu.trace_stop"() : () -> ()
    %cst_48 = arith.constant 0.353553385 : f32
    %78 = vector.broadcast %cst_48 : f32 to vector<4x8x8xf32>
    %79 = arith.mulf %77, %78 : vector<4x8x8xf32>
    %cst_49 = arith.constant dense<0xFF800000> : vector<4x8xf32>
    %80 = vector.multi_reduction <maximumf>, %79, %cst_49 [2] : vector<4x8x8xf32> to vector<4x8xf32>
    %81 = vector.shape_cast %80 : vector<4x8xf32> to vector<4x8x1xf32>
    %82 = vector.broadcast %81 : vector<4x8x1xf32> to vector<4x8x8xf32>
    %83 = arith.subf %79, %82 : vector<4x8x8xf32>
    %84 = math.exp %83 : vector<4x8x8xf32>
    %cst_50 = arith.constant dense<0.000000e+00> : vector<4x8xf32>
    %85 = vector.multi_reduction <add>, %84, %cst_50 [2] : vector<4x8x8xf32> to vector<4x8xf32>
    %86 = vector.shape_cast %85 : vector<4x8xf32> to vector<4x8x1xf32>
    %87 = tpu.reciprocal %86 {approx = true} : vector<4x8x1xf32> -> vector<4x8x1xf32>
    %88 = vector.broadcast %87 : vector<4x8x1xf32> to vector<4x8x8xf32>
    %89 = arith.mulf %84, %88 : vector<4x8x8xf32>
    "tpu.trace_start"() <{level = 10 : i32, message = "hqk,hkd->hqd"}> : () -> ()
    %cst_51 = arith.constant dense<0.000000e+00> : vector<4x8x8xf32>
    %90 = tpu.matmul %89, %76, %cst_51 {dimension_numbers = #tpu.dot_dimension_numbers<[2], [1], [1], [2], [0, 0, 0, 1, 1, 2], [0], [0]>} : vector<4x8x8xf32>, vector<4x8x8xf32>, vector<4x8x8xf32> -> vector<4x8x8xf32>
    "tpu.trace_stop"() : () -> ()
    %91 = vector.extract_strided_slice %90 {offsets = [0, 0, 0], sizes = [1, 8, 8], strides = [1, 1, 1]} : vector<4x8x8xf32> to vector<1x8x8xf32>
    %92 = vector.shape_cast %91 : vector<1x8x8xf32> to vector<8x8xf32>
    %93 = vector.extract_strided_slice %90 {offsets = [1, 0, 0], sizes = [1, 8, 8], strides = [1, 1, 1]} : vector<4x8x8xf32> to vector<1x8x8xf32>
    %94 = vector.shape_cast %93 : vector<1x8x8xf32> to vector<8x8xf32>
    %95 = vector.extract_strided_slice %90 {offsets = [2, 0, 0], sizes = [1, 8, 8], strides = [1, 1, 1]} : vector<4x8x8xf32> to vector<1x8x8xf32>
    %96 = vector.shape_cast %95 : vector<1x8x8xf32> to vector<8x8xf32>
    %97 = vector.extract_strided_slice %90 {offsets = [3, 0, 0], sizes = [1, 8, 8], strides = [1, 1, 1]} : vector<4x8x8xf32> to vector<1x8x8xf32>
    %98 = vector.shape_cast %97 : vector<1x8x8xf32> to vector<8x8xf32>
    %99 = tpu.concatenate %92, %94, %96, %98 in 1 : vector<8x8xf32>, vector<8x8xf32>, vector<8x8xf32>, vector<8x8xf32> -> vector<8x32xf32>
    %cst_52 = arith.constant dense<0.000000e+00> : vector<8x32xf32>
    %100 = tpu.matmul %99, %47, %cst_52 {dimension_numbers = #tpu.dot_dimension_numbers<[1], [0], [0], [1], [0, 0, 1, 1], [], []>} : vector<8x32xf32>, vector<32x32xf32>, vector<8x32xf32> -> vector<8x32xf32>
    %101 = vector.broadcast %49 : vector<1x32xf32> to vector<8x32xf32>
    %102 = arith.addf %100, %101 : vector<8x32xf32>
    %103 = arith.addf %21, %102 : vector<8x32xf32>
    %c0_53 = arith.constant 0 : index
    %c0_54 = arith.constant 0 : index
    %c0_55 = arith.constant 0 : index
    %104 = vector.load %arg18[%c0_53, %c0_54, %c0_55] : memref<2x1x32xf32, #tpu.memory_space<vmem>>, vector<1x1x32xf32>
    %105 = vector.shape_cast %104 : vector<1x1x32xf32> to vector<1x32xf32>
    %c0_56 = arith.constant 0 : index
    %c0_57 = arith.constant 0 : index
    %c0_58 = arith.constant 0 : index
    %106 = vector.load %arg19[%c0_56, %c0_57, %c0_58] : memref<2x1x32xf32, #tpu.memory_space<vmem>>, vector<1x1x32xf32>
    %107 = vector.shape_cast %106 : vector<1x1x32xf32> to vector<1x32xf32>
    %cst_59 = arith.constant dense<0.000000e+00> : vector<8xf32>
    %108 = vector.multi_reduction <add>, %103, %cst_59 [1] : vector<8x32xf32> to vector<8xf32>
    %109 = vector.shape_cast %108 : vector<8xf32> to vector<8x1xf32>
    %cst_60 = arith.constant 3.200000e+01 : f32
    %110 = vector.broadcast %cst_60 : f32 to vector<8x1xf32>
    %111 = arith.divf %109, %110 : vector<8x1xf32>
    %112 = vector.broadcast %111 : vector<8x1xf32> to vector<8x32xf32>
    %113 = arith.subf %103, %112 : vector<8x32xf32>
    %114 = arith.mulf %113, %113 : vector<8x32xf32>
    %cst_61 = arith.constant dense<0.000000e+00> : vector<8xf32>
    %115 = vector.multi_reduction <add>, %114, %cst_61 [1] : vector<8x32xf32> to vector<8xf32>
    %116 = vector.shape_cast %115 : vector<8xf32> to vector<8x1xf32>
    %cst_62 = arith.constant 3.200000e+01 : f32
    %117 = vector.broadcast %cst_62 : f32 to vector<8x1xf32>
    %118 = arith.divf %116, %117 : vector<8x1xf32>
    %119 = vector.broadcast %111 : vector<8x1xf32> to vector<8x32xf32>
    %120 = arith.subf %103, %119 : vector<8x32xf32>
    %cst_63 = arith.constant 9.99999974E-6 : f32
    %121 = vector.broadcast %cst_63 : f32 to vector<8x1xf32>
    %122 = arith.addf %118, %121 : vector<8x1xf32>
    %123 = math.rsqrt %122 : vector<8x1xf32>
    %124 = vector.broadcast %123 : vector<8x1xf32> to vector<8x32xf32>
    %125 = arith.mulf %120, %124 : vector<8x32xf32>
    %126 = vector.broadcast %105 : vector<1x32xf32> to vector<8x32xf32>
    %127 = arith.mulf %125, %126 : vector<8x32xf32>
    %128 = vector.broadcast %107 : vector<1x32xf32> to vector<8x32xf32>
    %129 = arith.addf %127, %128 : vector<8x32xf32>
    %c0_64 = arith.constant 0 : index
    %c0_65 = arith.constant 0 : index
    %c0_66 = arith.constant 0 : index
    %130 = vector.load %arg20[%c0_64, %c0_65, %c0_66] : memref<2x32x32xf32, #tpu.memory_space<vmem>>, vector<1x32x32xf32>
    %131 = vector.shape_cast %130 : vector<1x32x32xf32> to vector<32x32xf32>
    %c0_67 = arith.constant 0 : index
    %c0_68 = arith.constant 0 : index
    %c0_69 = arith.constant 0 : index
    %132 = vector.load %arg21[%c0_67, %c0_68, %c0_69] : memref<2x1x32xf32, #tpu.memory_space<vmem>>, vector<1x1x32xf32>
    %133 = vector.shape_cast %132 : vector<1x1x32xf32> to vector<1x32xf32>
    %c0_70 = arith.constant 0 : index
    %c0_71 = arith.constant 0 : index
    %c0_72 = arith.constant 0 : index
    %134 = vector.load %arg22[%c0_70, %c0_71, %c0_72] : memref<2x32x32xf32, #tpu.memory_space<vmem>>, vector<1x32x32xf32>
    %135 = vector.shape_cast %134 : vector<1x32x32xf32> to vector<32x32xf32>
    %c0_73 = arith.constant 0 : index
    %c0_74 = arith.constant 0 : index
    %c0_75 = arith.constant 0 : index
    %136 = vector.load %arg23[%c0_73, %c0_74, %c0_75] : memref<2x1x32xf32, #tpu.memory_space<vmem>>, vector<1x1x32xf32>
    %137 = vector.shape_cast %136 : vector<1x1x32xf32> to vector<1x32xf32>
    %cst_76 = arith.constant dense<0.000000e+00> : vector<8x32xf32>
    %138 = tpu.matmul %129, %131, %cst_76 {dimension_numbers = #tpu.dot_dimension_numbers<[1], [0], [0], [1], [0, 0, 1, 1], [], []>} : vector<8x32xf32>, vector<32x32xf32>, vector<8x32xf32> -> vector<8x32xf32>
    %139 = vector.broadcast %133 : vector<1x32xf32> to vector<8x32xf32>
    %140 = arith.addf %138, %139 : vector<8x32xf32>
    %cst_77 = arith.constant 0.000000e+00 : f32
    %141 = vector.broadcast %cst_77 : f32 to vector<8x32xf32>
    %142 = arith.maximumf %140, %141 : vector<8x32xf32>
    %cst_78 = arith.constant dense<0.000000e+00> : vector<8x32xf32>
    %143 = tpu.matmul %142, %135, %cst_78 {dimension_numbers = #tpu.dot_dimension_numbers<[1], [0], [0], [1], [0, 0, 1, 1], [], []>} : vector<8x32xf32>, vector<32x32xf32>, vector<8x32xf32> -> vector<8x32xf32>
    %144 = vector.broadcast %137 : vector<1x32xf32> to vector<8x32xf32>
    %145 = arith.addf %143, %144 : vector<8x32xf32>
    %146 = arith.addf %129, %145 : vector<8x32xf32>
    %c0_79 = arith.constant 0 : index
    %c0_80 = arith.constant 0 : index
    %c0_81 = arith.constant 0 : index
    %147 = vector.load %arg24[%c0_79, %c0_80, %c0_81] : memref<2x1x32xf32, #tpu.memory_space<vmem>>, vector<1x1x32xf32>
    %148 = vector.shape_cast %147 : vector<1x1x32xf32> to vector<1x32xf32>
    %c0_82 = arith.constant 0 : index
    %c0_83 = arith.constant 0 : index
    %c0_84 = arith.constant 0 : index
    %149 = vector.load %arg25[%c0_82, %c0_83, %c0_84] : memref<2x1x32xf32, #tpu.memory_space<vmem>>, vector<1x1x32xf32>
    %150 = vector.shape_cast %149 : vector<1x1x32xf32> to vector<1x32xf32>
    %cst_85 = arith.constant dense<0.000000e+00> : vector<8xf32>
    %151 = vector.multi_reduction <add>, %146, %cst_85 [1] : vector<8x32xf32> to vector<8xf32>
    %152 = vector.shape_cast %151 : vector<8xf32> to vector<8x1xf32>
    %cst_86 = arith.constant 3.200000e+01 : f32
    %153 = vector.broadcast %cst_86 : f32 to vector<8x1xf32>
    %154 = arith.divf %152, %153 : vector<8x1xf32>
    %155 = vector.broadcast %154 : vector<8x1xf32> to vector<8x32xf32>
    %156 = arith.subf %146, %155 : vector<8x32xf32>
    %157 = arith.mulf %156, %156 : vector<8x32xf32>
    %cst_87 = arith.constant dense<0.000000e+00> : vector<8xf32>
    %158 = vector.multi_reduction <add>, %157, %cst_87 [1] : vector<8x32xf32> to vector<8xf32>
    %159 = vector.shape_cast %158 : vector<8xf32> to vector<8x1xf32>
    %cst_88 = arith.constant 3.200000e+01 : f32
    %160 = vector.broadcast %cst_88 : f32 to vector<8x1xf32>
    %161 = arith.divf %159, %160 : vector<8x1xf32>
    %162 = vector.broadcast %154 : vector<8x1xf32> to vector<8x32xf32>
    %163 = arith.subf %146, %162 : vector<8x32xf32>
    %cst_89 = arith.constant 9.99999974E-6 : f32
    %164 = vector.broadcast %cst_89 : f32 to vector<8x1xf32>
    %165 = arith.addf %161, %164 : vector<8x1xf32>
    %166 = math.rsqrt %165 : vector<8x1xf32>
    %167 = vector.broadcast %166 : vector<8x1xf32> to vector<8x32xf32>
    %168 = arith.mulf %163, %167 : vector<8x32xf32>
    %169 = vector.broadcast %148 : vector<1x32xf32> to vector<8x32xf32>
    %170 = arith.mulf %168, %169 : vector<8x32xf32>
    %171 = vector.broadcast %150 : vector<1x32xf32> to vector<8x32xf32>
    %172 = arith.addf %170, %171 : vector<8x32xf32>
    %c1 = arith.constant 1 : index
    %c0_90 = arith.constant 0 : index
    %c0_91 = arith.constant 0 : index
    %173 = vector.load %arg14[%c1, %c0_90, %c0_91] : memref<2x32x128xf32, #tpu.memory_space<vmem>>, vector<1x32x128xf32>
    %174 = vector.shape_cast %173 : vector<1x32x128xf32> to vector<32x128xf32>
    %cst_92 = arith.constant dense<0.000000e+00> : vector<8x128xf32>
    %175 = tpu.matmul %172, %174, %cst_92 {dimension_numbers = #tpu.dot_dimension_numbers<[1], [0], [0], [1], [0, 0, 1, 1], [], []>} : vector<8x32xf32>, vector<32x128xf32>, vector<8x128xf32> -> vector<8x128xf32>
    %c1_93 = arith.constant 1 : index
    %c0_94 = arith.constant 0 : index
    %c0_95 = arith.constant 0 : index
    %176 = vector.load %arg15[%c1_93, %c0_94, %c0_95] : memref<2x1x128xf32, #tpu.memory_space<vmem>>, vector<1x1x128xf32>
    %177 = vector.shape_cast %176 : vector<1x1x128xf32> to vector<1x128xf32>
    %178 = vector.broadcast %177 : vector<1x128xf32> to vector<8x128xf32>
    %179 = arith.addf %175, %178 : vector<8x128xf32>
    %180 = vector.extract_strided_slice %179 {offsets = [0, 0], sizes = [8, 32], strides = [1, 1]} : vector<8x128xf32> to vector<8x32xf32>
    %181 = vector.extract_strided_slice %179 {offsets = [0, 32], sizes = [8, 32], strides = [1, 1]} : vector<8x128xf32> to vector<8x32xf32>
    %182 = vector.extract_strided_slice %179 {offsets = [0, 64], sizes = [8, 32], strides = [1, 1]} : vector<8x128xf32> to vector<8x32xf32>
    %c1_96 = arith.constant 1 : index
    %c0_97 = arith.constant 0 : index
    %c0_98 = arith.constant 0 : index
    %183 = vector.load %arg16[%c1_96, %c0_97, %c0_98] : memref<2x32x32xf32, #tpu.memory_space<vmem>>, vector<1x32x32xf32>
    %184 = vector.shape_cast %183 : vector<1x32x32xf32> to vector<32x32xf32>
    %c1_99 = arith.constant 1 : index
    %c0_100 = arith.constant 0 : index
    %c0_101 = arith.constant 0 : index
    %185 = vector.load %arg17[%c1_99, %c0_100, %c0_101] : memref<2x1x32xf32, #tpu.memory_space<vmem>>, vector<1x1x32xf32>
    %186 = vector.shape_cast %185 : vector<1x1x32xf32> to vector<1x32xf32>
    %187 = vector.extract_strided_slice %180 {offsets = [0, 0], sizes = [8, 8], strides = [1, 1]} : vector<8x32xf32> to vector<8x8xf32>
    %188 = vector.extract_strided_slice %180 {offsets = [0, 8], sizes = [8, 8], strides = [1, 1]} : vector<8x32xf32> to vector<8x8xf32>
    %189 = vector.extract_strided_slice %180 {offsets = [0, 16], sizes = [8, 8], strides = [1, 1]} : vector<8x32xf32> to vector<8x8xf32>
    %190 = vector.extract_strided_slice %180 {offsets = [0, 24], sizes = [8, 8], strides = [1, 1]} : vector<8x32xf32> to vector<8x8xf32>
    %191 = vector.shape_cast %187 : vector<8x8xf32> to vector<1x8x8xf32>
    %192 = vector.shape_cast %188 : vector<8x8xf32> to vector<1x8x8xf32>
    %193 = vector.shape_cast %189 : vector<8x8xf32> to vector<1x8x8xf32>
    %194 = vector.shape_cast %190 : vector<8x8xf32> to vector<1x8x8xf32>
    %195 = tpu.concatenate %191, %192, %193, %194 in 0 : vector<1x8x8xf32>, vector<1x8x8xf32>, vector<1x8x8xf32>, vector<1x8x8xf32> -> vector<4x8x8xf32>
    %196 = vector.extract_strided_slice %181 {offsets = [0, 0], sizes = [8, 8], strides = [1, 1]} : vector<8x32xf32> to vector<8x8xf32>
    %197 = vector.extract_strided_slice %181 {offsets = [0, 8], sizes = [8, 8], strides = [1, 1]} : vector<8x32xf32> to vector<8x8xf32>
    %198 = vector.extract_strided_slice %181 {offsets = [0, 16], sizes = [8, 8], strides = [1, 1]} : vector<8x32xf32> to vector<8x8xf32>
    %199 = vector.extract_strided_slice %181 {offsets = [0, 24], sizes = [8, 8], strides = [1, 1]} : vector<8x32xf32> to vector<8x8xf32>
    %200 = vector.shape_cast %196 : vector<8x8xf32> to vector<1x8x8xf32>
    %201 = vector.shape_cast %197 : vector<8x8xf32> to vector<1x8x8xf32>
    %202 = vector.shape_cast %198 : vector<8x8xf32> to vector<1x8x8xf32>
    %203 = vector.shape_cast %199 : vector<8x8xf32> to vector<1x8x8xf32>
    %204 = tpu.concatenate %200, %201, %202, %203 in 0 : vector<1x8x8xf32>, vector<1x8x8xf32>, vector<1x8x8xf32>, vector<1x8x8xf32> -> vector<4x8x8xf32>
    %205 = vector.extract_strided_slice %182 {offsets = [0, 0], sizes = [8, 8], strides = [1, 1]} : vector<8x32xf32> to vector<8x8xf32>
    %206 = vector.extract_strided_slice %182 {offsets = [0, 8], sizes = [8, 8], strides = [1, 1]} : vector<8x32xf32> to vector<8x8xf32>
    %207 = vector.extract_strided_slice %182 {offsets = [0, 16], sizes = [8, 8], strides = [1, 1]} : vector<8x32xf32> to vector<8x8xf32>
    %208 = vector.extract_strided_slice %182 {offsets = [0, 24], sizes = [8, 8], strides = [1, 1]} : vector<8x32xf32> to vector<8x8xf32>
    %209 = vector.shape_cast %205 : vector<8x8xf32> to vector<1x8x8xf32>
    %210 = vector.shape_cast %206 : vector<8x8xf32> to vector<1x8x8xf32>
    %211 = vector.shape_cast %207 : vector<8x8xf32> to vector<1x8x8xf32>
    %212 = vector.shape_cast %208 : vector<8x8xf32> to vector<1x8x8xf32>
    %213 = tpu.concatenate %209, %210, %211, %212 in 0 : vector<1x8x8xf32>, vector<1x8x8xf32>, vector<1x8x8xf32>, vector<1x8x8xf32> -> vector<4x8x8xf32>
    "tpu.trace_start"() <{level = 10 : i32, message = "hqd,hkd->hqk"}> : () -> ()
    %cst_102 = arith.constant dense<0.000000e+00> : vector<4x8x8xf32>
    %214 = tpu.matmul %195, %204, %cst_102 {dimension_numbers = #tpu.dot_dimension_numbers<[2], [2], [1], [1], [0, 0, 0, 1, 1, 1], [0], [0]>} : vector<4x8x8xf32>, vector<4x8x8xf32>, vector<4x8x8xf32> -> vector<4x8x8xf32>
    "tpu.trace_stop"() : () -> ()
    %cst_103 = arith.constant 0.353553385 : f32
    %215 = vector.broadcast %cst_103 : f32 to vector<4x8x8xf32>
    %216 = arith.mulf %214, %215 : vector<4x8x8xf32>
    %cst_104 = arith.constant dense<0xFF800000> : vector<4x8xf32>
    %217 = vector.multi_reduction <maximumf>, %216, %cst_104 [2] : vector<4x8x8xf32> to vector<4x8xf32>
    %218 = vector.shape_cast %217 : vector<4x8xf32> to vector<4x8x1xf32>
    %219 = vector.broadcast %218 : vector<4x8x1xf32> to vector<4x8x8xf32>
    %220 = arith.subf %216, %219 : vector<4x8x8xf32>
    %221 = math.exp %220 : vector<4x8x8xf32>
    %cst_105 = arith.constant dense<0.000000e+00> : vector<4x8xf32>
    %222 = vector.multi_reduction <add>, %221, %cst_105 [2] : vector<4x8x8xf32> to vector<4x8xf32>
    %223 = vector.shape_cast %222 : vector<4x8xf32> to vector<4x8x1xf32>
    %224 = tpu.reciprocal %223 {approx = true} : vector<4x8x1xf32> -> vector<4x8x1xf32>
    %225 = vector.broadcast %224 : vector<4x8x1xf32> to vector<4x8x8xf32>
    %226 = arith.mulf %221, %225 : vector<4x8x8xf32>
    "tpu.trace_start"() <{level = 10 : i32, message = "hqk,hkd->hqd"}> : () -> ()
    %cst_106 = arith.constant dense<0.000000e+00> : vector<4x8x8xf32>
    %227 = tpu.matmul %226, %213, %cst_106 {dimension_numbers = #tpu.dot_dimension_numbers<[2], [1], [1], [2], [0, 0, 0, 1, 1, 2], [0], [0]>} : vector<4x8x8xf32>, vector<4x8x8xf32>, vector<4x8x8xf32> -> vector<4x8x8xf32>
    "tpu.trace_stop"() : () -> ()
    %228 = vector.extract_strided_slice %227 {offsets = [0, 0, 0], sizes = [1, 8, 8], strides = [1, 1, 1]} : vector<4x8x8xf32> to vector<1x8x8xf32>
    %229 = vector.shape_cast %228 : vector<1x8x8xf32> to vector<8x8xf32>
    %230 = vector.extract_strided_slice %227 {offsets = [1, 0, 0], sizes = [1, 8, 8], strides = [1, 1, 1]} : vector<4x8x8xf32> to vector<1x8x8xf32>
    %231 = vector.shape_cast %230 : vector<1x8x8xf32> to vector<8x8xf32>
    %232 = vector.extract_strided_slice %227 {offsets = [2, 0, 0], sizes = [1, 8, 8], strides = [1, 1, 1]} : vector<4x8x8xf32> to vector<1x8x8xf32>
    %233 = vector.shape_cast %232 : vector<1x8x8xf32> to vector<8x8xf32>
    %234 = vector.extract_strided_slice %227 {offsets = [3, 0, 0], sizes = [1, 8, 8], strides = [1, 1, 1]} : vector<4x8x8xf32> to vector<1x8x8xf32>
    %235 = vector.shape_cast %234 : vector<1x8x8xf32> to vector<8x8xf32>
    %236 = tpu.concatenate %229, %231, %233, %235 in 1 : vector<8x8xf32>, vector<8x8xf32>, vector<8x8xf32>, vector<8x8xf32> -> vector<8x32xf32>
    %cst_107 = arith.constant dense<0.000000e+00> : vector<8x32xf32>
    %237 = tpu.matmul %236, %184, %cst_107 {dimension_numbers = #tpu.dot_dimension_numbers<[1], [0], [0], [1], [0, 0, 1, 1], [], []>} : vector<8x32xf32>, vector<32x32xf32>, vector<8x32xf32> -> vector<8x32xf32>
    %238 = vector.broadcast %186 : vector<1x32xf32> to vector<8x32xf32>
    %239 = arith.addf %237, %238 : vector<8x32xf32>
    %240 = arith.addf %172, %239 : vector<8x32xf32>
    %c1_108 = arith.constant 1 : index
    %c0_109 = arith.constant 0 : index
    %c0_110 = arith.constant 0 : index
    %241 = vector.load %arg18[%c1_108, %c0_109, %c0_110] : memref<2x1x32xf32, #tpu.memory_space<vmem>>, vector<1x1x32xf32>
    %242 = vector.shape_cast %241 : vector<1x1x32xf32> to vector<1x32xf32>
    %c1_111 = arith.constant 1 : index
    %c0_112 = arith.constant 0 : index
    %c0_113 = arith.constant 0 : index
    %243 = vector.load %arg19[%c1_111, %c0_112, %c0_113] : memref<2x1x32xf32, #tpu.memory_space<vmem>>, vector<1x1x32xf32>
    %244 = vector.shape_cast %243 : vector<1x1x32xf32> to vector<1x32xf32>
    %cst_114 = arith.constant dense<0.000000e+00> : vector<8xf32>
    %245 = vector.multi_reduction <add>, %240, %cst_114 [1] : vector<8x32xf32> to vector<8xf32>
    %246 = vector.shape_cast %245 : vector<8xf32> to vector<8x1xf32>
    %cst_115 = arith.constant 3.200000e+01 : f32
    %247 = vector.broadcast %cst_115 : f32 to vector<8x1xf32>
    %248 = arith.divf %246, %247 : vector<8x1xf32>
    %249 = vector.broadcast %248 : vector<8x1xf32> to vector<8x32xf32>
    %250 = arith.subf %240, %249 : vector<8x32xf32>
    %251 = arith.mulf %250, %250 : vector<8x32xf32>
    %cst_116 = arith.constant dense<0.000000e+00> : vector<8xf32>
    %252 = vector.multi_reduction <add>, %251, %cst_116 [1] : vector<8x32xf32> to vector<8xf32>
    %253 = vector.shape_cast %252 : vector<8xf32> to vector<8x1xf32>
    %cst_117 = arith.constant 3.200000e+01 : f32
    %254 = vector.broadcast %cst_117 : f32 to vector<8x1xf32>
    %255 = arith.divf %253, %254 : vector<8x1xf32>
    %256 = vector.broadcast %248 : vector<8x1xf32> to vector<8x32xf32>
    %257 = arith.subf %240, %256 : vector<8x32xf32>
    %cst_118 = arith.constant 9.99999974E-6 : f32
    %258 = vector.broadcast %cst_118 : f32 to vector<8x1xf32>
    %259 = arith.addf %255, %258 : vector<8x1xf32>
    %260 = math.rsqrt %259 : vector<8x1xf32>
    %261 = vector.broadcast %260 : vector<8x1xf32> to vector<8x32xf32>
    %262 = arith.mulf %257, %261 : vector<8x32xf32>
    %263 = vector.broadcast %242 : vector<1x32xf32> to vector<8x32xf32>
    %264 = arith.mulf %262, %263 : vector<8x32xf32>
    %265 = vector.broadcast %244 : vector<1x32xf32> to vector<8x32xf32>
    %266 = arith.addf %264, %265 : vector<8x32xf32>
    %c1_119 = arith.constant 1 : index
    %c0_120 = arith.constant 0 : index
    %c0_121 = arith.constant 0 : index
    %267 = vector.load %arg20[%c1_119, %c0_120, %c0_121] : memref<2x32x32xf32, #tpu.memory_space<vmem>>, vector<1x32x32xf32>
    %268 = vector.shape_cast %267 : vector<1x32x32xf32> to vector<32x32xf32>
    %c1_122 = arith.constant 1 : index
    %c0_123 = arith.constant 0 : index
    %c0_124 = arith.constant 0 : index
    %269 = vector.load %arg21[%c1_122, %c0_123, %c0_124] : memref<2x1x32xf32, #tpu.memory_space<vmem>>, vector<1x1x32xf32>
    %270 = vector.shape_cast %269 : vector<1x1x32xf32> to vector<1x32xf32>
    %c1_125 = arith.constant 1 : index
    %c0_126 = arith.constant 0 : index
    %c0_127 = arith.constant 0 : index
    %271 = vector.load %arg22[%c1_125, %c0_126, %c0_127] : memref<2x32x32xf32, #tpu.memory_space<vmem>>, vector<1x32x32xf32>
    %272 = vector.shape_cast %271 : vector<1x32x32xf32> to vector<32x32xf32>
    %c1_128 = arith.constant 1 : index
    %c0_129 = arith.constant 0 : index
    %c0_130 = arith.constant 0 : index
    %273 = vector.load %arg23[%c1_128, %c0_129, %c0_130] : memref<2x1x32xf32, #tpu.memory_space<vmem>>, vector<1x1x32xf32>
    %274 = vector.shape_cast %273 : vector<1x1x32xf32> to vector<1x32xf32>
    %cst_131 = arith.constant dense<0.000000e+00> : vector<8x32xf32>
    %275 = tpu.matmul %266, %268, %cst_131 {dimension_numbers = #tpu.dot_dimension_numbers<[1], [0], [0], [1], [0, 0, 1, 1], [], []>} : vector<8x32xf32>, vector<32x32xf32>, vector<8x32xf32> -> vector<8x32xf32>
    %276 = vector.broadcast %270 : vector<1x32xf32> to vector<8x32xf32>
    %277 = arith.addf %275, %276 : vector<8x32xf32>
    %cst_132 = arith.constant 0.000000e+00 : f32
    %278 = vector.broadcast %cst_132 : f32 to vector<8x32xf32>
    %279 = arith.maximumf %277, %278 : vector<8x32xf32>
    %cst_133 = arith.constant dense<0.000000e+00> : vector<8x32xf32>
    %280 = tpu.matmul %279, %272, %cst_133 {dimension_numbers = #tpu.dot_dimension_numbers<[1], [0], [0], [1], [0, 0, 1, 1], [], []>} : vector<8x32xf32>, vector<32x32xf32>, vector<8x32xf32> -> vector<8x32xf32>
    %281 = vector.broadcast %274 : vector<1x32xf32> to vector<8x32xf32>
    %282 = arith.addf %280, %281 : vector<8x32xf32>
    %283 = arith.addf %266, %282 : vector<8x32xf32>
    %c1_134 = arith.constant 1 : index
    %c0_135 = arith.constant 0 : index
    %c0_136 = arith.constant 0 : index
    %284 = vector.load %arg24[%c1_134, %c0_135, %c0_136] : memref<2x1x32xf32, #tpu.memory_space<vmem>>, vector<1x1x32xf32>
    %285 = vector.shape_cast %284 : vector<1x1x32xf32> to vector<1x32xf32>
    %c1_137 = arith.constant 1 : index
    %c0_138 = arith.constant 0 : index
    %c0_139 = arith.constant 0 : index
    %286 = vector.load %arg25[%c1_137, %c0_138, %c0_139] : memref<2x1x32xf32, #tpu.memory_space<vmem>>, vector<1x1x32xf32>
    %287 = vector.shape_cast %286 : vector<1x1x32xf32> to vector<1x32xf32>
    %cst_140 = arith.constant dense<0.000000e+00> : vector<8xf32>
    %288 = vector.multi_reduction <add>, %283, %cst_140 [1] : vector<8x32xf32> to vector<8xf32>
    %289 = vector.shape_cast %288 : vector<8xf32> to vector<8x1xf32>
    %cst_141 = arith.constant 3.200000e+01 : f32
    %290 = vector.broadcast %cst_141 : f32 to vector<8x1xf32>
    %291 = arith.divf %289, %290 : vector<8x1xf32>
    %292 = vector.broadcast %291 : vector<8x1xf32> to vector<8x32xf32>
    %293 = arith.subf %283, %292 : vector<8x32xf32>
    %294 = arith.mulf %293, %293 : vector<8x32xf32>
    %cst_142 = arith.constant dense<0.000000e+00> : vector<8xf32>
    %295 = vector.multi_reduction <add>, %294, %cst_142 [1] : vector<8x32xf32> to vector<8xf32>
    %296 = vector.shape_cast %295 : vector<8xf32> to vector<8x1xf32>
    %cst_143 = arith.constant 3.200000e+01 : f32
    %297 = vector.broadcast %cst_143 : f32 to vector<8x1xf32>
    %298 = arith.divf %296, %297 : vector<8x1xf32>
    %299 = vector.broadcast %291 : vector<8x1xf32> to vector<8x32xf32>
    %300 = arith.subf %283, %299 : vector<8x32xf32>
    %cst_144 = arith.constant 9.99999974E-6 : f32
    %301 = vector.broadcast %cst_144 : f32 to vector<8x1xf32>
    %302 = arith.addf %298, %301 : vector<8x1xf32>
    %303 = math.rsqrt %302 : vector<8x1xf32>
    %304 = vector.broadcast %303 : vector<8x1xf32> to vector<8x32xf32>
    %305 = arith.mulf %300, %304 : vector<8x32xf32>
    %306 = vector.broadcast %285 : vector<1x32xf32> to vector<8x32xf32>
    %307 = arith.mulf %305, %306 : vector<8x32xf32>
    %308 = vector.broadcast %287 : vector<1x32xf32> to vector<8x32xf32>
    %309 = arith.addf %307, %308 : vector<8x32xf32>
    %cst_145 = arith.constant dense<0.000000e+00> : vector<8xf32>
    %310 = vector.multi_reduction <add>, %309, %cst_145 [1] : vector<8x32xf32> to vector<8xf32>
    %311 = vector.shape_cast %310 : vector<8xf32> to vector<8x1xf32>
    %cst_146 = arith.constant 3.200000e+01 : f32
    %312 = vector.broadcast %cst_146 : f32 to vector<8x1xf32>
    %313 = arith.divf %311, %312 : vector<8x1xf32>
    %314 = vector.broadcast %313 : vector<8x1xf32> to vector<8x32xf32>
    %315 = arith.subf %309, %314 : vector<8x32xf32>
    %316 = arith.mulf %315, %315 : vector<8x32xf32>
    %cst_147 = arith.constant dense<0.000000e+00> : vector<8xf32>
    %317 = vector.multi_reduction <add>, %316, %cst_147 [1] : vector<8x32xf32> to vector<8xf32>
    %318 = vector.shape_cast %317 : vector<8xf32> to vector<8x1xf32>
    %cst_148 = arith.constant 3.200000e+01 : f32
    %319 = vector.broadcast %cst_148 : f32 to vector<8x1xf32>
    %320 = arith.divf %318, %319 : vector<8x1xf32>
    %321 = vector.broadcast %313 : vector<8x1xf32> to vector<8x32xf32>
    %322 = arith.subf %309, %321 : vector<8x32xf32>
    %cst_149 = arith.constant 9.99999974E-6 : f32
    %323 = vector.broadcast %cst_149 : f32 to vector<8x1xf32>
    %324 = arith.addf %320, %323 : vector<8x1xf32>
    %325 = math.rsqrt %324 : vector<8x1xf32>
    %326 = vector.broadcast %325 : vector<8x1xf32> to vector<8x32xf32>
    %327 = arith.mulf %322, %326 : vector<8x32xf32>
    %328 = vector.broadcast %8 : vector<1x32xf32> to vector<8x32xf32>
    %329 = arith.mulf %327, %328 : vector<8x32xf32>
    %330 = vector.broadcast %9 : vector<1x32xf32> to vector<8x32xf32>
    %331 = arith.addf %329, %330 : vector<8x32xf32>
    %c0_150 = arith.constant 0 : index
    %c0_151 = arith.constant 0 : index
    %c0_152 = arith.constant 0 : index
    %332 = vector.load %arg26[%c0_150, %c0_151, %c0_152] : memref<2x32x128xf32, #tpu.memory_space<vmem>>, vector<1x32x128xf32>
    %333 = vector.shape_cast %332 : vector<1x32x128xf32> to vector<32x128xf32>
    %cst_153 = arith.constant dense<0.000000e+00> : vector<8x128xf32>
    %334 = tpu.matmul %29, %333, %cst_153 {dimension_numbers = #tpu.dot_dimension_numbers<[1], [0], [0], [1], [0, 0, 1, 1], [], []>} : vector<8x32xf32>, vector<32x128xf32>, vector<8x128xf32> -> vector<8x128xf32>
    %c0_154 = arith.constant 0 : index
    %c0_155 = arith.constant 0 : index
    %c0_156 = arith.constant 0 : index
    %335 = vector.load %arg27[%c0_154, %c0_155, %c0_156] : memref<2x1x128xf32, #tpu.memory_space<vmem>>, vector<1x1x128xf32>
    %336 = vector.shape_cast %335 : vector<1x1x128xf32> to vector<1x128xf32>
    %337 = vector.broadcast %336 : vector<1x128xf32> to vector<8x128xf32>
    %338 = arith.addf %334, %337 : vector<8x128xf32>
    %339 = vector.extract_strided_slice %338 {offsets = [0, 0], sizes = [8, 32], strides = [1, 1]} : vector<8x128xf32> to vector<8x32xf32>
    %340 = vector.extract_strided_slice %338 {offsets = [0, 32], sizes = [8, 32], strides = [1, 1]} : vector<8x128xf32> to vector<8x32xf32>
    %341 = vector.extract_strided_slice %338 {offsets = [0, 64], sizes = [8, 32], strides = [1, 1]} : vector<8x128xf32> to vector<8x32xf32>
    %c0_157 = arith.constant 0 : index
    %c0_158 = arith.constant 0 : index
    %c0_159 = arith.constant 0 : index
    %342 = vector.load %arg28[%c0_157, %c0_158, %c0_159] : memref<2x32x32xf32, #tpu.memory_space<vmem>>, vector<1x32x32xf32>
    %343 = vector.shape_cast %342 : vector<1x32x32xf32> to vector<32x32xf32>
    %c0_160 = arith.constant 0 : index
    %c0_161 = arith.constant 0 : index
    %c0_162 = arith.constant 0 : index
    %344 = vector.load %arg29[%c0_160, %c0_161, %c0_162] : memref<2x1x32xf32, #tpu.memory_space<vmem>>, vector<1x1x32xf32>
    %345 = vector.shape_cast %344 : vector<1x1x32xf32> to vector<1x32xf32>
    %346 = vector.extract_strided_slice %339 {offsets = [0, 0], sizes = [8, 8], strides = [1, 1]} : vector<8x32xf32> to vector<8x8xf32>
    %347 = vector.extract_strided_slice %339 {offsets = [0, 8], sizes = [8, 8], strides = [1, 1]} : vector<8x32xf32> to vector<8x8xf32>
    %348 = vector.extract_strided_slice %339 {offsets = [0, 16], sizes = [8, 8], strides = [1, 1]} : vector<8x32xf32> to vector<8x8xf32>
    %349 = vector.extract_strided_slice %339 {offsets = [0, 24], sizes = [8, 8], strides = [1, 1]} : vector<8x32xf32> to vector<8x8xf32>
    %350 = vector.shape_cast %346 : vector<8x8xf32> to vector<1x8x8xf32>
    %351 = vector.shape_cast %347 : vector<8x8xf32> to vector<1x8x8xf32>
    %352 = vector.shape_cast %348 : vector<8x8xf32> to vector<1x8x8xf32>
    %353 = vector.shape_cast %349 : vector<8x8xf32> to vector<1x8x8xf32>
    %354 = tpu.concatenate %350, %351, %352, %353 in 0 : vector<1x8x8xf32>, vector<1x8x8xf32>, vector<1x8x8xf32>, vector<1x8x8xf32> -> vector<4x8x8xf32>
    %355 = vector.extract_strided_slice %340 {offsets = [0, 0], sizes = [8, 8], strides = [1, 1]} : vector<8x32xf32> to vector<8x8xf32>
    %356 = vector.extract_strided_slice %340 {offsets = [0, 8], sizes = [8, 8], strides = [1, 1]} : vector<8x32xf32> to vector<8x8xf32>
    %357 = vector.extract_strided_slice %340 {offsets = [0, 16], sizes = [8, 8], strides = [1, 1]} : vector<8x32xf32> to vector<8x8xf32>
    %358 = vector.extract_strided_slice %340 {offsets = [0, 24], sizes = [8, 8], strides = [1, 1]} : vector<8x32xf32> to vector<8x8xf32>
    %359 = vector.shape_cast %355 : vector<8x8xf32> to vector<1x8x8xf32>
    %360 = vector.shape_cast %356 : vector<8x8xf32> to vector<1x8x8xf32>
    %361 = vector.shape_cast %357 : vector<8x8xf32> to vector<1x8x8xf32>
    %362 = vector.shape_cast %358 : vector<8x8xf32> to vector<1x8x8xf32>
    %363 = tpu.concatenate %359, %360, %361, %362 in 0 : vector<1x8x8xf32>, vector<1x8x8xf32>, vector<1x8x8xf32>, vector<1x8x8xf32> -> vector<4x8x8xf32>
    %364 = vector.extract_strided_slice %341 {offsets = [0, 0], sizes = [8, 8], strides = [1, 1]} : vector<8x32xf32> to vector<8x8xf32>
    %365 = vector.extract_strided_slice %341 {offsets = [0, 8], sizes = [8, 8], strides = [1, 1]} : vector<8x32xf32> to vector<8x8xf32>
    %366 = vector.extract_strided_slice %341 {offsets = [0, 16], sizes = [8, 8], strides = [1, 1]} : vector<8x32xf32> to vector<8x8xf32>
    %367 = vector.extract_strided_slice %341 {offsets = [0, 24], sizes = [8, 8], strides = [1, 1]} : vector<8x32xf32> to vector<8x8xf32>
    %368 = vector.shape_cast %364 : vector<8x8xf32> to vector<1x8x8xf32>
    %369 = vector.shape_cast %365 : vector<8x8xf32> to vector<1x8x8xf32>
    %370 = vector.shape_cast %366 : vector<8x8xf32> to vector<1x8x8xf32>
    %371 = vector.shape_cast %367 : vector<8x8xf32> to vector<1x8x8xf32>
    %372 = tpu.concatenate %368, %369, %370, %371 in 0 : vector<1x8x8xf32>, vector<1x8x8xf32>, vector<1x8x8xf32>, vector<1x8x8xf32> -> vector<4x8x8xf32>
    "tpu.trace_start"() <{level = 10 : i32, message = "hqd,hkd->hqk"}> : () -> ()
    %cst_163 = arith.constant dense<0.000000e+00> : vector<4x8x8xf32>
    %373 = tpu.matmul %354, %363, %cst_163 {dimension_numbers = #tpu.dot_dimension_numbers<[2], [2], [1], [1], [0, 0, 0, 1, 1, 1], [0], [0]>} : vector<4x8x8xf32>, vector<4x8x8xf32>, vector<4x8x8xf32> -> vector<4x8x8xf32>
    "tpu.trace_stop"() : () -> ()
    %cst_164 = arith.constant 0.353553385 : f32
    %374 = vector.broadcast %cst_164 : f32 to vector<4x8x8xf32>
    %375 = arith.mulf %373, %374 : vector<4x8x8xf32>
    %376 = vector.shape_cast %35 : vector<8x8xf32> to vector<1x8x8xf32>
    %377 = vector.broadcast %376 : vector<1x8x8xf32> to vector<4x8x8xf32>
    %378 = arith.addf %375, %377 : vector<4x8x8xf32>
    %cst_165 = arith.constant dense<0xFF800000> : vector<4x8xf32>
    %379 = vector.multi_reduction <maximumf>, %378, %cst_165 [2] : vector<4x8x8xf32> to vector<4x8xf32>
    %380 = vector.shape_cast %379 : vector<4x8xf32> to vector<4x8x1xf32>
    %381 = vector.broadcast %380 : vector<4x8x1xf32> to vector<4x8x8xf32>
    %382 = arith.subf %378, %381 : vector<4x8x8xf32>
    %383 = math.exp %382 : vector<4x8x8xf32>
    %cst_166 = arith.constant dense<0.000000e+00> : vector<4x8xf32>
    %384 = vector.multi_reduction <add>, %383, %cst_166 [2] : vector<4x8x8xf32> to vector<4x8xf32>
    %385 = vector.shape_cast %384 : vector<4x8xf32> to vector<4x8x1xf32>
    %386 = tpu.reciprocal %385 {approx = true} : vector<4x8x1xf32> -> vector<4x8x1xf32>
    %387 = vector.broadcast %386 : vector<4x8x1xf32> to vector<4x8x8xf32>
    %388 = arith.mulf %383, %387 : vector<4x8x8xf32>
    "tpu.trace_start"() <{level = 10 : i32, message = "hqk,hkd->hqd"}> : () -> ()
    %cst_167 = arith.constant dense<0.000000e+00> : vector<4x8x8xf32>
    %389 = tpu.matmul %388, %372, %cst_167 {dimension_numbers = #tpu.dot_dimension_numbers<[2], [1], [1], [2], [0, 0, 0, 1, 1, 2], [0], [0]>} : vector<4x8x8xf32>, vector<4x8x8xf32>, vector<4x8x8xf32> -> vector<4x8x8xf32>
    "tpu.trace_stop"() : () -> ()
    %390 = vector.extract_strided_slice %389 {offsets = [0, 0, 0], sizes = [1, 8, 8], strides = [1, 1, 1]} : vector<4x8x8xf32> to vector<1x8x8xf32>
    %391 = vector.shape_cast %390 : vector<1x8x8xf32> to vector<8x8xf32>
    %392 = vector.extract_strided_slice %389 {offsets = [1, 0, 0], sizes = [1, 8, 8], strides = [1, 1, 1]} : vector<4x8x8xf32> to vector<1x8x8xf32>
    %393 = vector.shape_cast %392 : vector<1x8x8xf32> to vector<8x8xf32>
    %394 = vector.extract_strided_slice %389 {offsets = [2, 0, 0], sizes = [1, 8, 8], strides = [1, 1, 1]} : vector<4x8x8xf32> to vector<1x8x8xf32>
    %395 = vector.shape_cast %394 : vector<1x8x8xf32> to vector<8x8xf32>
    %396 = vector.extract_strided_slice %389 {offsets = [3, 0, 0], sizes = [1, 8, 8], strides = [1, 1, 1]} : vector<4x8x8xf32> to vector<1x8x8xf32>
    %397 = vector.shape_cast %396 : vector<1x8x8xf32> to vector<8x8xf32>
    %398 = tpu.concatenate %391, %393, %395, %397 in 1 : vector<8x8xf32>, vector<8x8xf32>, vector<8x8xf32>, vector<8x8xf32> -> vector<8x32xf32>
    %cst_168 = arith.constant dense<0.000000e+00> : vector<8x32xf32>
    %399 = tpu.matmul %398, %343, %cst_168 {dimension_numbers = #tpu.dot_dimension_numbers<[1], [0], [0], [1], [0, 0, 1, 1], [], []>} : vector<8x32xf32>, vector<32x32xf32>, vector<8x32xf32> -> vector<8x32xf32>
    %400 = vector.broadcast %345 : vector<1x32xf32> to vector<8x32xf32>
    %401 = arith.addf %399, %400 : vector<8x32xf32>
    %402 = arith.addf %29, %401 : vector<8x32xf32>
    %c0_169 = arith.constant 0 : index
    %c0_170 = arith.constant 0 : index
    %c0_171 = arith.constant 0 : index
    %403 = vector.load %arg30[%c0_169, %c0_170, %c0_171] : memref<2x1x32xf32, #tpu.memory_space<vmem>>, vector<1x1x32xf32>
    %404 = vector.shape_cast %403 : vector<1x1x32xf32> to vector<1x32xf32>
    %c0_172 = arith.constant 0 : index
    %c0_173 = arith.constant 0 : index
    %c0_174 = arith.constant 0 : index
    %405 = vector.load %arg31[%c0_172, %c0_173, %c0_174] : memref<2x1x32xf32, #tpu.memory_space<vmem>>, vector<1x1x32xf32>
    %406 = vector.shape_cast %405 : vector<1x1x32xf32> to vector<1x32xf32>
    %cst_175 = arith.constant dense<0.000000e+00> : vector<8xf32>
    %407 = vector.multi_reduction <add>, %402, %cst_175 [1] : vector<8x32xf32> to vector<8xf32>
    %408 = vector.shape_cast %407 : vector<8xf32> to vector<8x1xf32>
    %cst_176 = arith.constant 3.200000e+01 : f32
    %409 = vector.broadcast %cst_176 : f32 to vector<8x1xf32>
    %410 = arith.divf %408, %409 : vector<8x1xf32>
    %411 = vector.broadcast %410 : vector<8x1xf32> to vector<8x32xf32>
    %412 = arith.subf %402, %411 : vector<8x32xf32>
    %413 = arith.mulf %412, %412 : vector<8x32xf32>
    %cst_177 = arith.constant dense<0.000000e+00> : vector<8xf32>
    %414 = vector.multi_reduction <add>, %413, %cst_177 [1] : vector<8x32xf32> to vector<8xf32>
    %415 = vector.shape_cast %414 : vector<8xf32> to vector<8x1xf32>
    %cst_178 = arith.constant 3.200000e+01 : f32
    %416 = vector.broadcast %cst_178 : f32 to vector<8x1xf32>
    %417 = arith.divf %415, %416 : vector<8x1xf32>
    %418 = vector.broadcast %410 : vector<8x1xf32> to vector<8x32xf32>
    %419 = arith.subf %402, %418 : vector<8x32xf32>
    %cst_179 = arith.constant 9.99999974E-6 : f32
    %420 = vector.broadcast %cst_179 : f32 to vector<8x1xf32>
    %421 = arith.addf %417, %420 : vector<8x1xf32>
    %422 = math.rsqrt %421 : vector<8x1xf32>
    %423 = vector.broadcast %422 : vector<8x1xf32> to vector<8x32xf32>
    %424 = arith.mulf %419, %423 : vector<8x32xf32>
    %425 = vector.broadcast %404 : vector<1x32xf32> to vector<8x32xf32>
    %426 = arith.mulf %424, %425 : vector<8x32xf32>
    %427 = vector.broadcast %406 : vector<1x32xf32> to vector<8x32xf32>
    %428 = arith.addf %426, %427 : vector<8x32xf32>
    %c0_180 = arith.constant 0 : index
    %c0_181 = arith.constant 0 : index
    %c0_182 = arith.constant 0 : index
    %429 = vector.load %arg32[%c0_180, %c0_181, %c0_182] : memref<2x32x32xf32, #tpu.memory_space<vmem>>, vector<1x32x32xf32>
    %430 = vector.shape_cast %429 : vector<1x32x32xf32> to vector<32x32xf32>
    %cst_183 = arith.constant dense<0.000000e+00> : vector<8x32xf32>
    %431 = tpu.matmul %428, %430, %cst_183 {dimension_numbers = #tpu.dot_dimension_numbers<[1], [0], [0], [1], [0, 0, 1, 1], [], []>} : vector<8x32xf32>, vector<32x32xf32>, vector<8x32xf32> -> vector<8x32xf32>
    %c0_184 = arith.constant 0 : index
    %c0_185 = arith.constant 0 : index
    %c0_186 = arith.constant 0 : index
    %432 = vector.load %arg33[%c0_184, %c0_185, %c0_186] : memref<2x1x32xf32, #tpu.memory_space<vmem>>, vector<1x1x32xf32>
    %433 = vector.shape_cast %432 : vector<1x1x32xf32> to vector<1x32xf32>
    %434 = vector.broadcast %433 : vector<1x32xf32> to vector<8x32xf32>
    %435 = arith.addf %431, %434 : vector<8x32xf32>
    %c0_187 = arith.constant 0 : index
    %c0_188 = arith.constant 0 : index
    %c0_189 = arith.constant 0 : index
    %436 = vector.load %arg34[%c0_187, %c0_188, %c0_189] : memref<2x32x128xf32, #tpu.memory_space<vmem>>, vector<1x32x128xf32>
    %437 = vector.shape_cast %436 : vector<1x32x128xf32> to vector<32x128xf32>
    %cst_190 = arith.constant dense<0.000000e+00> : vector<8x128xf32>
    %438 = tpu.matmul %331, %437, %cst_190 {dimension_numbers = #tpu.dot_dimension_numbers<[1], [0], [0], [1], [0, 0, 1, 1], [], []>} : vector<8x32xf32>, vector<32x128xf32>, vector<8x128xf32> -> vector<8x128xf32>
    %c0_191 = arith.constant 0 : index
    %c0_192 = arith.constant 0 : index
    %c0_193 = arith.constant 0 : index
    %439 = vector.load %arg35[%c0_191, %c0_192, %c0_193] : memref<2x1x128xf32, #tpu.memory_space<vmem>>, vector<1x1x128xf32>
    %440 = vector.shape_cast %439 : vector<1x1x128xf32> to vector<1x128xf32>
    %441 = vector.broadcast %440 : vector<1x128xf32> to vector<8x128xf32>
    %442 = arith.addf %438, %441 : vector<8x128xf32>
    %443 = vector.extract_strided_slice %442 {offsets = [0, 0], sizes = [8, 32], strides = [1, 1]} : vector<8x128xf32> to vector<8x32xf32>
    %444 = vector.extract_strided_slice %442 {offsets = [0, 32], sizes = [8, 32], strides = [1, 1]} : vector<8x128xf32> to vector<8x32xf32>
    %c0_194 = arith.constant 0 : index
    %c0_195 = arith.constant 0 : index
    %c0_196 = arith.constant 0 : index
    %445 = vector.load %arg36[%c0_194, %c0_195, %c0_196] : memref<2x32x32xf32, #tpu.memory_space<vmem>>, vector<1x32x32xf32>
    %446 = vector.shape_cast %445 : vector<1x32x32xf32> to vector<32x32xf32>
    %c0_197 = arith.constant 0 : index
    %c0_198 = arith.constant 0 : index
    %c0_199 = arith.constant 0 : index
    %447 = vector.load %arg37[%c0_197, %c0_198, %c0_199] : memref<2x1x32xf32, #tpu.memory_space<vmem>>, vector<1x1x32xf32>
    %448 = vector.shape_cast %447 : vector<1x1x32xf32> to vector<1x32xf32>
    %449 = vector.extract_strided_slice %435 {offsets = [0, 0], sizes = [8, 8], strides = [1, 1]} : vector<8x32xf32> to vector<8x8xf32>
    %450 = vector.extract_strided_slice %435 {offsets = [0, 8], sizes = [8, 8], strides = [1, 1]} : vector<8x32xf32> to vector<8x8xf32>
    %451 = vector.extract_strided_slice %435 {offsets = [0, 16], sizes = [8, 8], strides = [1, 1]} : vector<8x32xf32> to vector<8x8xf32>
    %452 = vector.extract_strided_slice %435 {offsets = [0, 24], sizes = [8, 8], strides = [1, 1]} : vector<8x32xf32> to vector<8x8xf32>
    %453 = vector.shape_cast %449 : vector<8x8xf32> to vector<1x8x8xf32>
    %454 = vector.shape_cast %450 : vector<8x8xf32> to vector<1x8x8xf32>
    %455 = vector.shape_cast %451 : vector<8x8xf32> to vector<1x8x8xf32>
    %456 = vector.shape_cast %452 : vector<8x8xf32> to vector<1x8x8xf32>
    %457 = tpu.concatenate %453, %454, %455, %456 in 0 : vector<1x8x8xf32>, vector<1x8x8xf32>, vector<1x8x8xf32>, vector<1x8x8xf32> -> vector<4x8x8xf32>
    %458 = vector.extract_strided_slice %443 {offsets = [0, 0], sizes = [8, 8], strides = [1, 1]} : vector<8x32xf32> to vector<8x8xf32>
    %459 = vector.extract_strided_slice %443 {offsets = [0, 8], sizes = [8, 8], strides = [1, 1]} : vector<8x32xf32> to vector<8x8xf32>
    %460 = vector.extract_strided_slice %443 {offsets = [0, 16], sizes = [8, 8], strides = [1, 1]} : vector<8x32xf32> to vector<8x8xf32>
    %461 = vector.extract_strided_slice %443 {offsets = [0, 24], sizes = [8, 8], strides = [1, 1]} : vector<8x32xf32> to vector<8x8xf32>
    %462 = vector.shape_cast %458 : vector<8x8xf32> to vector<1x8x8xf32>
    %463 = vector.shape_cast %459 : vector<8x8xf32> to vector<1x8x8xf32>
    %464 = vector.shape_cast %460 : vector<8x8xf32> to vector<1x8x8xf32>
    %465 = vector.shape_cast %461 : vector<8x8xf32> to vector<1x8x8xf32>
    %466 = tpu.concatenate %462, %463, %464, %465 in 0 : vector<1x8x8xf32>, vector<1x8x8xf32>, vector<1x8x8xf32>, vector<1x8x8xf32> -> vector<4x8x8xf32>
    %467 = vector.extract_strided_slice %444 {offsets = [0, 0], sizes = [8, 8], strides = [1, 1]} : vector<8x32xf32> to vector<8x8xf32>
    %468 = vector.extract_strided_slice %444 {offsets = [0, 8], sizes = [8, 8], strides = [1, 1]} : vector<8x32xf32> to vector<8x8xf32>
    %469 = vector.extract_strided_slice %444 {offsets = [0, 16], sizes = [8, 8], strides = [1, 1]} : vector<8x32xf32> to vector<8x8xf32>
    %470 = vector.extract_strided_slice %444 {offsets = [0, 24], sizes = [8, 8], strides = [1, 1]} : vector<8x32xf32> to vector<8x8xf32>
    %471 = vector.shape_cast %467 : vector<8x8xf32> to vector<1x8x8xf32>
    %472 = vector.shape_cast %468 : vector<8x8xf32> to vector<1x8x8xf32>
    %473 = vector.shape_cast %469 : vector<8x8xf32> to vector<1x8x8xf32>
    %474 = vector.shape_cast %470 : vector<8x8xf32> to vector<1x8x8xf32>
    %475 = tpu.concatenate %471, %472, %473, %474 in 0 : vector<1x8x8xf32>, vector<1x8x8xf32>, vector<1x8x8xf32>, vector<1x8x8xf32> -> vector<4x8x8xf32>
    "tpu.trace_start"() <{level = 10 : i32, message = "hqd,hkd->hqk"}> : () -> ()
    %cst_200 = arith.constant dense<0.000000e+00> : vector<4x8x8xf32>
    %476 = tpu.matmul %457, %466, %cst_200 {dimension_numbers = #tpu.dot_dimension_numbers<[2], [2], [1], [1], [0, 0, 0, 1, 1, 1], [0], [0]>} : vector<4x8x8xf32>, vector<4x8x8xf32>, vector<4x8x8xf32> -> vector<4x8x8xf32>
    "tpu.trace_stop"() : () -> ()
    %cst_201 = arith.constant 0.353553385 : f32
    %477 = vector.broadcast %cst_201 : f32 to vector<4x8x8xf32>
    %478 = arith.mulf %476, %477 : vector<4x8x8xf32>
    %cst_202 = arith.constant dense<0xFF800000> : vector<4x8xf32>
    %479 = vector.multi_reduction <maximumf>, %478, %cst_202 [2] : vector<4x8x8xf32> to vector<4x8xf32>
    %480 = vector.shape_cast %479 : vector<4x8xf32> to vector<4x8x1xf32>
    %481 = vector.broadcast %480 : vector<4x8x1xf32> to vector<4x8x8xf32>
    %482 = arith.subf %478, %481 : vector<4x8x8xf32>
    %483 = math.exp %482 : vector<4x8x8xf32>
    %cst_203 = arith.constant dense<0.000000e+00> : vector<4x8xf32>
    %484 = vector.multi_reduction <add>, %483, %cst_203 [2] : vector<4x8x8xf32> to vector<4x8xf32>
    %485 = vector.shape_cast %484 : vector<4x8xf32> to vector<4x8x1xf32>
    %486 = tpu.reciprocal %485 {approx = true} : vector<4x8x1xf32> -> vector<4x8x1xf32>
    %487 = vector.broadcast %486 : vector<4x8x1xf32> to vector<4x8x8xf32>
    %488 = arith.mulf %483, %487 : vector<4x8x8xf32>
    "tpu.trace_start"() <{level = 10 : i32, message = "hqk,hkd->hqd"}> : () -> ()
    %cst_204 = arith.constant dense<0.000000e+00> : vector<4x8x8xf32>
    %489 = tpu.matmul %488, %475, %cst_204 {dimension_numbers = #tpu.dot_dimension_numbers<[2], [1], [1], [2], [0, 0, 0, 1, 1, 2], [0], [0]>} : vector<4x8x8xf32>, vector<4x8x8xf32>, vector<4x8x8xf32> -> vector<4x8x8xf32>
    "tpu.trace_stop"() : () -> ()
    %490 = vector.extract_strided_slice %489 {offsets = [0, 0, 0], sizes = [1, 8, 8], strides = [1, 1, 1]} : vector<4x8x8xf32> to vector<1x8x8xf32>
    %491 = vector.shape_cast %490 : vector<1x8x8xf32> to vector<8x8xf32>
    %492 = vector.extract_strided_slice %489 {offsets = [1, 0, 0], sizes = [1, 8, 8], strides = [1, 1, 1]} : vector<4x8x8xf32> to vector<1x8x8xf32>
    %493 = vector.shape_cast %492 : vector<1x8x8xf32> to vector<8x8xf32>
    %494 = vector.extract_strided_slice %489 {offsets = [2, 0, 0], sizes = [1, 8, 8], strides = [1, 1, 1]} : vector<4x8x8xf32> to vector<1x8x8xf32>
    %495 = vector.shape_cast %494 : vector<1x8x8xf32> to vector<8x8xf32>
    %496 = vector.extract_strided_slice %489 {offsets = [3, 0, 0], sizes = [1, 8, 8], strides = [1, 1, 1]} : vector<4x8x8xf32> to vector<1x8x8xf32>
    %497 = vector.shape_cast %496 : vector<1x8x8xf32> to vector<8x8xf32>
    %498 = tpu.concatenate %491, %493, %495, %497 in 1 : vector<8x8xf32>, vector<8x8xf32>, vector<8x8xf32>, vector<8x8xf32> -> vector<8x32xf32>
    %cst_205 = arith.constant dense<0.000000e+00> : vector<8x32xf32>
    %499 = tpu.matmul %498, %446, %cst_205 {dimension_numbers = #tpu.dot_dimension_numbers<[1], [0], [0], [1], [0, 0, 1, 1], [], []>} : vector<8x32xf32>, vector<32x32xf32>, vector<8x32xf32> -> vector<8x32xf32>
    %500 = vector.broadcast %448 : vector<1x32xf32> to vector<8x32xf32>
    %501 = arith.addf %499, %500 : vector<8x32xf32>
    %502 = arith.addf %428, %501 : vector<8x32xf32>
    %c0_206 = arith.constant 0 : index
    %c0_207 = arith.constant 0 : index
    %c0_208 = arith.constant 0 : index
    %503 = vector.load %arg38[%c0_206, %c0_207, %c0_208] : memref<2x1x32xf32, #tpu.memory_space<vmem>>, vector<1x1x32xf32>
    %504 = vector.shape_cast %503 : vector<1x1x32xf32> to vector<1x32xf32>
    %c0_209 = arith.constant 0 : index
    %c0_210 = arith.constant 0 : index
    %c0_211 = arith.constant 0 : index
    %505 = vector.load %arg39[%c0_209, %c0_210, %c0_211] : memref<2x1x32xf32, #tpu.memory_space<vmem>>, vector<1x1x32xf32>
    %506 = vector.shape_cast %505 : vector<1x1x32xf32> to vector<1x32xf32>
    %cst_212 = arith.constant dense<0.000000e+00> : vector<8xf32>
    %507 = vector.multi_reduction <add>, %502, %cst_212 [1] : vector<8x32xf32> to vector<8xf32>
    %508 = vector.shape_cast %507 : vector<8xf32> to vector<8x1xf32>
    %cst_213 = arith.constant 3.200000e+01 : f32
    %509 = vector.broadcast %cst_213 : f32 to vector<8x1xf32>
    %510 = arith.divf %508, %509 : vector<8x1xf32>
    %511 = vector.broadcast %510 : vector<8x1xf32> to vector<8x32xf32>
    %512 = arith.subf %502, %511 : vector<8x32xf32>
    %513 = arith.mulf %512, %512 : vector<8x32xf32>
    %cst_214 = arith.constant dense<0.000000e+00> : vector<8xf32>
    %514 = vector.multi_reduction <add>, %513, %cst_214 [1] : vector<8x32xf32> to vector<8xf32>
    %515 = vector.shape_cast %514 : vector<8xf32> to vector<8x1xf32>
    %cst_215 = arith.constant 3.200000e+01 : f32
    %516 = vector.broadcast %cst_215 : f32 to vector<8x1xf32>
    %517 = arith.divf %515, %516 : vector<8x1xf32>
    %518 = vector.broadcast %510 : vector<8x1xf32> to vector<8x32xf32>
    %519 = arith.subf %502, %518 : vector<8x32xf32>
    %cst_216 = arith.constant 9.99999974E-6 : f32
    %520 = vector.broadcast %cst_216 : f32 to vector<8x1xf32>
    %521 = arith.addf %517, %520 : vector<8x1xf32>
    %522 = math.rsqrt %521 : vector<8x1xf32>
    %523 = vector.broadcast %522 : vector<8x1xf32> to vector<8x32xf32>
    %524 = arith.mulf %519, %523 : vector<8x32xf32>
    %525 = vector.broadcast %504 : vector<1x32xf32> to vector<8x32xf32>
    %526 = arith.mulf %524, %525 : vector<8x32xf32>
    %527 = vector.broadcast %506 : vector<1x32xf32> to vector<8x32xf32>
    %528 = arith.addf %526, %527 : vector<8x32xf32>
    %c0_217 = arith.constant 0 : index
    %c0_218 = arith.constant 0 : index
    %c0_219 = arith.constant 0 : index
    %529 = vector.load %arg40[%c0_217, %c0_218, %c0_219] : memref<2x32x32xf32, #tpu.memory_space<vmem>>, vector<1x32x32xf32>
    %530 = vector.shape_cast %529 : vector<1x32x32xf32> to vector<32x32xf32>
    %c0_220 = arith.constant 0 : index
    %c0_221 = arith.constant 0 : index
    %c0_222 = arith.constant 0 : index
    %531 = vector.load %arg41[%c0_220, %c0_221, %c0_222] : memref<2x1x32xf32, #tpu.memory_space<vmem>>, vector<1x1x32xf32>
    %532 = vector.shape_cast %531 : vector<1x1x32xf32> to vector<1x32xf32>
    %c0_223 = arith.constant 0 : index
    %c0_224 = arith.constant 0 : index
    %c0_225 = arith.constant 0 : index
    %533 = vector.load %arg42[%c0_223, %c0_224, %c0_225] : memref<2x32x32xf32, #tpu.memory_space<vmem>>, vector<1x32x32xf32>
    %534 = vector.shape_cast %533 : vector<1x32x32xf32> to vector<32x32xf32>
    %c0_226 = arith.constant 0 : index
    %c0_227 = arith.constant 0 : index
    %c0_228 = arith.constant 0 : index
    %535 = vector.load %arg43[%c0_226, %c0_227, %c0_228] : memref<2x1x32xf32, #tpu.memory_space<vmem>>, vector<1x1x32xf32>
    %536 = vector.shape_cast %535 : vector<1x1x32xf32> to vector<1x32xf32>
    %cst_229 = arith.constant dense<0.000000e+00> : vector<8x32xf32>
    %537 = tpu.matmul %528, %530, %cst_229 {dimension_numbers = #tpu.dot_dimension_numbers<[1], [0], [0], [1], [0, 0, 1, 1], [], []>} : vector<8x32xf32>, vector<32x32xf32>, vector<8x32xf32> -> vector<8x32xf32>
    %538 = vector.broadcast %532 : vector<1x32xf32> to vector<8x32xf32>
    %539 = arith.addf %537, %538 : vector<8x32xf32>
    %cst_230 = arith.constant 0.000000e+00 : f32
    %540 = vector.broadcast %cst_230 : f32 to vector<8x32xf32>
    %541 = arith.maximumf %539, %540 : vector<8x32xf32>
    %cst_231 = arith.constant dense<0.000000e+00> : vector<8x32xf32>
    %542 = tpu.matmul %541, %534, %cst_231 {dimension_numbers = #tpu.dot_dimension_numbers<[1], [0], [0], [1], [0, 0, 1, 1], [], []>} : vector<8x32xf32>, vector<32x32xf32>, vector<8x32xf32> -> vector<8x32xf32>
    %543 = vector.broadcast %536 : vector<1x32xf32> to vector<8x32xf32>
    %544 = arith.addf %542, %543 : vector<8x32xf32>
    %545 = arith.addf %528, %544 : vector<8x32xf32>
    %c0_232 = arith.constant 0 : index
    %c0_233 = arith.constant 0 : index
    %c0_234 = arith.constant 0 : index
    %546 = vector.load %arg44[%c0_232, %c0_233, %c0_234] : memref<2x1x32xf32, #tpu.memory_space<vmem>>, vector<1x1x32xf32>
    %547 = vector.shape_cast %546 : vector<1x1x32xf32> to vector<1x32xf32>
    %c0_235 = arith.constant 0 : index
    %c0_236 = arith.constant 0 : index
    %c0_237 = arith.constant 0 : index
    %548 = vector.load %arg45[%c0_235, %c0_236, %c0_237] : memref<2x1x32xf32, #tpu.memory_space<vmem>>, vector<1x1x32xf32>
    %549 = vector.shape_cast %548 : vector<1x1x32xf32> to vector<1x32xf32>
    %cst_238 = arith.constant dense<0.000000e+00> : vector<8xf32>
    %550 = vector.multi_reduction <add>, %545, %cst_238 [1] : vector<8x32xf32> to vector<8xf32>
    %551 = vector.shape_cast %550 : vector<8xf32> to vector<8x1xf32>
    %cst_239 = arith.constant 3.200000e+01 : f32
    %552 = vector.broadcast %cst_239 : f32 to vector<8x1xf32>
    %553 = arith.divf %551, %552 : vector<8x1xf32>
    %554 = vector.broadcast %553 : vector<8x1xf32> to vector<8x32xf32>
    %555 = arith.subf %545, %554 : vector<8x32xf32>
    %556 = arith.mulf %555, %555 : vector<8x32xf32>
    %cst_240 = arith.constant dense<0.000000e+00> : vector<8xf32>
    %557 = vector.multi_reduction <add>, %556, %cst_240 [1] : vector<8x32xf32> to vector<8xf32>
    %558 = vector.shape_cast %557 : vector<8xf32> to vector<8x1xf32>
    %cst_241 = arith.constant 3.200000e+01 : f32
    %559 = vector.broadcast %cst_241 : f32 to vector<8x1xf32>
    %560 = arith.divf %558, %559 : vector<8x1xf32>
    %561 = vector.broadcast %553 : vector<8x1xf32> to vector<8x32xf32>
    %562 = arith.subf %545, %561 : vector<8x32xf32>
    %cst_242 = arith.constant 9.99999974E-6 : f32
    %563 = vector.broadcast %cst_242 : f32 to vector<8x1xf32>
    %564 = arith.addf %560, %563 : vector<8x1xf32>
    %565 = math.rsqrt %564 : vector<8x1xf32>
    %566 = vector.broadcast %565 : vector<8x1xf32> to vector<8x32xf32>
    %567 = arith.mulf %562, %566 : vector<8x32xf32>
    %568 = vector.broadcast %547 : vector<1x32xf32> to vector<8x32xf32>
    %569 = arith.mulf %567, %568 : vector<8x32xf32>
    %570 = vector.broadcast %549 : vector<1x32xf32> to vector<8x32xf32>
    %571 = arith.addf %569, %570 : vector<8x32xf32>
    %c1_243 = arith.constant 1 : index
    %c0_244 = arith.constant 0 : index
    %c0_245 = arith.constant 0 : index
    %572 = vector.load %arg26[%c1_243, %c0_244, %c0_245] : memref<2x32x128xf32, #tpu.memory_space<vmem>>, vector<1x32x128xf32>
    %573 = vector.shape_cast %572 : vector<1x32x128xf32> to vector<32x128xf32>
    %cst_246 = arith.constant dense<0.000000e+00> : vector<8x128xf32>
    %574 = tpu.matmul %571, %573, %cst_246 {dimension_numbers = #tpu.dot_dimension_numbers<[1], [0], [0], [1], [0, 0, 1, 1], [], []>} : vector<8x32xf32>, vector<32x128xf32>, vector<8x128xf32> -> vector<8x128xf32>
    %c1_247 = arith.constant 1 : index
    %c0_248 = arith.constant 0 : index
    %c0_249 = arith.constant 0 : index
    %575 = vector.load %arg27[%c1_247, %c0_248, %c0_249] : memref<2x1x128xf32, #tpu.memory_space<vmem>>, vector<1x1x128xf32>
    %576 = vector.shape_cast %575 : vector<1x1x128xf32> to vector<1x128xf32>
    %577 = vector.broadcast %576 : vector<1x128xf32> to vector<8x128xf32>
    %578 = arith.addf %574, %577 : vector<8x128xf32>
    %579 = vector.extract_strided_slice %578 {offsets = [0, 0], sizes = [8, 32], strides = [1, 1]} : vector<8x128xf32> to vector<8x32xf32>
    %580 = vector.extract_strided_slice %578 {offsets = [0, 32], sizes = [8, 32], strides = [1, 1]} : vector<8x128xf32> to vector<8x32xf32>
    %581 = vector.extract_strided_slice %578 {offsets = [0, 64], sizes = [8, 32], strides = [1, 1]} : vector<8x128xf32> to vector<8x32xf32>
    %c1_250 = arith.constant 1 : index
    %c0_251 = arith.constant 0 : index
    %c0_252 = arith.constant 0 : index
    %582 = vector.load %arg28[%c1_250, %c0_251, %c0_252] : memref<2x32x32xf32, #tpu.memory_space<vmem>>, vector<1x32x32xf32>
    %583 = vector.shape_cast %582 : vector<1x32x32xf32> to vector<32x32xf32>
    %c1_253 = arith.constant 1 : index
    %c0_254 = arith.constant 0 : index
    %c0_255 = arith.constant 0 : index
    %584 = vector.load %arg29[%c1_253, %c0_254, %c0_255] : memref<2x1x32xf32, #tpu.memory_space<vmem>>, vector<1x1x32xf32>
    %585 = vector.shape_cast %584 : vector<1x1x32xf32> to vector<1x32xf32>
    %586 = vector.extract_strided_slice %579 {offsets = [0, 0], sizes = [8, 8], strides = [1, 1]} : vector<8x32xf32> to vector<8x8xf32>
    %587 = vector.extract_strided_slice %579 {offsets = [0, 8], sizes = [8, 8], strides = [1, 1]} : vector<8x32xf32> to vector<8x8xf32>
    %588 = vector.extract_strided_slice %579 {offsets = [0, 16], sizes = [8, 8], strides = [1, 1]} : vector<8x32xf32> to vector<8x8xf32>
    %589 = vector.extract_strided_slice %579 {offsets = [0, 24], sizes = [8, 8], strides = [1, 1]} : vector<8x32xf32> to vector<8x8xf32>
    %590 = vector.shape_cast %586 : vector<8x8xf32> to vector<1x8x8xf32>
    %591 = vector.shape_cast %587 : vector<8x8xf32> to vector<1x8x8xf32>
    %592 = vector.shape_cast %588 : vector<8x8xf32> to vector<1x8x8xf32>
    %593 = vector.shape_cast %589 : vector<8x8xf32> to vector<1x8x8xf32>
    %594 = tpu.concatenate %590, %591, %592, %593 in 0 : vector<1x8x8xf32>, vector<1x8x8xf32>, vector<1x8x8xf32>, vector<1x8x8xf32> -> vector<4x8x8xf32>
    %595 = vector.extract_strided_slice %580 {offsets = [0, 0], sizes = [8, 8], strides = [1, 1]} : vector<8x32xf32> to vector<8x8xf32>
    %596 = vector.extract_strided_slice %580 {offsets = [0, 8], sizes = [8, 8], strides = [1, 1]} : vector<8x32xf32> to vector<8x8xf32>
    %597 = vector.extract_strided_slice %580 {offsets = [0, 16], sizes = [8, 8], strides = [1, 1]} : vector<8x32xf32> to vector<8x8xf32>
    %598 = vector.extract_strided_slice %580 {offsets = [0, 24], sizes = [8, 8], strides = [1, 1]} : vector<8x32xf32> to vector<8x8xf32>
    %599 = vector.shape_cast %595 : vector<8x8xf32> to vector<1x8x8xf32>
    %600 = vector.shape_cast %596 : vector<8x8xf32> to vector<1x8x8xf32>
    %601 = vector.shape_cast %597 : vector<8x8xf32> to vector<1x8x8xf32>
    %602 = vector.shape_cast %598 : vector<8x8xf32> to vector<1x8x8xf32>
    %603 = tpu.concatenate %599, %600, %601, %602 in 0 : vector<1x8x8xf32>, vector<1x8x8xf32>, vector<1x8x8xf32>, vector<1x8x8xf32> -> vector<4x8x8xf32>
    %604 = vector.extract_strided_slice %581 {offsets = [0, 0], sizes = [8, 8], strides = [1, 1]} : vector<8x32xf32> to vector<8x8xf32>
    %605 = vector.extract_strided_slice %581 {offsets = [0, 8], sizes = [8, 8], strides = [1, 1]} : vector<8x32xf32> to vector<8x8xf32>
    %606 = vector.extract_strided_slice %581 {offsets = [0, 16], sizes = [8, 8], strides = [1, 1]} : vector<8x32xf32> to vector<8x8xf32>
    %607 = vector.extract_strided_slice %581 {offsets = [0, 24], sizes = [8, 8], strides = [1, 1]} : vector<8x32xf32> to vector<8x8xf32>
    %608 = vector.shape_cast %604 : vector<8x8xf32> to vector<1x8x8xf32>
    %609 = vector.shape_cast %605 : vector<8x8xf32> to vector<1x8x8xf32>
    %610 = vector.shape_cast %606 : vector<8x8xf32> to vector<1x8x8xf32>
    %611 = vector.shape_cast %607 : vector<8x8xf32> to vector<1x8x8xf32>
    %612 = tpu.concatenate %608, %609, %610, %611 in 0 : vector<1x8x8xf32>, vector<1x8x8xf32>, vector<1x8x8xf32>, vector<1x8x8xf32> -> vector<4x8x8xf32>
    "tpu.trace_start"() <{level = 10 : i32, message = "hqd,hkd->hqk"}> : () -> ()
    %cst_256 = arith.constant dense<0.000000e+00> : vector<4x8x8xf32>
    %613 = tpu.matmul %594, %603, %cst_256 {dimension_numbers = #tpu.dot_dimension_numbers<[2], [2], [1], [1], [0, 0, 0, 1, 1, 1], [0], [0]>} : vector<4x8x8xf32>, vector<4x8x8xf32>, vector<4x8x8xf32> -> vector<4x8x8xf32>
    "tpu.trace_stop"() : () -> ()
    %cst_257 = arith.constant 0.353553385 : f32
    %614 = vector.broadcast %cst_257 : f32 to vector<4x8x8xf32>
    %615 = arith.mulf %613, %614 : vector<4x8x8xf32>
    %616 = vector.shape_cast %35 : vector<8x8xf32> to vector<1x8x8xf32>
    %617 = vector.broadcast %616 : vector<1x8x8xf32> to vector<4x8x8xf32>
    %618 = arith.addf %615, %617 : vector<4x8x8xf32>
    %cst_258 = arith.constant dense<0xFF800000> : vector<4x8xf32>
    %619 = vector.multi_reduction <maximumf>, %618, %cst_258 [2] : vector<4x8x8xf32> to vector<4x8xf32>
    %620 = vector.shape_cast %619 : vector<4x8xf32> to vector<4x8x1xf32>
    %621 = vector.broadcast %620 : vector<4x8x1xf32> to vector<4x8x8xf32>
    %622 = arith.subf %618, %621 : vector<4x8x8xf32>
    %623 = math.exp %622 : vector<4x8x8xf32>
    %cst_259 = arith.constant dense<0.000000e+00> : vector<4x8xf32>
    %624 = vector.multi_reduction <add>, %623, %cst_259 [2] : vector<4x8x8xf32> to vector<4x8xf32>
    %625 = vector.shape_cast %624 : vector<4x8xf32> to vector<4x8x1xf32>
    %626 = tpu.reciprocal %625 {approx = true} : vector<4x8x1xf32> -> vector<4x8x1xf32>
    %627 = vector.broadcast %626 : vector<4x8x1xf32> to vector<4x8x8xf32>
    %628 = arith.mulf %623, %627 : vector<4x8x8xf32>
    "tpu.trace_start"() <{level = 10 : i32, message = "hqk,hkd->hqd"}> : () -> ()
    %cst_260 = arith.constant dense<0.000000e+00> : vector<4x8x8xf32>
    %629 = tpu.matmul %628, %612, %cst_260 {dimension_numbers = #tpu.dot_dimension_numbers<[2], [1], [1], [2], [0, 0, 0, 1, 1, 2], [0], [0]>} : vector<4x8x8xf32>, vector<4x8x8xf32>, vector<4x8x8xf32> -> vector<4x8x8xf32>
    "tpu.trace_stop"() : () -> ()
    %630 = vector.extract_strided_slice %629 {offsets = [0, 0, 0], sizes = [1, 8, 8], strides = [1, 1, 1]} : vector<4x8x8xf32> to vector<1x8x8xf32>
    %631 = vector.shape_cast %630 : vector<1x8x8xf32> to vector<8x8xf32>
    %632 = vector.extract_strided_slice %629 {offsets = [1, 0, 0], sizes = [1, 8, 8], strides = [1, 1, 1]} : vector<4x8x8xf32> to vector<1x8x8xf32>
    %633 = vector.shape_cast %632 : vector<1x8x8xf32> to vector<8x8xf32>
    %634 = vector.extract_strided_slice %629 {offsets = [2, 0, 0], sizes = [1, 8, 8], strides = [1, 1, 1]} : vector<4x8x8xf32> to vector<1x8x8xf32>
    %635 = vector.shape_cast %634 : vector<1x8x8xf32> to vector<8x8xf32>
    %636 = vector.extract_strided_slice %629 {offsets = [3, 0, 0], sizes = [1, 8, 8], strides = [1, 1, 1]} : vector<4x8x8xf32> to vector<1x8x8xf32>
    %637 = vector.shape_cast %636 : vector<1x8x8xf32> to vector<8x8xf32>
    %638 = tpu.concatenate %631, %633, %635, %637 in 1 : vector<8x8xf32>, vector<8x8xf32>, vector<8x8xf32>, vector<8x8xf32> -> vector<8x32xf32>
    %cst_261 = arith.constant dense<0.000000e+00> : vector<8x32xf32>
    %639 = tpu.matmul %638, %583, %cst_261 {dimension_numbers = #tpu.dot_dimension_numbers<[1], [0], [0], [1], [0, 0, 1, 1], [], []>} : vector<8x32xf32>, vector<32x32xf32>, vector<8x32xf32> -> vector<8x32xf32>
    %640 = vector.broadcast %585 : vector<1x32xf32> to vector<8x32xf32>
    %641 = arith.addf %639, %640 : vector<8x32xf32>
    %642 = arith.addf %571, %641 : vector<8x32xf32>
    %c1_262 = arith.constant 1 : index
    %c0_263 = arith.constant 0 : index
    %c0_264 = arith.constant 0 : index
    %643 = vector.load %arg30[%c1_262, %c0_263, %c0_264] : memref<2x1x32xf32, #tpu.memory_space<vmem>>, vector<1x1x32xf32>
    %644 = vector.shape_cast %643 : vector<1x1x32xf32> to vector<1x32xf32>
    %c1_265 = arith.constant 1 : index
    %c0_266 = arith.constant 0 : index
    %c0_267 = arith.constant 0 : index
    %645 = vector.load %arg31[%c1_265, %c0_266, %c0_267] : memref<2x1x32xf32, #tpu.memory_space<vmem>>, vector<1x1x32xf32>
    %646 = vector.shape_cast %645 : vector<1x1x32xf32> to vector<1x32xf32>
    %cst_268 = arith.constant dense<0.000000e+00> : vector<8xf32>
    %647 = vector.multi_reduction <add>, %642, %cst_268 [1] : vector<8x32xf32> to vector<8xf32>
    %648 = vector.shape_cast %647 : vector<8xf32> to vector<8x1xf32>
    %cst_269 = arith.constant 3.200000e+01 : f32
    %649 = vector.broadcast %cst_269 : f32 to vector<8x1xf32>
    %650 = arith.divf %648, %649 : vector<8x1xf32>
    %651 = vector.broadcast %650 : vector<8x1xf32> to vector<8x32xf32>
    %652 = arith.subf %642, %651 : vector<8x32xf32>
    %653 = arith.mulf %652, %652 : vector<8x32xf32>
    %cst_270 = arith.constant dense<0.000000e+00> : vector<8xf32>
    %654 = vector.multi_reduction <add>, %653, %cst_270 [1] : vector<8x32xf32> to vector<8xf32>
    %655 = vector.shape_cast %654 : vector<8xf32> to vector<8x1xf32>
    %cst_271 = arith.constant 3.200000e+01 : f32
    %656 = vector.broadcast %cst_271 : f32 to vector<8x1xf32>
    %657 = arith.divf %655, %656 : vector<8x1xf32>
    %658 = vector.broadcast %650 : vector<8x1xf32> to vector<8x32xf32>
    %659 = arith.subf %642, %658 : vector<8x32xf32>
    %cst_272 = arith.constant 9.99999974E-6 : f32
    %660 = vector.broadcast %cst_272 : f32 to vector<8x1xf32>
    %661 = arith.addf %657, %660 : vector<8x1xf32>
    %662 = math.rsqrt %661 : vector<8x1xf32>
    %663 = vector.broadcast %662 : vector<8x1xf32> to vector<8x32xf32>
    %664 = arith.mulf %659, %663 : vector<8x32xf32>
    %665 = vector.broadcast %644 : vector<1x32xf32> to vector<8x32xf32>
    %666 = arith.mulf %664, %665 : vector<8x32xf32>
    %667 = vector.broadcast %646 : vector<1x32xf32> to vector<8x32xf32>
    %668 = arith.addf %666, %667 : vector<8x32xf32>
    %c1_273 = arith.constant 1 : index
    %c0_274 = arith.constant 0 : index
    %c0_275 = arith.constant 0 : index
    %669 = vector.load %arg32[%c1_273, %c0_274, %c0_275] : memref<2x32x32xf32, #tpu.memory_space<vmem>>, vector<1x32x32xf32>
    %670 = vector.shape_cast %669 : vector<1x32x32xf32> to vector<32x32xf32>
    %cst_276 = arith.constant dense<0.000000e+00> : vector<8x32xf32>
    %671 = tpu.matmul %668, %670, %cst_276 {dimension_numbers = #tpu.dot_dimension_numbers<[1], [0], [0], [1], [0, 0, 1, 1], [], []>} : vector<8x32xf32>, vector<32x32xf32>, vector<8x32xf32> -> vector<8x32xf32>
    %c1_277 = arith.constant 1 : index
    %c0_278 = arith.constant 0 : index
    %c0_279 = arith.constant 0 : index
    %672 = vector.load %arg33[%c1_277, %c0_278, %c0_279] : memref<2x1x32xf32, #tpu.memory_space<vmem>>, vector<1x1x32xf32>
    %673 = vector.shape_cast %672 : vector<1x1x32xf32> to vector<1x32xf32>
    %674 = vector.broadcast %673 : vector<1x32xf32> to vector<8x32xf32>
    %675 = arith.addf %671, %674 : vector<8x32xf32>
    %c1_280 = arith.constant 1 : index
    %c0_281 = arith.constant 0 : index
    %c0_282 = arith.constant 0 : index
    %676 = vector.load %arg34[%c1_280, %c0_281, %c0_282] : memref<2x32x128xf32, #tpu.memory_space<vmem>>, vector<1x32x128xf32>
    %677 = vector.shape_cast %676 : vector<1x32x128xf32> to vector<32x128xf32>
    %cst_283 = arith.constant dense<0.000000e+00> : vector<8x128xf32>
    %678 = tpu.matmul %331, %677, %cst_283 {dimension_numbers = #tpu.dot_dimension_numbers<[1], [0], [0], [1], [0, 0, 1, 1], [], []>} : vector<8x32xf32>, vector<32x128xf32>, vector<8x128xf32> -> vector<8x128xf32>
    %c1_284 = arith.constant 1 : index
    %c0_285 = arith.constant 0 : index
    %c0_286 = arith.constant 0 : index
    %679 = vector.load %arg35[%c1_284, %c0_285, %c0_286] : memref<2x1x128xf32, #tpu.memory_space<vmem>>, vector<1x1x128xf32>
    %680 = vector.shape_cast %679 : vector<1x1x128xf32> to vector<1x128xf32>
    %681 = vector.broadcast %680 : vector<1x128xf32> to vector<8x128xf32>
    %682 = arith.addf %678, %681 : vector<8x128xf32>
    %683 = vector.extract_strided_slice %682 {offsets = [0, 0], sizes = [8, 32], strides = [1, 1]} : vector<8x128xf32> to vector<8x32xf32>
    %684 = vector.extract_strided_slice %682 {offsets = [0, 32], sizes = [8, 32], strides = [1, 1]} : vector<8x128xf32> to vector<8x32xf32>
    %c1_287 = arith.constant 1 : index
    %c0_288 = arith.constant 0 : index
    %c0_289 = arith.constant 0 : index
    %685 = vector.load %arg36[%c1_287, %c0_288, %c0_289] : memref<2x32x32xf32, #tpu.memory_space<vmem>>, vector<1x32x32xf32>
    %686 = vector.shape_cast %685 : vector<1x32x32xf32> to vector<32x32xf32>
    %c1_290 = arith.constant 1 : index
    %c0_291 = arith.constant 0 : index
    %c0_292 = arith.constant 0 : index
    %687 = vector.load %arg37[%c1_290, %c0_291, %c0_292] : memref<2x1x32xf32, #tpu.memory_space<vmem>>, vector<1x1x32xf32>
    %688 = vector.shape_cast %687 : vector<1x1x32xf32> to vector<1x32xf32>
    %689 = vector.extract_strided_slice %675 {offsets = [0, 0], sizes = [8, 8], strides = [1, 1]} : vector<8x32xf32> to vector<8x8xf32>
    %690 = vector.extract_strided_slice %675 {offsets = [0, 8], sizes = [8, 8], strides = [1, 1]} : vector<8x32xf32> to vector<8x8xf32>
    %691 = vector.extract_strided_slice %675 {offsets = [0, 16], sizes = [8, 8], strides = [1, 1]} : vector<8x32xf32> to vector<8x8xf32>
    %692 = vector.extract_strided_slice %675 {offsets = [0, 24], sizes = [8, 8], strides = [1, 1]} : vector<8x32xf32> to vector<8x8xf32>
    %693 = vector.shape_cast %689 : vector<8x8xf32> to vector<1x8x8xf32>
    %694 = vector.shape_cast %690 : vector<8x8xf32> to vector<1x8x8xf32>
    %695 = vector.shape_cast %691 : vector<8x8xf32> to vector<1x8x8xf32>
    %696 = vector.shape_cast %692 : vector<8x8xf32> to vector<1x8x8xf32>
    %697 = tpu.concatenate %693, %694, %695, %696 in 0 : vector<1x8x8xf32>, vector<1x8x8xf32>, vector<1x8x8xf32>, vector<1x8x8xf32> -> vector<4x8x8xf32>
    %698 = vector.extract_strided_slice %683 {offsets = [0, 0], sizes = [8, 8], strides = [1, 1]} : vector<8x32xf32> to vector<8x8xf32>
    %699 = vector.extract_strided_slice %683 {offsets = [0, 8], sizes = [8, 8], strides = [1, 1]} : vector<8x32xf32> to vector<8x8xf32>
    %700 = vector.extract_strided_slice %683 {offsets = [0, 16], sizes = [8, 8], strides = [1, 1]} : vector<8x32xf32> to vector<8x8xf32>
    %701 = vector.extract_strided_slice %683 {offsets = [0, 24], sizes = [8, 8], strides = [1, 1]} : vector<8x32xf32> to vector<8x8xf32>
    %702 = vector.shape_cast %698 : vector<8x8xf32> to vector<1x8x8xf32>
    %703 = vector.shape_cast %699 : vector<8x8xf32> to vector<1x8x8xf32>
    %704 = vector.shape_cast %700 : vector<8x8xf32> to vector<1x8x8xf32>
    %705 = vector.shape_cast %701 : vector<8x8xf32> to vector<1x8x8xf32>
    %706 = tpu.concatenate %702, %703, %704, %705 in 0 : vector<1x8x8xf32>, vector<1x8x8xf32>, vector<1x8x8xf32>, vector<1x8x8xf32> -> vector<4x8x8xf32>
    %707 = vector.extract_strided_slice %684 {offsets = [0, 0], sizes = [8, 8], strides = [1, 1]} : vector<8x32xf32> to vector<8x8xf32>
    %708 = vector.extract_strided_slice %684 {offsets = [0, 8], sizes = [8, 8], strides = [1, 1]} : vector<8x32xf32> to vector<8x8xf32>
    %709 = vector.extract_strided_slice %684 {offsets = [0, 16], sizes = [8, 8], strides = [1, 1]} : vector<8x32xf32> to vector<8x8xf32>
    %710 = vector.extract_strided_slice %684 {offsets = [0, 24], sizes = [8, 8], strides = [1, 1]} : vector<8x32xf32> to vector<8x8xf32>
    %711 = vector.shape_cast %707 : vector<8x8xf32> to vector<1x8x8xf32>
    %712 = vector.shape_cast %708 : vector<8x8xf32> to vector<1x8x8xf32>
    %713 = vector.shape_cast %709 : vector<8x8xf32> to vector<1x8x8xf32>
    %714 = vector.shape_cast %710 : vector<8x8xf32> to vector<1x8x8xf32>
    %715 = tpu.concatenate %711, %712, %713, %714 in 0 : vector<1x8x8xf32>, vector<1x8x8xf32>, vector<1x8x8xf32>, vector<1x8x8xf32> -> vector<4x8x8xf32>
    "tpu.trace_start"() <{level = 10 : i32, message = "hqd,hkd->hqk"}> : () -> ()
    %cst_293 = arith.constant dense<0.000000e+00> : vector<4x8x8xf32>
    %716 = tpu.matmul %697, %706, %cst_293 {dimension_numbers = #tpu.dot_dimension_numbers<[2], [2], [1], [1], [0, 0, 0, 1, 1, 1], [0], [0]>} : vector<4x8x8xf32>, vector<4x8x8xf32>, vector<4x8x8xf32> -> vector<4x8x8xf32>
    "tpu.trace_stop"() : () -> ()
    %cst_294 = arith.constant 0.353553385 : f32
    %717 = vector.broadcast %cst_294 : f32 to vector<4x8x8xf32>
    %718 = arith.mulf %716, %717 : vector<4x8x8xf32>
    %cst_295 = arith.constant dense<0xFF800000> : vector<4x8xf32>
    %719 = vector.multi_reduction <maximumf>, %718, %cst_295 [2] : vector<4x8x8xf32> to vector<4x8xf32>
    %720 = vector.shape_cast %719 : vector<4x8xf32> to vector<4x8x1xf32>
    %721 = vector.broadcast %720 : vector<4x8x1xf32> to vector<4x8x8xf32>
    %722 = arith.subf %718, %721 : vector<4x8x8xf32>
    %723 = math.exp %722 : vector<4x8x8xf32>
    %cst_296 = arith.constant dense<0.000000e+00> : vector<4x8xf32>
    %724 = vector.multi_reduction <add>, %723, %cst_296 [2] : vector<4x8x8xf32> to vector<4x8xf32>
    %725 = vector.shape_cast %724 : vector<4x8xf32> to vector<4x8x1xf32>
    %726 = tpu.reciprocal %725 {approx = true} : vector<4x8x1xf32> -> vector<4x8x1xf32>
    %727 = vector.broadcast %726 : vector<4x8x1xf32> to vector<4x8x8xf32>
    %728 = arith.mulf %723, %727 : vector<4x8x8xf32>
    "tpu.trace_start"() <{level = 10 : i32, message = "hqk,hkd->hqd"}> : () -> ()
    %cst_297 = arith.constant dense<0.000000e+00> : vector<4x8x8xf32>
    %729 = tpu.matmul %728, %715, %cst_297 {dimension_numbers = #tpu.dot_dimension_numbers<[2], [1], [1], [2], [0, 0, 0, 1, 1, 2], [0], [0]>} : vector<4x8x8xf32>, vector<4x8x8xf32>, vector<4x8x8xf32> -> vector<4x8x8xf32>
    "tpu.trace_stop"() : () -> ()
    %730 = vector.extract_strided_slice %729 {offsets = [0, 0, 0], sizes = [1, 8, 8], strides = [1, 1, 1]} : vector<4x8x8xf32> to vector<1x8x8xf32>
    %731 = vector.shape_cast %730 : vector<1x8x8xf32> to vector<8x8xf32>
    %732 = vector.extract_strided_slice %729 {offsets = [1, 0, 0], sizes = [1, 8, 8], strides = [1, 1, 1]} : vector<4x8x8xf32> to vector<1x8x8xf32>
    %733 = vector.shape_cast %732 : vector<1x8x8xf32> to vector<8x8xf32>
    %734 = vector.extract_strided_slice %729 {offsets = [2, 0, 0], sizes = [1, 8, 8], strides = [1, 1, 1]} : vector<4x8x8xf32> to vector<1x8x8xf32>
    %735 = vector.shape_cast %734 : vector<1x8x8xf32> to vector<8x8xf32>
    %736 = vector.extract_strided_slice %729 {offsets = [3, 0, 0], sizes = [1, 8, 8], strides = [1, 1, 1]} : vector<4x8x8xf32> to vector<1x8x8xf32>
    %737 = vector.shape_cast %736 : vector<1x8x8xf32> to vector<8x8xf32>
    %738 = tpu.concatenate %731, %733, %735, %737 in 1 : vector<8x8xf32>, vector<8x8xf32>, vector<8x8xf32>, vector<8x8xf32> -> vector<8x32xf32>
    %cst_298 = arith.constant dense<0.000000e+00> : vector<8x32xf32>
    %739 = tpu.matmul %738, %686, %cst_298 {dimension_numbers = #tpu.dot_dimension_numbers<[1], [0], [0], [1], [0, 0, 1, 1], [], []>} : vector<8x32xf32>, vector<32x32xf32>, vector<8x32xf32> -> vector<8x32xf32>
    %740 = vector.broadcast %688 : vector<1x32xf32> to vector<8x32xf32>
    %741 = arith.addf %739, %740 : vector<8x32xf32>
    %742 = arith.addf %668, %741 : vector<8x32xf32>
    %c1_299 = arith.constant 1 : index
    %c0_300 = arith.constant 0 : index
    %c0_301 = arith.constant 0 : index
    %743 = vector.load %arg38[%c1_299, %c0_300, %c0_301] : memref<2x1x32xf32, #tpu.memory_space<vmem>>, vector<1x1x32xf32>
    %744 = vector.shape_cast %743 : vector<1x1x32xf32> to vector<1x32xf32>
    %c1_302 = arith.constant 1 : index
    %c0_303 = arith.constant 0 : index
    %c0_304 = arith.constant 0 : index
    %745 = vector.load %arg39[%c1_302, %c0_303, %c0_304] : memref<2x1x32xf32, #tpu.memory_space<vmem>>, vector<1x1x32xf32>
    %746 = vector.shape_cast %745 : vector<1x1x32xf32> to vector<1x32xf32>
    %cst_305 = arith.constant dense<0.000000e+00> : vector<8xf32>
    %747 = vector.multi_reduction <add>, %742, %cst_305 [1] : vector<8x32xf32> to vector<8xf32>
    %748 = vector.shape_cast %747 : vector<8xf32> to vector<8x1xf32>
    %cst_306 = arith.constant 3.200000e+01 : f32
    %749 = vector.broadcast %cst_306 : f32 to vector<8x1xf32>
    %750 = arith.divf %748, %749 : vector<8x1xf32>
    %751 = vector.broadcast %750 : vector<8x1xf32> to vector<8x32xf32>
    %752 = arith.subf %742, %751 : vector<8x32xf32>
    %753 = arith.mulf %752, %752 : vector<8x32xf32>
    %cst_307 = arith.constant dense<0.000000e+00> : vector<8xf32>
    %754 = vector.multi_reduction <add>, %753, %cst_307 [1] : vector<8x32xf32> to vector<8xf32>
    %755 = vector.shape_cast %754 : vector<8xf32> to vector<8x1xf32>
    %cst_308 = arith.constant 3.200000e+01 : f32
    %756 = vector.broadcast %cst_308 : f32 to vector<8x1xf32>
    %757 = arith.divf %755, %756 : vector<8x1xf32>
    %758 = vector.broadcast %750 : vector<8x1xf32> to vector<8x32xf32>
    %759 = arith.subf %742, %758 : vector<8x32xf32>
    %cst_309 = arith.constant 9.99999974E-6 : f32
    %760 = vector.broadcast %cst_309 : f32 to vector<8x1xf32>
    %761 = arith.addf %757, %760 : vector<8x1xf32>
    %762 = math.rsqrt %761 : vector<8x1xf32>
    %763 = vector.broadcast %762 : vector<8x1xf32> to vector<8x32xf32>
    %764 = arith.mulf %759, %763 : vector<8x32xf32>
    %765 = vector.broadcast %744 : vector<1x32xf32> to vector<8x32xf32>
    %766 = arith.mulf %764, %765 : vector<8x32xf32>
    %767 = vector.broadcast %746 : vector<1x32xf32> to vector<8x32xf32>
    %768 = arith.addf %766, %767 : vector<8x32xf32>
    %c1_310 = arith.constant 1 : index
    %c0_311 = arith.constant 0 : index
    %c0_312 = arith.constant 0 : index
    %769 = vector.load %arg40[%c1_310, %c0_311, %c0_312] : memref<2x32x32xf32, #tpu.memory_space<vmem>>, vector<1x32x32xf32>
    %770 = vector.shape_cast %769 : vector<1x32x32xf32> to vector<32x32xf32>
    %c1_313 = arith.constant 1 : index
    %c0_314 = arith.constant 0 : index
    %c0_315 = arith.constant 0 : index
    %771 = vector.load %arg41[%c1_313, %c0_314, %c0_315] : memref<2x1x32xf32, #tpu.memory_space<vmem>>, vector<1x1x32xf32>
    %772 = vector.shape_cast %771 : vector<1x1x32xf32> to vector<1x32xf32>
    %c1_316 = arith.constant 1 : index
    %c0_317 = arith.constant 0 : index
    %c0_318 = arith.constant 0 : index
    %773 = vector.load %arg42[%c1_316, %c0_317, %c0_318] : memref<2x32x32xf32, #tpu.memory_space<vmem>>, vector<1x32x32xf32>
    %774 = vector.shape_cast %773 : vector<1x32x32xf32> to vector<32x32xf32>
    %c1_319 = arith.constant 1 : index
    %c0_320 = arith.constant 0 : index
    %c0_321 = arith.constant 0 : index
    %775 = vector.load %arg43[%c1_319, %c0_320, %c0_321] : memref<2x1x32xf32, #tpu.memory_space<vmem>>, vector<1x1x32xf32>
    %776 = vector.shape_cast %775 : vector<1x1x32xf32> to vector<1x32xf32>
    %cst_322 = arith.constant dense<0.000000e+00> : vector<8x32xf32>
    %777 = tpu.matmul %768, %770, %cst_322 {dimension_numbers = #tpu.dot_dimension_numbers<[1], [0], [0], [1], [0, 0, 1, 1], [], []>} : vector<8x32xf32>, vector<32x32xf32>, vector<8x32xf32> -> vector<8x32xf32>
    %778 = vector.broadcast %772 : vector<1x32xf32> to vector<8x32xf32>
    %779 = arith.addf %777, %778 : vector<8x32xf32>
    %cst_323 = arith.constant 0.000000e+00 : f32
    %780 = vector.broadcast %cst_323 : f32 to vector<8x32xf32>
    %781 = arith.maximumf %779, %780 : vector<8x32xf32>
    %cst_324 = arith.constant dense<0.000000e+00> : vector<8x32xf32>
    %782 = tpu.matmul %781, %774, %cst_324 {dimension_numbers = #tpu.dot_dimension_numbers<[1], [0], [0], [1], [0, 0, 1, 1], [], []>} : vector<8x32xf32>, vector<32x32xf32>, vector<8x32xf32> -> vector<8x32xf32>
    %783 = vector.broadcast %776 : vector<1x32xf32> to vector<8x32xf32>
    %784 = arith.addf %782, %783 : vector<8x32xf32>
    %785 = arith.addf %768, %784 : vector<8x32xf32>
    %c1_325 = arith.constant 1 : index
    %c0_326 = arith.constant 0 : index
    %c0_327 = arith.constant 0 : index
    %786 = vector.load %arg44[%c1_325, %c0_326, %c0_327] : memref<2x1x32xf32, #tpu.memory_space<vmem>>, vector<1x1x32xf32>
    %787 = vector.shape_cast %786 : vector<1x1x32xf32> to vector<1x32xf32>
    %c1_328 = arith.constant 1 : index
    %c0_329 = arith.constant 0 : index
    %c0_330 = arith.constant 0 : index
    %788 = vector.load %arg45[%c1_328, %c0_329, %c0_330] : memref<2x1x32xf32, #tpu.memory_space<vmem>>, vector<1x1x32xf32>
    %789 = vector.shape_cast %788 : vector<1x1x32xf32> to vector<1x32xf32>
    %cst_331 = arith.constant dense<0.000000e+00> : vector<8xf32>
    %790 = vector.multi_reduction <add>, %785, %cst_331 [1] : vector<8x32xf32> to vector<8xf32>
    %791 = vector.shape_cast %790 : vector<8xf32> to vector<8x1xf32>
    %cst_332 = arith.constant 3.200000e+01 : f32
    %792 = vector.broadcast %cst_332 : f32 to vector<8x1xf32>
    %793 = arith.divf %791, %792 : vector<8x1xf32>
    %794 = vector.broadcast %793 : vector<8x1xf32> to vector<8x32xf32>
    %795 = arith.subf %785, %794 : vector<8x32xf32>
    %796 = arith.mulf %795, %795 : vector<8x32xf32>
    %cst_333 = arith.constant dense<0.000000e+00> : vector<8xf32>
    %797 = vector.multi_reduction <add>, %796, %cst_333 [1] : vector<8x32xf32> to vector<8xf32>
    %798 = vector.shape_cast %797 : vector<8xf32> to vector<8x1xf32>
    %cst_334 = arith.constant 3.200000e+01 : f32
    %799 = vector.broadcast %cst_334 : f32 to vector<8x1xf32>
    %800 = arith.divf %798, %799 : vector<8x1xf32>
    %801 = vector.broadcast %793 : vector<8x1xf32> to vector<8x32xf32>
    %802 = arith.subf %785, %801 : vector<8x32xf32>
    %cst_335 = arith.constant 9.99999974E-6 : f32
    %803 = vector.broadcast %cst_335 : f32 to vector<8x1xf32>
    %804 = arith.addf %800, %803 : vector<8x1xf32>
    %805 = math.rsqrt %804 : vector<8x1xf32>
    %806 = vector.broadcast %805 : vector<8x1xf32> to vector<8x32xf32>
    %807 = arith.mulf %802, %806 : vector<8x32xf32>
    %808 = vector.broadcast %787 : vector<1x32xf32> to vector<8x32xf32>
    %809 = arith.mulf %807, %808 : vector<8x32xf32>
    %810 = vector.broadcast %789 : vector<1x32xf32> to vector<8x32xf32>
    %811 = arith.addf %809, %810 : vector<8x32xf32>
    %cst_336 = arith.constant dense<0.000000e+00> : vector<8xf32>
    %812 = vector.multi_reduction <add>, %811, %cst_336 [1] : vector<8x32xf32> to vector<8xf32>
    %813 = vector.shape_cast %812 : vector<8xf32> to vector<8x1xf32>
    %cst_337 = arith.constant 3.200000e+01 : f32
    %814 = vector.broadcast %cst_337 : f32 to vector<8x1xf32>
    %815 = arith.divf %813, %814 : vector<8x1xf32>
    %816 = vector.broadcast %815 : vector<8x1xf32> to vector<8x32xf32>
    %817 = arith.subf %811, %816 : vector<8x32xf32>
    %818 = arith.mulf %817, %817 : vector<8x32xf32>
    %cst_338 = arith.constant dense<0.000000e+00> : vector<8xf32>
    %819 = vector.multi_reduction <add>, %818, %cst_338 [1] : vector<8x32xf32> to vector<8xf32>
    %820 = vector.shape_cast %819 : vector<8xf32> to vector<8x1xf32>
    %cst_339 = arith.constant 3.200000e+01 : f32
    %821 = vector.broadcast %cst_339 : f32 to vector<8x1xf32>
    %822 = arith.divf %820, %821 : vector<8x1xf32>
    %823 = vector.broadcast %815 : vector<8x1xf32> to vector<8x32xf32>
    %824 = arith.subf %811, %823 : vector<8x32xf32>
    %cst_340 = arith.constant 9.99999974E-6 : f32
    %825 = vector.broadcast %cst_340 : f32 to vector<8x1xf32>
    %826 = arith.addf %822, %825 : vector<8x1xf32>
    %827 = math.rsqrt %826 : vector<8x1xf32>
    %828 = vector.broadcast %827 : vector<8x1xf32> to vector<8x32xf32>
    %829 = arith.mulf %824, %828 : vector<8x32xf32>
    %830 = vector.broadcast %10 : vector<1x32xf32> to vector<8x32xf32>
    %831 = arith.mulf %829, %830 : vector<8x32xf32>
    %832 = vector.broadcast %11 : vector<1x32xf32> to vector<8x32xf32>
    %833 = arith.addf %831, %832 : vector<8x32xf32>
    %cst_341 = arith.constant dense<0.000000e+00> : vector<8x128xf32>
    %834 = tpu.matmul %833, %12, %cst_341 {dimension_numbers = #tpu.dot_dimension_numbers<[1], [0], [0], [1], [0, 0, 1, 1], [], []>} : vector<8x32xf32>, vector<32x128xf32>, vector<8x128xf32> -> vector<8x128xf32>
    %835 = vector.broadcast %13 : vector<1x128xf32> to vector<8x128xf32>
    %836 = arith.addf %834, %835 : vector<8x128xf32>
    %cst_342 = arith.constant 0.000000e+00 : f32
    %837 = vector.broadcast %cst_342 : f32 to vector<8x128xf32>
    %838 = arith.subf %837, %836 : vector<8x128xf32>
    %839 = math.exp %838 : vector<8x128xf32>
    %cst_343 = arith.constant 1.000000e+00 : f32
    %840 = vector.broadcast %cst_343 : f32 to vector<8x128xf32>
    %841 = arith.addf %840, %839 : vector<8x128xf32>
    %842 = tpu.reciprocal %841 {approx = true} : vector<8x128xf32> -> vector<8x128xf32>
    %c0_344 = arith.constant 0 : index
    %c0_345 = arith.constant 0 : index
    %843 = vector.load %arg46[%c0_344, %c0_345] : memref<8x128xf32, #tpu.memory_space<vmem>>, vector<8x128xf32>
    tpu.vector_store %arg46[%c0_344, %c0_345], %842 {strides = array<i32>} : memref<8x128xf32, #tpu.memory_space<vmem>>, vector<8x128xf32>,
    return
  }
}

</mosaic_0001>

<bundles_post_ra>
// kernel: forward.1
= control target key start
LH: loop header
LB: loop body
LE: loop exit
PB: predicated region body
PF: predicated region fallthrough
CT: control target
= control target key end

     0   :  { %s9340_s6 = smov 1   ;;  %s9341_s10 = smov 2   ;;  %s10510_s0 = inlined_call_operand.smem [shape: u32[47], index: -1, kind: input, shape index: {}] }
   0x1   :  { %s9447_s5 = sld [smem:[%s10510_s0]]   ;;  %s9342_s14 = smov 3  }
   0x2   :  { %s9452_s9 = sld [smem:[%s10510_s0 + %s9340_s6]]   ;;  %s9343_s18 = smov 4  }
   0x3   :  { %s9457_s13 = sld [smem:[%s10510_s0 + %s9341_s10]]   ;;  %s9344_s22 = smov 5  }
   0x4   :  { %s9462_s17 = sld [smem:[%s10510_s0 + %s9342_s14]]   ;;  %s9345_s26 = smov 6  }
   0x5   :  { %s9467_s21 = sld [smem:[%s10510_s0 + %s9343_s18]]   ;;  %s9346_s30 = smov 7  }
   0x6   :  { %s9472_s25 = sld [smem:[%s10510_s0 + %s9344_s22]]   ;;  %s9347_s4 = smov 8  }
   0x7   :  { %10513 = sst [smem:[#allocation85_spill]] %s9447_s5  ;;  %s9348_s10 = smov 9  }
   0x8   :  { %10514 = sst [smem:[#allocation86_spill]] %s9452_s9  ;;  %s9349_s15 = smov 10  }
   0x9   :  { %s9477_s29 = sld [smem:[%s10510_s0 + %s9345_s26]]   ;;  %s9350_s20 = smov 11  }
   0xa   :  { %10515 = sst [smem:[#allocation87_spill]] %s9462_s17  ;;  %s9351_s26 = smov 12  }
   0xb   :  { %s9482_s3 = sld [smem:[%s10510_s0 + %s9346_s30]]   ;;  %s9352_s1 = smov 13  }
   0xc   :  { %10516 = sst [smem:[#allocation88_spill]] %s9472_s25  ;;  %s9353_s7 = smov 14  }
   0xd   :  { %s9487_s8 = sld [smem:[%s10510_s0 + %s9347_s4]]   ;;  %s9355_s22 = smov 16  }
   0xe   :  { %s9492_s14 = sld [smem:[%s10510_s0 + %s9348_s10]]   ;;  %s9356_s28 = smov 17  }
   0xf   :  { %10517 = sst [smem:[#allocation89_spill]] %s9477_s29 }
  0x10   :  { %s9497_s19 = sld [smem:[%s10510_s0 + %s9349_s15]]   ;;  %s9354_s15 = smov 15  }
  0x11   :  { %10518 = sst [smem:[#allocation90_spill]] %s9482_s3 }
  0x12   :  { %s9502_s24 = sld [smem:[%s10510_s0 + %s9350_s20]]  }
  0x13   :  { %s9507_s30 = sld [smem:[%s10510_s0 + %s9351_s26]]  }
  0x14   :  { %10519 = sst [smem:[#allocation91_spill]] %s9492_s14 }
  0x15   :  { %s9512_s6 = sld [smem:[%s10510_s0 + %s9352_s1]]  }
  0x16   :  { %s9517_s12 = sld [smem:[%s10510_s0 + %s9353_s7]]   ;;  %s9357_s7 = smov 18  }
  0x17   :  { %s9522_s20 = sld [smem:[%s10510_s0 + %s9354_s15]]   ;;  %s9358_s15 = smov 19  }
  0x18   :  { %10520 = sst [smem:[#allocation92_spill]] %s9502_s24 }
  0x19   :  { %10521 = sst [smem:[#allocation93_spill]] %s9507_s30 }
  0x1a   :  { %s9527_s27 = sld [smem:[%s10510_s0 + %s9355_s22]]   ;;  %s9359_s22 = smov 20  }
  0x1b   :  { %s9532_s4 = sld [smem:[%s10510_s0 + %s9356_s28]]   ;;  %s9360_s28 = smov 21  }
  0x1c   :  { %10522 = sst [smem:[#allocation94_spill]] %s9517_s12 }
  0x1d   :  { %10523 = sst [smem:[#allocation95_spill]] %s9522_s20 }
  0x1e   :  { %s9537_s30 = sld [smem:[%s10510_s0 + %s9357_s7]]   ;;  %s9361_s7 = smov 22  }
  0x1f   :  { %s9542_s3 = sld [smem:[%s10510_s0 + %s9358_s15]]   ;;  %s9362_s15 = smov 23  }
  0x20   :  { %s9547_s9 = sld [smem:[%s10510_s0 + %s9359_s22]]   ;;  %s9363_s22 = smov 24  }
  0x21   :  { %10524 = sst [smem:[#allocation96_spill]] %s9532_s4 }
  0x22   :  { %s9552_s29 = sld [smem:[%s10510_s0 + %s9360_s28]]   ;;  %s9364_s28 = smov 25  }
  0x23   :  { %s9557_s12 = sld [smem:[%s10510_s0 + %s9361_s7]]   ;;  %s9365_s7 = smov 26  }
  0x24   :  { %s9567_s4 = sld [smem:[%s10510_s0 + %s9363_s22]]   ;;  %s9367_s22 = smov 28  }
  0x25   :  { %10525 = sst [smem:[#allocation97_spill]] %s9542_s3 }
  0x26   :  { %s9562_s3 = sld [smem:[%s10510_s0 + %s9362_s15]]   ;;  %s9366_s15 = smov 27  }
  0x27   :  { %s9577_s20 = sld [smem:[%s10510_s0 + %s9365_s7]]   ;;  %s9369_s7 = smov 30  }
  0x28   :  { %10526 = sst [smem:[#allocation98_spill]] %s9552_s29 }
  0x29   :  { %s9572_s29 = sld [smem:[%s10510_s0 + %s9364_s28]]   ;;  %s9368_s28 = smov 29  }
  0x2a   :  { %s9587_s24 = sld [smem:[%s10510_s0 + %s9367_s22]]   ;;  %s9371_s22 = smov 32  }
  0x2b   :  { %s9597_s14 = sld [smem:[%s10510_s0 + %s9369_s7]]   ;;  %s9373_s7 = smov 34  }
  0x2c   :  { %10527 = sst [smem:[#allocation99_spill]] %s9562_s3 }
  0x2d   :  { %s9582_s3 = sld [smem:[%s10510_s0 + %s9366_s15]]   ;;  %s9370_s15 = smov 31  }
  0x2e   :  { %s9607_s25 = sld [smem:[%s10510_s0 + %s9371_s22]]   ;;  %s9375_s22 = smov 36  }
  0x2f   :  { %10528 = sst [smem:[#allocation100_spill]] %s9572_s29 }
  0x30   :  { %s9592_s29 = sld [smem:[%s10510_s0 + %s9368_s28]]   ;;  %s9372_s28 = smov 33  }
  0x31   :  { %s9617_s17 = sld [smem:[%s10510_s0 + %s9373_s7]]   ;;  %s9377_s7 = smov 38  }
  0x32   :  { %s9627_s5 = sld [smem:[%s10510_s0 + %s9375_s22]]   ;;  %s9379_s22 = smov 40  }
  0x33   :  { %10529 = sst [smem:[#allocation101_spill]] %s9582_s3 }
  0x34   :  { %s9602_s3 = sld [smem:[%s10510_s0 + %s9370_s15]]   ;;  %s9374_s15 = smov 35  }
  0x36   :  { %10530 = sst [smem:[#allocation102_spill]] %s9592_s29 }
  0x37   :  { %s9612_s29 = sld [smem:[%s10510_s0 + %s9372_s28]]   ;;  %s9376_s28 = smov 37  }
  0x38   :  { %10533 = sst [smem:[#allocation105_spill]] %s9617_s17 }
  0x39   :  { %10535 = sst [smem:[#allocation107_spill]] %s9627_s5 }
  0x3a   :  { %10531 = sst [smem:[#allocation103_spill]] %s9602_s3 }
  0x3b   :  { %s9622_s3 = sld [smem:[%s10510_s0 + %s9374_s15]]   ;;  %s9378_s15 = smov 39  }
  0x3c   :  { %s9637_s17 = sld [smem:[%s10510_s0 + %s9377_s7]]   ;;  %s9381_s7 = smov 42  }
  0x3d   :  { %10532 = sst [smem:[#allocation104_spill]] %s9612_s29 }
  0x3e   :  { %s9632_s29 = sld [smem:[%s10510_s0 + %s9376_s28]]   ;;  %s9380_s28 = smov 41  }
  0x3f   :  { %s9647_s5 = sld [smem:[%s10510_s0 + %s9379_s22]]   ;;  %s9383_s22 = smov 44  }
  0x41   :  { %10534 = sst [smem:[#allocation106_spill]] %s9622_s3 }
  0x42   :  { %10537 = sst [smem:[#allocation109_spill]] %s9637_s17 }
  0x43   :  { %s9642_s3 = sld [smem:[%s10510_s0 + %s9378_s15]]   ;;  %s9382_s15 = smov 43  }
  0x44   :  { %10536 = sst [smem:[#allocation108_spill]] %s9632_s29 }
  0x45   :  { %10539 = sst [smem:[#allocation111_spill]] %s9647_s5 }
  0x46   :  { %s9652_s29 = sld [smem:[%s10510_s0 + %s9380_s28]]   ;;  %s9384_s28 = smov 45  }
  0x47   :  { %s9657_s17 = sld [smem:[%s10510_s0 + %s9381_s7]]   ;;  %s9385_s7 = smov 46  }
  0x48   :  { %s9667_s5 = sld [smem:[%s10510_s0 + %s9383_s22]]  }
  0x49   :  { %10538 = sst [smem:[#allocation110_spill]] %s9642_s3 }
  0x4a   :  { %s9662_s3 = sld [smem:[%s10510_s0 + %s9382_s15]]  }
  0x4c   :  { %10540 = sst [smem:[#allocation112_spill]] %s9652_s29 }
  0x4d   :  { %10541 = sst [smem:[#allocation113_spill]] %s9657_s17 }
  0x4e   :  { %s9672_s29 = sld [smem:[%s10510_s0 + %s9384_s28]]  }
  0x4f   :  { %s9677_s17 = sld [smem:[%s10510_s0 + %s9385_s7]]  }
  0x50   :  { %98 = vsyncpa [#allocation3], 0 }
  0x51   :  { %99 = vsyncpa [#allocation5], 0 }
  0x52   :  { %100 = vsyncpa [#allocation8], 0 }
  0x53   :  { %101 = vsyncpa [#allocation11], 0 }
  0x54   :  { %102 = vsyncpa [#allocation14], 0 }
  0x55   :  { %103 = vsyncpa [#allocation17], 0 }
  0x56   :  { %104 = vsyncpa [#allocation20], 0 }
  0x57   :  { %105 = vsyncpa [#allocation23], 0 }
  0x58   :  { %106 = vsyncpa [#allocation26], 0 }
  0x59   :  { %107 = vsyncpa [#allocation29], 0 }
  0x5a   :  { %108 = vsyncpa [#allocation32], 0 }
  0x5b   :  { %109 = vsyncpa [#allocation35], 0 }
  0x5c   :  { %110 = vsyncpa [#allocation38], 0 }
  0x5d   :  { %111 = vsyncpa [#allocation41], 0 }
  0x5e   :  { %112 = vsyncpa [#allocation44], 0 }
  0x5f   :  { %113 = vsyncpa [#allocation47], 0 }
  0x60   :  { %114 = vsyncpa [#allocation50], 0 }
  0x61   :  { %115 = vsyncpa [#allocation53], 0 }
  0x62   :  { %116 = vsyncpa [#allocation56], 0 }
  0x63   :  { %117 = vsyncpa [#allocation59], 0 }
  0x64   :  { %118 = vsyncpa [#allocation62], 0  ;;  %s9386_s0 = smov [#allocation4]   ;;  %s9387_s16 = smov [#allocation7]  }
  0x65   :  { %s137_s15 = sshll.u32 %s9386_s0, 4  ;;  %s157_s18 = sshll.u32 %s9387_s16, 4  ;;  %s138_s15 = int_to_ptr.vmem [resolvable:$true] %s137_s15  ;;  %s158_s18 = int_to_ptr.vmem [resolvable:$true] %s157_s18 }
  0x66   :  { %s8486_s22 = scalar_lea.vmem %s138_s15, 128  ;;  %p8491_p1 = scmp.lt.s32.totalorder %s138_s15, %s138_s15 }
  0x67   :  { %p8487_p0 = scmp.ne.s32.totalorder %s138_s15, %s8486_s22  ;;  %p8492_p2 = scmp.lt.s32.totalorder %s8486_s22, %s8486_s22 }
  0x69   :  { %p8493_p3 = por %p8492_p2, %p8491_p1 }
  0x6b   :  { %p8494_p4 = pnand %p8493_p3, %p8487_p0 }
  0x6d   :  { %8497 = shalt.err (!%p8494_p4)
}
  0x6e   :  { %140 = dma.hbm_to_vmem [thread:$0]  %s9457_s13, 128, %s138_s15, [#allocation5]  }
  0x6f   :  { %s8506_s23 = scalar_lea.vmem %s158_s18, 64  ;;  %p8511_p6 = scmp.lt.s32.totalorder %s158_s18, %s158_s18 }
  0x70   :  { %p8507_p5 = scmp.ne.s32.totalorder %s158_s18, %s8506_s23  ;;  %p8512_p7 = scmp.lt.s32.totalorder %s8506_s23, %s8506_s23 }
  0x72   :  { %p8513_p8 = por %p8512_p7, %p8511_p6 }
  0x74   :  { %p8514_p9 = pnand %p8513_p8, %p8507_p5 }
  0x76   :  { %8517 = shalt.err (!%p8514_p9)
}
  0x77   :  { %160 = dma.hbm_to_vmem [thread:$0]  %s9467_s21, 64, %s158_s18, [#allocation8]  }
  0x78   :  { %s9388_s26 = smov [#allocation10]   ;;  %s9389_s1 = smov [#allocation13]  }
  0x79   :  { %s181_s28 = sshll.u32 %s9388_s26, 4  ;;  %s201_s2 = sshll.u32 %s9389_s1, 4  ;;  %s182_s28 = int_to_ptr.vmem [resolvable:$true] %s181_s28  ;;  %s202_s2 = int_to_ptr.vmem [resolvable:$true] %s201_s2 }
  0x7a   :  { %s8526_s7 = scalar_lea.vmem %s182_s28, 16  ;;  %s8530_s10 = scalar_lea.vmem %s182_s28, 32 }
  0x7b   :  { %p8527_p10 = scmp.ne.s32.totalorder %s182_s28, %s8526_s7  ;;  %p8531_p11 = scmp.lt.s32.totalorder %s182_s28, %s182_s28 }
  0x7c   :  { %p8532_p12 = scmp.lt.s32.totalorder %s8530_s10, %s8526_s7 }
  0x7e   :  { %p8533_p13 = por %p8532_p12, %p8531_p11 }
  0x80   :  { %p8534_p0 = pnand %p8533_p13, %p8527_p10 }
  0x82   :  { %8537 = shalt.err (!%p8534_p0)
}
  0x83   :  { %184 = dma.hbm_to_vmem [thread:$0]  %s9487_s8, 16, %s182_s28, [#allocation11]  }
  0x84   :  { %s8546_s13 = scalar_lea.vmem %s202_s2, 16  ;;  %s8550_s11 = scalar_lea.vmem %s202_s2, 32 }
  0x85   :  { %p8547_p1 = scmp.ne.s32.totalorder %s202_s2, %s8546_s13  ;;  %p8551_p2 = scmp.lt.s32.totalorder %s202_s2, %s202_s2 }
  0x86   :  { %p8552_p3 = scmp.lt.s32.totalorder %s8550_s11, %s8546_s13 }
  0x88   :  { %p8553_p4 = por %p8552_p3, %p8551_p2 }
  0x8a   :  { %p8554_p5 = pnand %p8553_p4, %p8547_p1 }
  0x8c   :  { %8557 = shalt.err (!%p8554_p5)
}
  0x8d   :  { %204 = dma.hbm_to_vmem [thread:$0]  %s9497_s19, 16, %s202_s2, [#allocation14]  }
  0x8e   :  { %s9390_s21 = smov [#allocation16]   ;;  %s9391_s15 = smov [#allocation19]  }
  0x8f   :  { %s223_s0 = sshll.u32 %s9390_s21, 4  ;;  %s246_s16 = sshll.u32 %s9391_s15, 4  ;;  %s224_s0 = int_to_ptr.vmem [resolvable:$true] %s223_s0  ;;  %s247_s16 = int_to_ptr.vmem [resolvable:$true] %s246_s16 }
  0x90   :  { %s8566_s18 = scalar_lea.vmem %s224_s0, 16  ;;  %s8570_s22 = scalar_lea.vmem %s224_s0, 32 }
  0x91   :  { %p8567_p6 = scmp.ne.s32.totalorder %s224_s0, %s8566_s18  ;;  %p8571_p7 = scmp.lt.s32.totalorder %s224_s0, %s224_s0 }
  0x92   :  { %p8572_p8 = scmp.lt.s32.totalorder %s8570_s22, %s8566_s18 }
  0x94   :  { %p8573_p9 = por %p8572_p8, %p8571_p7 }
  0x96   :  { %p8574_p10 = pnand %p8573_p9, %p8567_p6 }
  0x98   :  { %8577 = shalt.err (!%p8574_p10)
}
  0x99   :  { %226 = dma.hbm_to_vmem [thread:$0]  %s9512_s6, 16, %s224_s0, [#allocation17]  }
  0x9a   :  { %s8586_s8 = scalar_lea.vmem %s247_s16, 1024  ;;  %p8591_p12 = scmp.lt.s32.totalorder %s247_s16, %s247_s16 }
  0x9b   :  { %p8587_p11 = scmp.ne.s32.totalorder %s247_s16, %s8586_s8  ;;  %p8592_p13 = scmp.lt.s32.totalorder %s8586_s8, %s8586_s8 }
  0x9d   :  { %p8593_p0 = por %p8592_p13, %p8591_p12 }
  0x9f   :  { %p8594_p1 = pnand %p8593_p0, %p8587_p11 }
  0xa1   :  { %8597 = shalt.err (!%p8594_p1)
}
  0xa2   :  { %s9392_s19 = smov 128   ;;  %s9393_s23 = smov 8  }
  0xa3   :  { %252 = dma.hbm_to_vmem [thread:$0]  %s9527_s27, 1024, %s247_s16, [#allocation20], %s9392_s19, %s9392_s19, %s9393_s23  }
  0xa4   :  { %s9394_s26 = smov [#allocation22]   ;;  %s9395_s1 = smov [#allocation25]  }
  0xa5   :  { %s270_s28 = sshll.u32 %s9394_s26, 4  ;;  %s294_s2 = sshll.u32 %s9395_s1, 4  ;;  %s271_s28 = int_to_ptr.vmem [resolvable:$true] %s270_s28  ;;  %s295_s2 = int_to_ptr.vmem [resolvable:$true] %s294_s2 }
  0xa6   :  { %s8606_s6 = scalar_lea.vmem %s271_s28, 32  ;;  %p8611_p3 = scmp.lt.s32.totalorder %s271_s28, %s271_s28 }
  0xa7   :  { %p8607_p2 = scmp.ne.s32.totalorder %s271_s28, %s8606_s6  ;;  %p8612_p4 = scmp.lt.s32.totalorder %s8606_s6, %s8606_s6 }
  0xa9   :  { %p8613_p5 = por %p8612_p4, %p8611_p3 }
  0xab   :  { %p8614_p6 = pnand %p8613_p5, %p8607_p2 }
  0xad   :  { %8617 = shalt.err (!%p8614_p6)
}
  0xae   :  { %s9396_s7 = smov 16   ;;  %s9397_s10 = smov 1  }
  0xaf   :  { %276 = dma.hbm_to_vmem [thread:$0]  %s9537_s30, 32, %s271_s28, [#allocation23], %s9396_s7, %s9396_s7, %s9397_s10  }
  0xb0   :  { %s8626_s27 = scalar_lea.vmem %s295_s2, 1024  ;;  %p8631_p8 = scmp.lt.s32.totalorder %s295_s2, %s295_s2 }
  0xb1   :  { %p8627_p7 = scmp.ne.s32.totalorder %s295_s2, %s8626_s27  ;;  %p8632_p9 = scmp.lt.s32.totalorder %s8626_s27, %s8626_s27 }
  0xb3   :  { %p8633_p10 = por %p8632_p9, %p8631_p8 }
  0xb5   :  { %p8634_p11 = pnand %p8633_p10, %p8627_p7 }
  0xb7   :  { %8637 = shalt.err (!%p8634_p11)
}
  0xb8   :  { %300 = dma.hbm_to_vmem [thread:$0]  %s9547_s9, 1024, %s295_s2, [#allocation26], %s9392_s19, %s9392_s19, %s9393_s23  }
  0xb9   :  { %s9398_s13 = smov [#allocation28]   ;;  %s9399_s21 = smov [#allocation31]  }
  0xba   :  { %s318_s11 = sshll.u32 %s9398_s13, 4  ;;  %s342_s0 = sshll.u32 %s9399_s21, 4  ;;  %s319_s11 = int_to_ptr.vmem [resolvable:$true] %s318_s11  ;;  %s343_s0 = int_to_ptr.vmem [resolvable:$true] %s342_s0 }
  0xbb   :  { %s8646_s15 = scalar_lea.vmem %s319_s11, 1024  ;;  %p8651_p13 = scmp.lt.s32.totalorder %s319_s11, %s319_s11 }
  0xbc   :  { %p8647_p12 = scmp.ne.s32.totalorder %s319_s11, %s8646_s15  ;;  %p8652_p0 = scmp.lt.s32.totalorder %s8646_s15, %s8646_s15 }
  0xbe   :  { %p8653_p1 = por %p8652_p0, %p8651_p13 }
  0xc0   :  { %p8654_p2 = pnand %p8653_p1, %p8647_p12 }
  0xc2   :  { %8657 = shalt.err (!%p8654_p2)
}
  0xc3   :  { %324 = dma.hbm_to_vmem [thread:$0]  %s9557_s12, 1024, %s319_s11, [#allocation29], %s9392_s19, %s9392_s19, %s9393_s23  }
  0xc4   :  { %s8666_s30 = scalar_lea.vmem %s343_s0, 32  ;;  %p8671_p4 = scmp.lt.s32.totalorder %s343_s0, %s343_s0 }
  0xc5   :  { %p8667_p3 = scmp.ne.s32.totalorder %s343_s0, %s8666_s30  ;;  %p8672_p5 = scmp.lt.s32.totalorder %s8666_s30, %s8666_s30 }
  0xc7   :  { %p8673_p6 = por %p8672_p5, %p8671_p4 }
  0xc9   :  { %p8674_p7 = pnand %p8673_p6, %p8667_p3 }
  0xcb   :  { %8677 = shalt.err (!%p8674_p7)
}
  0xcc   :  { %348 = dma.hbm_to_vmem [thread:$0]  %s9567_s4, 32, %s343_s0, [#allocation32], %s9396_s7, %s9396_s7, %s9397_s10  }
  0xcd   :  { %s9400_s9 = smov [#allocation34]   ;;  %s9401_s18 = smov [#allocation37]  }
  0xce   :  { %s366_s16 = sshll.u32 %s9400_s9, 4  ;;  %s390_s22 = sshll.u32 %s9401_s18, 4  ;;  %s367_s16 = int_to_ptr.vmem [resolvable:$true] %s366_s16  ;;  %s391_s22 = int_to_ptr.vmem [resolvable:$true] %s390_s22 }
  0xcf   :  { %s8686_s8 = scalar_lea.vmem %s367_s16, 1024  ;;  %p8691_p9 = scmp.lt.s32.totalorder %s367_s16, %s367_s16 }
  0xd0   :  { %p8687_p8 = scmp.ne.s32.totalorder %s367_s16, %s8686_s8  ;;  %p8692_p10 = scmp.lt.s32.totalorder %s8686_s8, %s8686_s8 }
  0xd2   :  { %p8693_p11 = por %p8692_p10, %p8691_p9 }
  0xd4   :  { %p8694_p12 = pnand %p8693_p11, %p8687_p8 }
  0xd6   :  { %8697 = shalt.err (!%p8694_p12)
}
  0xd7   :  { %372 = dma.hbm_to_vmem [thread:$0]  %s9577_s20, 1024, %s367_s16, [#allocation35], %s9392_s19, %s9392_s19, %s9393_s23  }
  0xd8   :  { %s8706_s12 = scalar_lea.vmem %s391_s22, 1024  ;;  %p8711_p0 = scmp.lt.s32.totalorder %s391_s22, %s391_s22 }
  0xd9   :  { %p8707_p13 = scmp.ne.s32.totalorder %s391_s22, %s8706_s12  ;;  %p8712_p1 = scmp.lt.s32.totalorder %s8706_s12, %s8706_s12 }
  0xdb   :  { %p8713_p2 = por %p8712_p1, %p8711_p0 }
  0xdd   :  { %p8714_p3 = pnand %p8713_p2, %p8707_p13 }
  0xdf   :  { %8717 = shalt.err (!%p8714_p3)
}
  0xe0   :  { %396 = dma.hbm_to_vmem [thread:$0]  %s9587_s24, 1024, %s391_s22, [#allocation38], %s9392_s19, %s9392_s19, %s9393_s23  }
  0xe1   :  { %s9402_s4 = smov [#allocation40]   ;;  %s9403_s28 = smov [#allocation43]  }
  0xe2   :  { %s414_s26 = sshll.u32 %s9402_s4, 4  ;;  %s438_s1 = sshll.u32 %s9403_s28, 4  ;;  %s415_s26 = int_to_ptr.vmem [resolvable:$true] %s414_s26  ;;  %s439_s1 = int_to_ptr.vmem [resolvable:$true] %s438_s1 }
  0xe3   :  { %s8726_s2 = scalar_lea.vmem %s415_s26, 32  ;;  %p8731_p5 = scmp.lt.s32.totalorder %s415_s26, %s415_s26 }
  0xe4   :  { %p8727_p4 = scmp.ne.s32.totalorder %s415_s26, %s8726_s2  ;;  %p8732_p6 = scmp.lt.s32.totalorder %s8726_s2, %s8726_s2 }
  0xe6   :  { %p8733_p7 = por %p8732_p6, %p8731_p5 }
  0xe8   :  { %p8734_p8 = pnand %p8733_p7, %p8727_p4 }
  0xea   :  { %8737 = shalt.err (!%p8734_p8)
}
  0xeb   :  { %420 = dma.hbm_to_vmem [thread:$0]  %s9597_s14, 32, %s415_s26, [#allocation41], %s9396_s7, %s9396_s7, %s9397_s10  }
  0xec   :  { %s8746_s20 = scalar_lea.vmem %s439_s1, 1024  ;;  %p8751_p10 = scmp.lt.s32.totalorder %s439_s1, %s439_s1 }
  0xed   :  { %p8747_p9 = scmp.ne.s32.totalorder %s439_s1, %s8746_s20  ;;  %p8752_p11 = scmp.lt.s32.totalorder %s8746_s20, %s8746_s20 }
  0xef   :  { %p8753_p12 = por %p8752_p11, %p8751_p10 }
  0xf1   :  { %p8754_p13 = pnand %p8753_p12, %p8747_p9 }
  0xf3   :  { %8757 = shalt.err (!%p8754_p13)
}
  0xf4   :  { %444 = dma.hbm_to_vmem [thread:$0]  %s9607_s25, 1024, %s439_s1, [#allocation44], %s9392_s19, %s9392_s19, %s9393_s23  }
  0xf5   :  { %s9404_s24 = smov [#allocation46]   ;;  %s9405_s27 = smov [#allocation49]  }
  0xf6   :  { %s462_s6 = sshll.u32 %s9404_s24, 4  ;;  %s486_s13 = sshll.u32 %s9405_s27, 4  ;;  %s463_s6 = int_to_ptr.vmem [resolvable:$true] %s462_s6  ;;  %s487_s13 = int_to_ptr.vmem [resolvable:$true] %s486_s13 }
  0xf7   :  { %s8766_s11 = scalar_lea.vmem %s463_s6, 1024  ;;  %p8771_p1 = scmp.lt.s32.totalorder %s463_s6, %s463_s6 }
  0xf8   :  { %p8767_p0 = scmp.ne.s32.totalorder %s463_s6, %s8766_s11  ;;  %p8772_p2 = scmp.lt.s32.totalorder %s8766_s11, %s8766_s11 }
  0xfa   :  { %p8773_p3 = por %p8772_p2, %p8771_p1 }
  0xfc   :  { %p8774_p4 = pnand %p8773_p3, %p8767_p0 }
  0xfe   :  { %8777 = shalt.err (!%p8774_p4)
}
  0xff   :  { %s10542_s14 = sld [smem:[#allocation105_spill]]  ;;  %s8786_s21 = scalar_lea.vmem %s487_s13, 1024 }
 0x100   :  { %p8787_p5 = scmp.ne.s32.totalorder %s487_s13, %s8786_s21  ;;  %p8791_p6 = scmp.lt.s32.totalorder %s487_s13, %s487_s13 }
 0x101   :  { %p8792_p7 = scmp.lt.s32.totalorder %s8786_s21, %s8786_s21 }
 0x103   :  { %p8793_p8 = por %p8792_p7, %p8791_p6 }
 0x105   :  { %468 = dma.hbm_to_vmem [thread:$0]  %s10542_s14, 1024, %s463_s6, [#allocation47], %s9392_s19, %s9392_s19, %s9393_s23  }
 0x106   :  { %p8794_p9 = pnand %p8793_p8, %p8787_p5 }
 0x108   :  { %8797 = shalt.err (!%p8794_p9)
}
 0x109   :  { %s10543_s25 = sld [smem:[#allocation107_spill]]  ;;  %s9406_s0 = smov [#allocation52]  }
 0x10a   :  { %s510_s15 = sshll.u32 %s9406_s0, 4  ;;  %s9407_s30 = smov [#allocation55]   ;;  %s511_s15 = int_to_ptr.vmem [resolvable:$true] %s510_s15 }
 0x10b   :  { %s534_s9 = sshll.u32 %s9407_s30, 4  ;;  %s8806_s16 = scalar_lea.vmem %s511_s15, 32  ;;  %s535_s9 = int_to_ptr.vmem [resolvable:$true] %s534_s9 }
 0x10c   :  { %p8807_p10 = scmp.ne.s32.totalorder %s511_s15, %s8806_s16  ;;  %p8811_p11 = scmp.lt.s32.totalorder %s511_s15, %s511_s15 }
 0x10d   :  { %p8812_p12 = scmp.lt.s32.totalorder %s8806_s16, %s8806_s16 }
 0x10f   :  { %492 = dma.hbm_to_vmem [thread:$0]  %s10543_s25, 1024, %s487_s13, [#allocation50], %s9392_s19, %s9392_s19, %s9393_s23  }
 0x110   :  { %p8813_p13 = por %p8812_p12, %p8811_p11 }
 0x112   :  { %p8814_p0 = pnand %p8813_p13, %p8807_p10 }
 0x114   :  { %8817 = shalt.err (!%p8814_p0)
}
 0x115   :  { %s10544_s18 = sld [smem:[#allocation109_spill]]  ;;  %s8826_s22 = scalar_lea.vmem %s535_s9, 1024 }
 0x116   :  { %p8827_p1 = scmp.ne.s32.totalorder %s535_s9, %s8826_s22  ;;  %p8831_p2 = scmp.lt.s32.totalorder %s535_s9, %s535_s9 }
 0x117   :  { %p8832_p3 = scmp.lt.s32.totalorder %s8826_s22, %s8826_s22 }
 0x119   :  { %p8833_p4 = por %p8832_p3, %p8831_p2 }
 0x11b   :  { %516 = dma.hbm_to_vmem [thread:$0]  %s10544_s18, 32, %s511_s15, [#allocation53], %s9396_s7, %s9396_s7, %s9397_s10  }
 0x11c   :  { %p8834_p5 = pnand %p8833_p4, %p8827_p1 }
 0x11e   :  { %8837 = shalt.err (!%p8834_p5)
}
 0x11f   :  { %s10545_s8 = sld [smem:[#allocation111_spill]]  ;;  %s9408_s12 = smov [#allocation58]  }
 0x120   :  { %s558_s4 = sshll.u32 %s9408_s12, 4  ;;  %s9409_s26 = smov [#allocation61]   ;;  %s559_s4 = int_to_ptr.vmem [resolvable:$true] %s558_s4 }
 0x121   :  { %s582_s28 = sshll.u32 %s9409_s26, 4  ;;  %s8846_s1 = scalar_lea.vmem %s559_s4, 1024  ;;  %s583_s28 = int_to_ptr.vmem [resolvable:$true] %s582_s28 }
 0x122   :  { %p8847_p6 = scmp.ne.s32.totalorder %s559_s4, %s8846_s1  ;;  %p8851_p7 = scmp.lt.s32.totalorder %s559_s4, %s559_s4 }
 0x123   :  { %p8852_p8 = scmp.lt.s32.totalorder %s8846_s1, %s8846_s1 }
 0x125   :  { %540 = dma.hbm_to_vmem [thread:$0]  %s10545_s8, 1024, %s535_s9, [#allocation56], %s9392_s19, %s9392_s19, %s9393_s23  }
 0x126   :  { %p8853_p9 = por %p8852_p8, %p8851_p7 }
 0x128   :  { %p8854_p10 = pnand %p8853_p9, %p8847_p6 }
 0x12a   :  { %8857 = shalt.err (!%p8854_p10)
}
 0x12b   :  { %s10546_s2 = sld [smem:[#allocation113_spill]]  ;;  %s8866_s20 = scalar_lea.vmem %s583_s28, 32 }
 0x12c   :  { %p8867_p11 = scmp.ne.s32.totalorder %s583_s28, %s8866_s20  ;;  %p8871_p12 = scmp.lt.s32.totalorder %s583_s28, %s583_s28 }
 0x12d   :  { %p8872_p13 = scmp.lt.s32.totalorder %s8866_s20, %s8866_s20 }
 0x12f   :  { %p8873_p0 = por %p8872_p13, %p8871_p12 }
 0x131   :  { %564 = dma.hbm_to_vmem [thread:$0]  %s10546_s2, 1024, %s559_s4, [#allocation59], %s9392_s19, %s9392_s19, %s9393_s23  }
 0x132   :  { %p8874_p1 = pnand %p8873_p0, %p8867_p11 }
 0x134   :  { %8877 = shalt.err (!%p8874_p1)
}
 0x135   :  { %588 = dma.hbm_to_vmem [thread:$0]  %s9667_s5, 32, %s583_s28, [#allocation62], %s9396_s7, %s9396_s7, %s9397_s10  }
 0x136   :  { %s9410_s24 = smov [#allocation2]   ;;  %s9411_s27 = smov [#allocation6]  }
 0x137   :  { %s125_s6 = sshll.u32 %s9410_s24, 4  ;;  %s147_s13 = sshll.u32 %s9411_s27, 4  ;;  %s126_s6 = int_to_ptr.vmem [resolvable:$true] %s125_s6  ;;  %s148_s13 = int_to_ptr.vmem [resolvable:$true] %s147_s13 }
 0x138   :  { %s8886_s11 = scalar_lea.vmem %s126_s6, 128  ;;  %p8891_p3 = scmp.lt.s32.totalorder %s126_s6, %s126_s6 }
 0x139   :  { %p8887_p2 = scmp.ne.s32.totalorder %s126_s6, %s8886_s11  ;;  %p8892_p4 = scmp.lt.s32.totalorder %s8886_s11, %s8886_s11 }
 0x13b   :  { %p8893_p5 = por %p8892_p4, %p8891_p3 }
 0x13d   :  { %p8894_p6 = pnand %p8893_p5, %p8887_p2 }
 0x13f   :  { %8897 = shalt.err (!%p8894_p6)
}
 0x140   :  { %s10547_s19 = sld [smem:[#allocation85_spill]]  ;;  %s8906_s14 = scalar_lea.vmem %s148_s13, 16 }
 0x141   :  { %p8907_p7 = scmp.ne.s32.totalorder %s148_s13, %s8906_s14  ;;  %s8910_s21 = scalar_lea.vmem %s148_s13, 32 }
 0x142   :  { %p8911_p8 = scmp.lt.s32.totalorder %s148_s13, %s148_s13  ;;  %p8912_p9 = scmp.lt.s32.totalorder %s8910_s21, %s8906_s14 }
 0x144   :  { %p8913_p10 = por %p8912_p9, %p8911_p8 }
 0x146   :  { %128 = dma.hbm_to_vmem [thread:$0]  %s10547_s19, 128, %s126_s6, [#allocation3]  }
 0x147   :  { %p8914_p11 = pnand %p8913_p10, %p8907_p7 }
 0x149   :  { %8917 = shalt.err (!%p8914_p11)
}
 0x14a   :  { %s10548_s5 = sld [smem:[#allocation87_spill]]  ;;  %s9412_s25 = smov [#allocation9]  }
 0x14b   :  { %s167_s0 = sshll.u32 %s9412_s25, 4  ;;  %s9413_s15 = smov [#allocation12]   ;;  %s168_s0 = int_to_ptr.vmem [resolvable:$true] %s167_s0 }
 0x14c   :  { %s191_s30 = sshll.u32 %s9413_s15, 4  ;;  %s8926_s9 = scalar_lea.vmem %s168_s0, 16  ;;  %s192_s30 = int_to_ptr.vmem [resolvable:$true] %s191_s30 }
 0x14d   :  { %p8927_p12 = scmp.ne.s32.totalorder %s168_s0, %s8926_s9  ;;  %s8930_s16 = scalar_lea.vmem %s168_s0, 32 }
 0x14e   :  { %p8931_p13 = scmp.lt.s32.totalorder %s168_s0, %s168_s0  ;;  %p8932_p0 = scmp.lt.s32.totalorder %s8930_s16, %s8926_s9 }
 0x150   :  { %150 = dma.hbm_to_vmem [thread:$0]  %s10548_s5, 16, %s148_s13, [#allocation5]  }
 0x151   :  { %p8933_p1 = por %p8932_p0, %p8931_p13 }
 0x153   :  { %p8934_p2 = pnand %p8933_p1, %p8927_p12 }
 0x155   :  { %8937 = shalt.err (!%p8934_p2)
}
 0x156   :  { %s10549_s18 = sld [smem:[#allocation88_spill]]  ;;  %s8946_s22 = scalar_lea.vmem %s192_s30, 16 }
 0x157   :  { %p8947_p3 = scmp.ne.s32.totalorder %s192_s30, %s8946_s22  ;;  %s8950_s8 = scalar_lea.vmem %s192_s30, 32 }
 0x158   :  { %p8951_p4 = scmp.lt.s32.totalorder %s192_s30, %s192_s30  ;;  %p8952_p5 = scmp.lt.s32.totalorder %s8950_s8, %s8946_s22 }
 0x15a   :  { %p8953_p6 = por %p8952_p5, %p8951_p4 }
 0x15c   :  { %170 = dma.hbm_to_vmem [thread:$0]  %s10549_s18, 16, %s168_s0, [#allocation8]  }
 0x15d   :  { %p8954_p7 = pnand %p8953_p6, %p8947_p3 }
 0x15f   :  { %8957 = shalt.err (!%p8954_p7)
}
 0x160   :  { %s10550_s12 = sld [smem:[#allocation91_spill]]  ;;  %s9414_s4 = smov [#allocation15]  }
 0x161   :  { %s211_s26 = sshll.u32 %s9414_s4, 4  ;;  %s9415_s28 = smov [#allocation18]   ;;  %s212_s26 = int_to_ptr.vmem [resolvable:$true] %s211_s26 }
 0x162   :  { %s234_s1 = sshll.u32 %s9415_s28, 4  ;;  %s8966_s2 = scalar_lea.vmem %s212_s26, 16  ;;  %s235_s1 = int_to_ptr.vmem [resolvable:$true] %s234_s1 }
 0x163   :  { %p8967_p8 = scmp.ne.s32.totalorder %s212_s26, %s8966_s2  ;;  %s8970_s20 = scalar_lea.vmem %s212_s26, 32 }
 0x164   :  { %p8971_p9 = scmp.lt.s32.totalorder %s212_s26, %s212_s26  ;;  %p8972_p10 = scmp.lt.s32.totalorder %s8970_s20, %s8966_s2 }
 0x166   :  { %194 = dma.hbm_to_vmem [thread:$0]  %s10550_s12, 16, %s192_s30, [#allocation11]  }
 0x167   :  { %p8973_p11 = por %p8972_p10, %p8971_p9 }
 0x169   :  { %p8974_p12 = pnand %p8973_p11, %p8967_p8 }
 0x16b   :  { %8977 = shalt.err (!%p8974_p12)
}
 0x16c   :  { %s10551_s24 = sld [smem:[#allocation92_spill]]  ;;  %s8986_s6 = scalar_lea.vmem %s235_s1, 32 }
 0x16d   :  { %p8987_p13 = scmp.ne.s32.totalorder %s235_s1, %s8986_s6  ;;  %p8991_p0 = scmp.lt.s32.totalorder %s235_s1, %s235_s1 }
 0x16e   :  { %p8992_p1 = scmp.lt.s32.totalorder %s8986_s6, %s8986_s6 }
 0x170   :  { %p8993_p2 = por %p8992_p1, %p8991_p0 }
 0x172   :  { %214 = dma.hbm_to_vmem [thread:$0]  %s10551_s24, 16, %s212_s26, [#allocation14]  }
 0x173   :  { %p8994_p3 = pnand %p8993_p2, %p8987_p13 }
 0x175   :  { %8997 = shalt.err (!%p8994_p3)
}
 0x176   :  { %s10552_s27 = sld [smem:[#allocation95_spill]]  ;;  %s9416_s13 = smov [#allocation21]  }
 0x177   :  { %s258_s11 = sshll.u32 %s9416_s13, 4  ;;  %s9417_s19 = smov [#allocation24]   ;;  %s259_s11 = int_to_ptr.vmem [resolvable:$true] %s258_s11 }
 0x178   :  { %s282_s14 = sshll.u32 %s9417_s19, 4  ;;  %s9006_s21 = scalar_lea.vmem %s259_s11, 32  ;;  %s283_s14 = int_to_ptr.vmem [resolvable:$true] %s282_s14 }
 0x179   :  { %p9007_p4 = scmp.ne.s32.totalorder %s259_s11, %s9006_s21  ;;  %p9011_p5 = scmp.lt.s32.totalorder %s259_s11, %s259_s11 }
 0x17a   :  { %p9012_p6 = scmp.lt.s32.totalorder %s9006_s21, %s9006_s21 }
 0x17c   :  { %240 = dma.hbm_to_vmem [thread:$0]  %s10552_s27, 32, %s235_s1, [#allocation17], %s9396_s7, %s9396_s7, %s9397_s10  }
 0x17d   :  { %p9013_p7 = por %p9012_p6, %p9011_p5 }
 0x17f   :  { %p9014_p8 = pnand %p9013_p7, %p9007_p4 }
 0x181   :  { %9017 = shalt.err (!%p9014_p8)
}
 0x182   :  { %s10553_s5 = sld [smem:[#allocation96_spill]]  ;;  %s9026_s25 = scalar_lea.vmem %s283_s14, 32 }
 0x183   :  { %p9027_p9 = scmp.ne.s32.totalorder %s283_s14, %s9026_s25  ;;  %p9031_p10 = scmp.lt.s32.totalorder %s283_s14, %s283_s14 }
 0x184   :  { %p9032_p11 = scmp.lt.s32.totalorder %s9026_s25, %s9026_s25 }
 0x186   :  { %p9033_p12 = por %p9032_p11, %p9031_p10 }
 0x188   :  { %264 = dma.hbm_to_vmem [thread:$0]  %s10553_s5, 32, %s259_s11, [#allocation20], %s9396_s7, %s9396_s7, %s9397_s10  }
 0x189   :  { %p9034_p13 = pnand %p9033_p12, %p9027_p9 }
 0x18b   :  { %9037 = shalt.err (!%p9034_p13)
}
 0x18c   :  { %s10554_s0 = sld [smem:[#allocation97_spill]]  ;;  %s9418_s15 = smov [#allocation27]  }
 0x18d   :  { %s306_s30 = sshll.u32 %s9418_s15, 4  ;;  %s9419_s9 = smov [#allocation30]   ;;  %s307_s30 = int_to_ptr.vmem [resolvable:$true] %s306_s30 }
 0x18e   :  { %s330_s16 = sshll.u32 %s9419_s9, 4  ;;  %s9046_s18 = scalar_lea.vmem %s307_s30, 32  ;;  %s331_s16 = int_to_ptr.vmem [resolvable:$true] %s330_s16 }
 0x18f   :  { %p9047_p0 = scmp.ne.s32.totalorder %s307_s30, %s9046_s18  ;;  %p9051_p1 = scmp.lt.s32.totalorder %s307_s30, %s307_s30 }
 0x190   :  { %p9052_p2 = scmp.lt.s32.totalorder %s9046_s18, %s9046_s18 }
 0x192   :  { %288 = dma.hbm_to_vmem [thread:$0]  %s10554_s0, 32, %s283_s14, [#allocation23], %s9396_s7, %s9396_s7, %s9397_s10  }
 0x193   :  { %p9053_p3 = por %p9052_p2, %p9051_p1 }
 0x195   :  { %p9054_p4 = pnand %p9053_p3, %p9047_p0 }
 0x197   :  { %9057 = shalt.err (!%p9054_p4)
}
 0x198   :  { %s10555_s22 = sld [smem:[#allocation98_spill]]  ;;  %s9066_s8 = scalar_lea.vmem %s331_s16, 32 }
 0x199   :  { %p9067_p5 = scmp.ne.s32.totalorder %s331_s16, %s9066_s8  ;;  %p9071_p6 = scmp.lt.s32.totalorder %s331_s16, %s331_s16 }
 0x19a   :  { %p9072_p7 = scmp.lt.s32.totalorder %s9066_s8, %s9066_s8 }
 0x19c   :  { %p9073_p8 = por %p9072_p7, %p9071_p6 }
 0x19e   :  { %312 = dma.hbm_to_vmem [thread:$0]  %s10555_s22, 32, %s307_s30, [#allocation26], %s9396_s7, %s9396_s7, %s9397_s10  }
 0x19f   :  { %p9074_p9 = pnand %p9073_p8, %p9067_p5 }
 0x1a1   :  { %9077 = shalt.err (!%p9074_p9)
}
 0x1a2   :  { %s10556_s12 = sld [smem:[#allocation99_spill]]  ;;  %s9420_s4 = smov [#allocation33]  }
 0x1a3   :  { %s354_s26 = sshll.u32 %s9420_s4, 4  ;;  %s9421_s28 = smov [#allocation36]   ;;  %s355_s26 = int_to_ptr.vmem [resolvable:$true] %s354_s26 }
 0x1a4   :  { %s378_s1 = sshll.u32 %s9421_s28, 4  ;;  %s9086_s2 = scalar_lea.vmem %s355_s26, 32  ;;  %s379_s1 = int_to_ptr.vmem [resolvable:$true] %s378_s1 }
 0x1a5   :  { %p9087_p10 = scmp.ne.s32.totalorder %s355_s26, %s9086_s2  ;;  %p9091_p11 = scmp.lt.s32.totalorder %s355_s26, %s355_s26 }
 0x1a6   :  { %p9092_p12 = scmp.lt.s32.totalorder %s9086_s2, %s9086_s2 }
 0x1a8   :  { %336 = dma.hbm_to_vmem [thread:$0]  %s10556_s12, 32, %s331_s16, [#allocation29], %s9396_s7, %s9396_s7, %s9397_s10  }
 0x1a9   :  { %p9093_p13 = por %p9092_p12, %p9091_p11 }
 0x1ab   :  { %p9094_p0 = pnand %p9093_p13, %p9087_p10 }
 0x1ad   :  { %9097 = shalt.err (!%p9094_p0)
}
 0x1ae   :  { %s10557_s20 = sld [smem:[#allocation100_spill]]  ;;  %s9106_s24 = scalar_lea.vmem %s379_s1, 32 }
 0x1af   :  { %p9107_p1 = scmp.ne.s32.totalorder %s379_s1, %s9106_s24  ;;  %p9111_p2 = scmp.lt.s32.totalorder %s379_s1, %s379_s1 }
 0x1b0   :  { %p9112_p3 = scmp.lt.s32.totalorder %s9106_s24, %s9106_s24 }
 0x1b2   :  { %p9113_p4 = por %p9112_p3, %p9111_p2 }
 0x1b4   :  { %360 = dma.hbm_to_vmem [thread:$0]  %s10557_s20, 32, %s355_s26, [#allocation32], %s9396_s7, %s9396_s7, %s9397_s10  }
 0x1b5   :  { %p9114_p5 = pnand %p9113_p4, %p9107_p1 }
 0x1b7   :  { %9117 = shalt.err (!%p9114_p5)
}
 0x1b8   :  { %s10558_s6 = sld [smem:[#allocation101_spill]]  ;;  %s9422_s27 = smov [#allocation39]  }
 0x1b9   :  { %s402_s13 = sshll.u32 %s9422_s27, 4  ;;  %s9423_s11 = smov [#allocation42]   ;;  %s403_s13 = int_to_ptr.vmem [resolvable:$true] %s402_s13 }
 0x1ba   :  { %s426_s19 = sshll.u32 %s9423_s11, 4  ;;  %s9126_s14 = scalar_lea.vmem %s403_s13, 32  ;;  %s427_s19 = int_to_ptr.vmem [resolvable:$true] %s426_s19 }
 0x1bb   :  { %p9127_p6 = scmp.ne.s32.totalorder %s403_s13, %s9126_s14  ;;  %p9131_p7 = scmp.lt.s32.totalorder %s403_s13, %s403_s13 }
 0x1bc   :  { %p9132_p8 = scmp.lt.s32.totalorder %s9126_s14, %s9126_s14 }
 0x1be   :  { %384 = dma.hbm_to_vmem [thread:$0]  %s10558_s6, 32, %s379_s1, [#allocation35], %s9396_s7, %s9396_s7, %s9397_s10  }
 0x1bf   :  { %p9133_p9 = por %p9132_p8, %p9131_p7 }
 0x1c1   :  { %p9134_p10 = pnand %p9133_p9, %p9127_p6 }
 0x1c3   :  { %9137 = shalt.err (!%p9134_p10)
}
 0x1c4   :  { %s10559_s21 = sld [smem:[#allocation102_spill]]  ;;  %s9146_s5 = scalar_lea.vmem %s427_s19, 32 }
 0x1c5   :  { %p9147_p11 = scmp.ne.s32.totalorder %s427_s19, %s9146_s5  ;;  %p9151_p12 = scmp.lt.s32.totalorder %s427_s19, %s427_s19 }
 0x1c6   :  { %p9152_p13 = scmp.lt.s32.totalorder %s9146_s5, %s9146_s5 }
 0x1c8   :  { %p9153_p0 = por %p9152_p13, %p9151_p12 }
 0x1ca   :  { %408 = dma.hbm_to_vmem [thread:$0]  %s10559_s21, 32, %s403_s13, [#allocation38], %s9396_s7, %s9396_s7, %s9397_s10  }
 0x1cb   :  { %p9154_p1 = pnand %p9153_p0, %p9147_p11 }
 0x1cd   :  { %9157 = shalt.err (!%p9154_p1)
}
 0x1ce   :  { %s10560_s25 = sld [smem:[#allocation103_spill]]  ;;  %s9424_s0 = smov [#allocation45]  }
 0x1cf   :  { %s450_s15 = sshll.u32 %s9424_s0, 4  ;;  %s9425_s30 = smov [#allocation48]   ;;  %s451_s15 = int_to_ptr.vmem [resolvable:$true] %s450_s15 }
 0x1d0   :  { %s474_s9 = sshll.u32 %s9425_s30, 4  ;;  %s9166_s16 = scalar_lea.vmem %s451_s15, 32  ;;  %s475_s9 = int_to_ptr.vmem [resolvable:$true] %s474_s9 }
 0x1d1   :  { %p9167_p2 = scmp.ne.s32.totalorder %s451_s15, %s9166_s16  ;;  %p9171_p3 = scmp.lt.s32.totalorder %s451_s15, %s451_s15 }
 0x1d2   :  { %p9172_p4 = scmp.lt.s32.totalorder %s9166_s16, %s9166_s16 }
 0x1d4   :  { %432 = dma.hbm_to_vmem [thread:$0]  %s10560_s25, 32, %s427_s19, [#allocation41], %s9396_s7, %s9396_s7, %s9397_s10  }
 0x1d5   :  { %p9173_p5 = por %p9172_p4, %p9171_p3 }
 0x1d7   :  { %p9174_p6 = pnand %p9173_p5, %p9167_p2 }
 0x1d9   :  { %9177 = shalt.err (!%p9174_p6)
}
 0x1da   :  { %s10561_s18 = sld [smem:[#allocation104_spill]]  ;;  %s9186_s22 = scalar_lea.vmem %s475_s9, 32 }
 0x1db   :  { %p9187_p7 = scmp.ne.s32.totalorder %s475_s9, %s9186_s22  ;;  %p9191_p8 = scmp.lt.s32.totalorder %s475_s9, %s475_s9 }
 0x1dc   :  { %p9192_p9 = scmp.lt.s32.totalorder %s9186_s22, %s9186_s22 }
 0x1de   :  { %p9193_p10 = por %p9192_p9, %p9191_p8 }
 0x1e0   :  { %456 = dma.hbm_to_vmem [thread:$0]  %s10561_s18, 32, %s451_s15, [#allocation44], %s9396_s7, %s9396_s7, %s9397_s10  }
 0x1e1   :  { %p9194_p11 = pnand %p9193_p10, %p9187_p7 }
 0x1e3   :  { %9197 = shalt.err (!%p9194_p11)
}
 0x1e4   :  { %s10562_s8 = sld [smem:[#allocation106_spill]]  ;;  %s9426_s12 = smov [#allocation51]  }
 0x1e5   :  { %s498_s4 = sshll.u32 %s9426_s12, 4  ;;  %s9427_s26 = smov [#allocation54]   ;;  %s499_s4 = int_to_ptr.vmem [resolvable:$true] %s498_s4 }
 0x1e6   :  { %s522_s28 = sshll.u32 %s9427_s26, 4  ;;  %s9206_s1 = scalar_lea.vmem %s499_s4, 32  ;;  %s523_s28 = int_to_ptr.vmem [resolvable:$true] %s522_s28 }
 0x1e7   :  { %p9207_p12 = scmp.ne.s32.totalorder %s499_s4, %s9206_s1  ;;  %p9211_p13 = scmp.lt.s32.totalorder %s499_s4, %s499_s4 }
 0x1e8   :  { %p9212_p0 = scmp.lt.s32.totalorder %s9206_s1, %s9206_s1 }
 0x1ea   :  { %480 = dma.hbm_to_vmem [thread:$0]  %s10562_s8, 32, %s475_s9, [#allocation47], %s9396_s7, %s9396_s7, %s9397_s10  }
 0x1eb   :  { %p9213_p1 = por %p9212_p0, %p9211_p13 }
 0x1ed   :  { %p9214_p2 = pnand %p9213_p1, %p9207_p12 }
 0x1ef   :  { %9217 = shalt.err (!%p9214_p2)
}
 0x1f0   :  { %s10563_s2 = sld [smem:[#allocation108_spill]]  ;;  %s9226_s20 = scalar_lea.vmem %s523_s28, 32 }
 0x1f1   :  { %p9227_p3 = scmp.ne.s32.totalorder %s523_s28, %s9226_s20  ;;  %p9231_p4 = scmp.lt.s32.totalorder %s523_s28, %s523_s28 }
 0x1f2   :  { %p9232_p5 = scmp.lt.s32.totalorder %s9226_s20, %s9226_s20 }
 0x1f4   :  { %p9233_p6 = por %p9232_p5, %p9231_p4 }
 0x1f6   :  { %504 = dma.hbm_to_vmem [thread:$0]  %s10563_s2, 32, %s499_s4, [#allocation50], %s9396_s7, %s9396_s7, %s9397_s10  }
 0x1f7   :  { %p9234_p7 = pnand %p9233_p6, %p9227_p3 }
 0x1f9   :  { %9237 = shalt.err (!%p9234_p7)
}
 0x1fa   :  { %s10564_s24 = sld [smem:[#allocation110_spill]]  ;;  %s9428_s6 = smov [#allocation57]  }
 0x1fb   :  { %s546_s27 = sshll.u32 %s9428_s6, 4  ;;  %s9429_s13 = smov [#allocation60]   ;;  %s547_s27 = int_to_ptr.vmem [resolvable:$true] %s546_s27 }
 0x1fc   :  { %s570_s11 = sshll.u32 %s9429_s13, 4  ;;  %s9246_s19 = scalar_lea.vmem %s547_s27, 32  ;;  %s571_s11 = int_to_ptr.vmem [resolvable:$true] %s570_s11 }
 0x1fd   :  { %p9247_p8 = scmp.ne.s32.totalorder %s547_s27, %s9246_s19  ;;  %p9251_p9 = scmp.lt.s32.totalorder %s547_s27, %s547_s27 }
 0x1fe   :  { %p9252_p10 = scmp.lt.s32.totalorder %s9246_s19, %s9246_s19 }
 0x200   :  { %528 = dma.hbm_to_vmem [thread:$0]  %s10564_s24, 32, %s523_s28, [#allocation53], %s9396_s7, %s9396_s7, %s9397_s10  }
 0x201   :  { %p9253_p11 = por %p9252_p10, %p9251_p9 }
 0x203   :  { %p9254_p12 = pnand %p9253_p11, %p9247_p8 }
 0x205   :  { %9257 = shalt.err (!%p9254_p12)
}
 0x206   :  { %s10565_s14 = sld [smem:[#allocation112_spill]]  ;;  %s9266_s21 = scalar_lea.vmem %s571_s11, 32 }
 0x207   :  { %p9267_p13 = scmp.ne.s32.totalorder %s571_s11, %s9266_s21  ;;  %p9271_p0 = scmp.lt.s32.totalorder %s571_s11, %s571_s11 }
 0x208   :  { %p9272_p1 = scmp.lt.s32.totalorder %s9266_s21, %s9266_s21 }
 0x20a   :  { %p9273_p2 = por %p9272_p1, %p9271_p0 }
 0x20c   :  { %552 = dma.hbm_to_vmem [thread:$0]  %s10565_s14, 32, %s547_s27, [#allocation56], %s9396_s7, %s9396_s7, %s9397_s10  }
 0x20d   :  { %p9274_p3 = pnand %p9273_p2, %p9267_p13 }
 0x20f   :  { %9277 = shalt.err (!%p9274_p3)
}
 0x210   :  { %576 = dma.hbm_to_vmem [thread:$0]  %s9662_s3, 32, %s571_s11, [#allocation59], %s9396_s7, %s9396_s7, %s9397_s10  }
 0x211   :  { %s9430_s5 = smov [#allocation63]  }
 0x212   :  { %s594_s25 = sshll.u32 %s9430_s5, 4  ;;  %s595_s25 = int_to_ptr.vmem [resolvable:$true] %s594_s25 }
 0x213   :  { %s9286_s0 = scalar_lea.vmem %s595_s25, 32  ;;  %p9291_p5 = scmp.lt.s32.totalorder %s595_s25, %s595_s25 }
 0x214   :  { %p9287_p4 = scmp.ne.s32.totalorder %s595_s25, %s9286_s0  ;;  %p9292_p6 = scmp.lt.s32.totalorder %s9286_s0, %s9286_s0 }
 0x216   :  { %p9293_p7 = por %p9292_p6, %p9291_p5 }
 0x218   :  { %p9294_p8 = pnand %p9293_p7, %p9287_p4 }
 0x21a   :  { %9297 = shalt.err (!%p9294_p8)
}
 0x21b   :  { %600 = dma.hbm_to_vmem [thread:$0]  %s9672_s29, 32, %s595_s25, [#allocation62], %s9396_s7, %s9396_s7, %s9397_s10  }
 0x21c   :  { %9298 = dma.done.wait [#allocation3], 128  }
 0x21d   :  { %9299 = vsyncadd [#allocation3], 4294967168 }
 0x21e   :  { %9300 = dma.done.wait [#allocation5], 144  }
 0x21f   :  { %9301 = vsyncadd [#allocation5], 4294967152 }
 0x220   :  { %9302 = dma.done.wait [#allocation8], 80  }
 0x221   :  { %9303 = vsyncadd [#allocation8], 4294967216 }
 0x222   :  { %9304 = dma.done.wait [#allocation11], 32  }
 0x223   :  { %9305 = vsyncadd [#allocation11], 4294967264 }
 0x224   :  { %9306 = dma.done.wait [#allocation14], 32  }
 0x225   :  { %9307 = vsyncadd [#allocation14], 4294967264 }
 0x226   :  { %9308 = dma.done.wait [#allocation17], 48  }
 0x227   :  { %9309 = vsyncadd [#allocation17], 4294967248 }
 0x228   :  { %9310 = dma.done.wait [#allocation20], 1056  }
 0x229   :  { %9311 = vsyncadd [#allocation20], 4294966240 }
 0x22a   :  { %9312 = dma.done.wait [#allocation23], 64  }
 0x22b   :  { %9313 = vsyncadd [#allocation23], 4294967232 }
 0x22c   :  { %9314 = dma.done.wait [#allocation26], 1056  }
 0x22d   :  { %9315 = vsyncadd [#allocation26], 4294966240 }
 0x22e   :  { %9316 = dma.done.wait [#allocation29], 1056  }
 0x22f   :  { %9317 = vsyncadd [#allocation29], 4294966240 }
 0x230   :  { %9318 = dma.done.wait [#allocation32], 64  }
 0x231   :  { %9319 = vsyncadd [#allocation32], 4294967232 }
 0x232   :  { %9320 = dma.done.wait [#allocation35], 1056  }
 0x233   :  { %9321 = vsyncadd [#allocation35], 4294966240 }
 0x234   :  { %9322 = dma.done.wait [#allocation38], 1056  }
 0x235   :  { %9323 = vsyncadd [#allocation38], 4294966240 }
 0x236   :  { %9324 = dma.done.wait [#allocation41], 64  }
 0x237   :  { %9325 = vsyncadd [#allocation41], 4294967232 }
 0x238   :  { %9326 = dma.done.wait [#allocation44], 1056  }
 0x239   :  { %9327 = vsyncadd [#allocation44], 4294966240 }
 0x23a   :  { %9328 = dma.done.wait [#allocation47], 1056  }
 0x23b   :  { %9329 = vsyncadd [#allocation47], 4294966240 }
 0x23c   :  { %9330 = dma.done.wait [#allocation50], 1056  }
 0x23d   :  { %9331 = vsyncadd [#allocation50], 4294966240 }
 0x23e   :  { %9332 = dma.done.wait [#allocation53], 64  }
 0x23f   :  { %9333 = vsyncadd [#allocation53], 4294967232 }
 0x240   :  { %9334 = dma.done.wait [#allocation56], 1056  }
 0x241   :  { %9335 = vsyncadd [#allocation56], 4294966240 }
 0x242   :  { %9336 = dma.done.wait [#allocation59], 1056  }
 0x243   :  { %9337 = vsyncadd [#allocation59], 4294966240 }
 0x244   :  { %9338 = dma.done.wait [#allocation62], 64  }
 0x245   :  { %9339 = vsyncadd [#allocation62], 4294967232  ;;  %s10566_s29 = sld [smem:[#allocation94_spill]]  ;;  %v9431_v0 = vmov 0.0   ;;  %vm9432_vm0 = vmmov 0   ;;  %vm747_vm1 = vcmask 64512  }
 0x246   :  { %7752 = vmatprep.subr.mxu0 %v9431_v0  ;;  %7754 = vmatprep.mubr.msk.f32.mxu0 %vm9432_vm0, %v9431_v0  ;;  %v726_v1 = vld [vmem:[#allocation4] sm:$0xff]  ;;  %v724_v2 = vld [vmem:[#allocation2] sm:$0xff]  ;;  %s10567_s3 = sld [smem:[#allocation89_spill]]  ;;  %v7386_v7 = vld [vmem:[#allocation6] ss:$0 sm:$0xff]  ;;  %vm928_vm2 = vcmask 261120  }
 0x247   :  { %7757 = vmatprep.subr.mxu1 %v9431_v0  ;;  %7759 = vmatprep.mubr.msk.f32.mxu1 %vm9432_vm0, %v9431_v0  ;;  %s10568_s10 = sld [smem:[#allocation86_spill]]  ;;  %v728_v15 = vld [vmem:[#allocation7] sm:$0xf]  ;;  %vm834_vm3 = vcmask 1043456   ;;  %vm830_vm4 = vcmask 31744   ;;  %s9433_s15 = smov 104  }
 0x248   :  { %7753 = vmatpush3.msra.mxu0 %v726_v1  ;;  %7758 = vmatpush3.msk.msra.mxu1 %vm834_vm3, %v728_v15  ;;  %v7391_v17 = vld [vmem:[#allocation18] ss:$0 sm:$0xff]  ;;  %s9434_s30 = smov 120   ;;  %s9435_s9 = smov 96   ;;  %vm1683_vm5 = vcmask 130048   ;;  %vm1685_vm6 = vcmask 195584  }
 0x249   :  { %7755 = vmatmul.mubr.msk.f32.vlgmr.msra.gmra.mxu0 %vm747_vm1, %v724_v2  ;;  %7762 = vmatprep.subr.mxu0 %v9431_v0  ;;  %s9436_s16 = smov 112   ;;  %s9437_s18 = smov 64  }
 0x24a   :  { %7770 = vmatprep.mubr.msk.f32.mxu0 %vm9432_vm0, %v9431_v0  ;;  %7773 = vmatprep.subr.mxu1 %v9431_v0  ;;  %s9438_s22 = smov 24   ;;  %s10569_s8 = sld [smem:[#allocation90_spill]] }
 0x24b   :  { %v920_v3 = vld [vmem:[%s10566_s29 + $0x18] sm:$0xff]  ;;  %v919_v4 = vld [vmem:[%s10566_s29 + $0x10] sm:$0xff]  ;;  %v918_v5 = vld [vmem:[%s10566_s29 + $0x8] sm:$0xff] }
 0x24c   :  { %7763 = vmatpush3.msra.mxu0 %v920_v3  ;;  %v917_v6 = vld [vmem:[%s10566_s29] sm:$0xff] }
 0x24d   :  { %7764 = vmatprep.subr.mxu0 %v9431_v0  ;;  %v730_v12 = vld [vmem:[%s10567_s3] sm:$0xff] }
 0x24e   :  { %7765 = vmatpush3.msra.mxu0 %v919_v4  ;;  %v725_v16 = vld [vmem:[%s10568_s10] sm:$0xff] }
 0x24f   :  { %7766 = vmatprep.subr.mxu0 %v9431_v0  ;;  %7760 = vmatmul.mubr.msk.f32.vlgmr.msra.gmra.mxu1 %vm830_vm4, %v725_v16 }
 0x250   :  { %7767 = vmatpush3.msra.mxu0 %v918_v5  ;;  %7775 = vmatprep.mubr.msk.f32.mxu1 %vm9432_vm0, %v9431_v0 }
 0x251   :  { %7768 = vmatprep.subr.mxu0 %v9431_v0 }
 0x252   :  { %7769 = vmatpush3.msra.mxu0 %v917_v6 }
 0x253   :  { %7783 = vmatprep.subr.mxu0 %v9431_v0 }
 0x309   :  { %v817_v8 = vpop.f32.mrf.mxu0 }
 0x30a   :  { %v818_v9 = vadd.f32 %v7386_v7, %v817_v8 }
 0x30b   :  { %v7756_v10 = vpop.f32.mrf.mxu0 }
 0x30c   :  { %v821_v11 = vmax.f32 %v818_v9, 0.0 }
 0x30e   :  { %v822_v13 = vmul.f32 5.656854, %v821_v11 }
 0x30f   :  { %v9860_v25 = vpop.f32.mrf.mxu1 }
 0x310   :  { %v9832_v14 = vadd.f32 %v822_v13, %v730_v12 }
 0x311   :  { %v7761_v26 = vpop.f32.mrf.mxu1 }
 0x312   :  { %7771 = vmatmul.mubr.msk.f32.vlgmr.msra.gmra.mxu0 %vm928_vm2, %v9832_v14  ;;  %v1002_v26 = vld [vmem:[#allocation19] sm:$0xff] }
 0x313   :  { %7785 = vmatprep.mubr.msk.f32.mxu0 %vm9432_vm0, %v9431_v0 }
 0x3d2   :  { %v998_v18 = vpop.f32.mrf.mxu0 }
 0x3d3   :  { %v999_v19 = vadd.f32 %v7391_v17, %v998_v18 }
 0x3d4   :  { %v7772_v20 = vpop.f32.mrf.mxu0 }
 0x3d5   :  { %1012 = vrot.lane.b32.xlu1 %v999_v19, %s9433_s15  ;;  %1008 = vrot.lane.b32.xlu0 %v999_v19, %s9434_s30 }
 0x3d9   :  { %1014 = vrot.lane.b32.xlu1 %v999_v19, %s9435_s9  ;;  %1010 = vrot.lane.b32.xlu0 %v999_v19, %s9436_s16 }
 0x447   :  { %v9846_v21 = vpop.permute.xlu1 %1012  ;;  %v1009_v22 = vpop.permute.xlu0 %1008 }
 0x448   :  { %1090 = vrot.lane.b32.xlu0 %v1009_v22, %s9435_s9 }
 0x44b   :  { %v1015_v23 = vpop.permute.xlu1 %1014  ;;  %v9849_v24 = vpop.permute.xlu0 %1010 }
 0x44c   :  { %7774 = vmatpush3.xpose.msk.msra.mxu1 %vm747_vm1, %v1015_v23  ;;  %1242 = vrot.lane.b32.xlu0 %v9846_v21, %s9435_s9  ;;  %v1004_v23 = vld [vmem:[#allocation19 + $0x10] sm:$0xff] }
 0x44d   :  { %1166 = vrot.lane.b32.xlu1 %v9849_v24, %s9435_s9  ;;  %7778 = vmatprep.subr.mxu1 %v9431_v0 }
 0x44f   :  { %7776 = vmatmul.mubr.msk.f32.vlgmr.msra.gmra.mxu1 %vm747_vm1, %v999_v19 }
 0x450   :  { %7780 = vmatprep.mubr.msk.f32.mxu1 %vm9432_vm0, %v9431_v0 }
 0x4ba   :  { %v1091_v27 = vpop.permute.xlu0 %1090 }
 0x4bb   :  { %7779 = vmatpush3.xpose.msk.msra.mxu1 %vm747_vm1, %v1091_v27 }
 0x4bc   :  { %7788 = vmatprep.subr.mxu1 %v9431_v0 }
 0x4be   :  { %7781 = vmatmul.mubr.msk.f32.vlgmr.msra.gmra.mxu1 %vm747_vm1, %v1009_v22  ;;  %v1243_v28 = vpop.permute.xlu0 %1242 }
 0x4bf   :  { %v1167_v29 = vpop.permute.xlu1 %1166  ;;  %7789 = vmatpush3.xpose.msk.msra.mxu1 %vm747_vm1, %v1243_v28  ;;  %7790 = vmatprep.mubr.msk.f32.mxu1 %vm9432_vm0, %v9431_v0 }
 0x4c0   :  { %7784 = vmatpush3.xpose.msk.msra.mxu0 %vm747_vm1, %v1167_v29  ;;  %7798 = vmatprep.subr.mxu1 %v9431_v0 }
 0x4c1   :  { %7793 = vmatprep.subr.mxu0 %v9431_v0 }
 0x4c2   :  { %7791 = vmatmul.mubr.msk.f32.vlgmr.msra.gmra.mxu1 %vm747_vm1, %v9846_v21 }
 0x4c3   :  { %7786 = vmatmul.mubr.msk.f32.vlgmr.msra.gmra.mxu0 %vm747_vm1, %v9849_v24  ;;  %7800 = vmatprep.mubr.msk.f32.mxu1 %vm9432_vm0, %v9431_v0 }
 0x4c4   :  { %7795 = vmatprep.mubr.msk.f32.mxu0 %vm9432_vm0, %v9431_v0 }
 0x50f   :  { %v1086_v30 = vpop.f32.mrf.mxu1 }
 0x510   :  { %v1318_v31 = vmul.f32 0.35355338, %v1086_v30 }
 0x511   :  { %v7777_v32 = vpop.f32.mrf.mxu1 }
 0x512   :  { %v1322_v33 = vsel %vm747_vm1, %v1318_v31, -inf }
 0x513   :  { %1323 = vmax.xlane.f32.xlu1 %v1322_v33 }
 0x57e   :  { %v1162_v34 = vpop.f32.mrf.mxu1 }
 0x57f   :  { %v1319_v35 = vmul.f32 0.35355338, %v1162_v34 }
 0x580   :  { %v7782_v36 = vpop.f32.mrf.mxu1 }
 0x581   :  { %v1325_v37 = vsel %vm747_vm1, %v1319_v35, -inf }
 0x582   :  { %1326 = vmax.xlane.f32.xlu0 %v1325_v37  ;;  %v1314_v38 = vpop.f32.mrf.mxu1 }
 0x583   :  { %v1238_v39 = vpop.f32.mrf.mxu0  ;;  %v1321_v40 = vmul.f32 0.35355338, %v1314_v38 }
 0x584   :  { %v1320_v41 = vmul.f32 0.35355338, %v1238_v39  ;;  %v7792_v42 = vpop.f32.mrf.mxu1  ;;  %v7405_v39 = vld [vmem:[#allocation21] ss:$0 sm:$0xff] }
 0x585   :  { %v7787_v43 = vpop.f32.mrf.mxu0  ;;  %v1331_v44 = vsel %vm747_vm1, %v1321_v40, -inf }
 0x586   :  { %1332 = vmax.xlane.f32.xlu1 %v1331_v44  ;;  %v1328_v45 = vsel %vm747_vm1, %v1320_v41, -inf }
 0x587   :  { %1329 = vmax.xlane.f32.xlu0 %v1328_v45 }
 0x597   :  { %1442 = vrot.lane.b32.xlu1 %v1009_v22, %s9437_s18  ;;  %v1005_v22 = vld [vmem:[#allocation19 + $0x18] sm:$0xff] }
 0x59c   :  { %v1324_v46 = vpop.xlane.xlu1 %1323 }
 0x59d   :  { %1366 = vrot.lane.b32.xlu0 %v999_v19, %s9437_s18  ;;  %v1334_v47 = vsub.f32 %v1318_v31, %v1324_v46 }
 0x59f   :  { %v1338_v48 = vmul.f32 1.442695, %v1334_v47 }
 0x5a1   :  { %8354 = vpow2.f32 %v1338_v48 }
 0x5ae   :  { %v8355_v49 = vpop.eup %8354 }
 0x5af   :  { %v1346_v50 = vsel %vm747_vm1, %v8355_v49, 0.0 }
 0x5bc   :  { %1347 = vadd.xlane.f32.xlu0 %v1346_v50  ;;  %v1800_v50 = vld [vmem:[#allocation25 + $0x18] sm:$0xff] }
 0x60b   :  { %v1327_v51 = vpop.xlane.xlu0 %1326 }
 0x60c   :  { %v1335_v52 = vsub.f32 %v1319_v35, %v1327_v51  ;;  %v1799_v51 = vld [vmem:[#allocation25 + $0x10] sm:$0xff] }
 0x60e   :  { %v1340_v53 = vmul.f32 1.442695, %v1335_v52  ;;  %v1798_v52 = vld [vmem:[#allocation25 + $0x8] sm:$0xff] }
 0x60f   :  { %v1333_v54 = vpop.xlane.xlu1 %1332 }
 0x610   :  { %8356 = vpow2.f32 %v1340_v53  ;;  %v1337_v55 = vsub.f32 %v1321_v40, %v1333_v54  ;;  %v1330_v56 = vpop.xlane.xlu0 %1329  ;;  %v1805_v53 = vld [vmem:[#allocation28 + $0x18] sm:$0xff] }
 0x611   :  { %v1336_v57 = vsub.f32 %v1320_v41, %v1330_v56 }
 0x612   :  { %v1344_v58 = vmul.f32 1.442695, %v1337_v55 }
 0x613   :  { %v1342_v59 = vmul.f32 1.442695, %v1336_v57  ;;  %v1443_v60 = vpop.permute.xlu1 %1442 }
 0x614   :  { %8358 = vpow2.f32 %v1344_v58  ;;  %v1367_v61 = vpop.permute.xlu0 %1366  ;;  %7799 = vmatpush3.msra.mxu1 %v1443_v60  ;;  %v7407_v58 = vld [vmem:[#allocation22] ss:$0 sm:$0xff]  ;;  %v7408_v60 = vld [vmem:[#allocation24] ss:$0 sm:$0xff] }
 0x615   :  { %8360 = vpow2.f32 %v1342_v59  ;;  %7794 = vmatpush3.msra.mxu0 %v1367_v61  ;;  %7808 = vmatprep.subr.mxu1 %v9431_v0 }
 0x616   :  { %7803 = vmatprep.subr.mxu0 %v9431_v0 }
 0x61d   :  { %v8357_v62 = vpop.eup %8356 }
 0x61e   :  { %v1349_v63 = vsel %vm747_vm1, %v8357_v62, 0.0 }
 0x61f   :  { %1350 = vadd.xlane.f32.xlu1 %v1349_v63  ;;  %v1804_v63 = vld [vmem:[#allocation28 + $0x10] sm:$0xff] }
 0x621   :  { %v8359_v1 = vpop.eup %8358 }
 0x622   :  { %v8361_v2 = vpop.eup %8360  ;;  %v1355_v3 = vsel %vm747_vm1, %v8359_v1, 0.0 }
 0x623   :  { %1356 = vadd.xlane.f32.xlu1 %v1355_v3  ;;  %v1352_v4 = vsel %vm747_vm1, %v8361_v2, 0.0  ;;  %v7409_v3 = vld [vmem:[#allocation27] ss:$0 sm:$0xff] }
 0x624   :  { %1353 = vadd.xlane.f32.xlu0 %v1352_v4 }
 0x634   :  { %1518 = vrot.lane.b32.xlu1 %v9849_v24, %s9437_s18  ;;  %v1003_v24 = vld [vmem:[#allocation19 + $0x8] sm:$0xff] }
 0x63a   :  { %1594 = vrot.lane.b32.xlu0 %v9846_v21, %s9437_s18 }
 0x645   :  { %v1348_v5 = vpop.xlane.xlu0 %1347 }
 0x646   :  { %8362 = vrcp.f32 %v1348_v5 }
 0x653   :  { %v8363_v6 = vpop.eup %8362 }
 0x654   :  { %v1362_v7 = vmul.f32 %v8363_v6, %v8355_v49 }
 0x656   :  { %7796 = vmatmul.mubr.msk.f32.vlgmr.msra.gmra.mxu0 %vm747_vm1, %v1362_v7 }
 0x657   :  { %7805 = vmatprep.mubr.msk.f32.mxu0 %vm9432_vm0, %v9431_v0 }
 0x6a8   :  { %v1351_v8 = vpop.xlane.xlu1 %1350 }
 0x6a9   :  { %8364 = vrcp.f32 %v1351_v8  ;;  %v7411_v8 = vld [vmem:[#allocation30] ss:$0 sm:$0xff] }
 0x6ac   :  { %v1357_v9 = vpop.xlane.xlu1 %1356 }
 0x6ad   :  { %8366 = vrcp.f32 %v1357_v9  ;;  %v1354_v10 = vpop.xlane.xlu0 %1353 }
 0x6ae   :  { %8368 = vrcp.f32 %v1354_v10 }
 0x6b0   :  { %v1519_v11 = vpop.permute.xlu1 %1518 }
 0x6b1   :  { %7804 = vmatpush3.msra.mxu0 %v1519_v11  ;;  %v1595_v15 = vpop.permute.xlu0 %1594 }
 0x6b2   :  { %7813 = vmatprep.subr.mxu0 %v9431_v0 }
 0x6b6   :  { %v8365_v12 = vpop.eup %8364 }
 0x6b7   :  { %v1363_v13 = vmul.f32 %v8365_v12, %v8357_v62 }
 0x6b9   :  { %7801 = vmatmul.mubr.msk.f32.vlgmr.msra.gmra.mxu1 %vm747_vm1, %v1363_v13 }
 0x6ba   :  { %v8367_v16 = vpop.eup %8366  ;;  %7809 = vmatpush3.msra.mxu1 %v1595_v15  ;;  %7810 = vmatprep.mubr.msk.f32.mxu1 %vm9432_vm0, %v9431_v0 }
 0x6bb   :  { %v8369_v17 = vpop.eup %8368  ;;  %v1365_v18 = vmul.f32 %v8367_v16, %v8359_v1  ;;  %7824 = vmatprep.subr.mxu1 %v9431_v0  ;;  %v1803_v1 = vld [vmem:[#allocation28 + $0x8] sm:$0xff] }
 0x6bc   :  { %v1364_v19 = vmul.f32 %v8369_v17, %v8361_v2  ;;  %v1802_v2 = vld [vmem:[#allocation28] sm:$0xff] }
 0x6bd   :  { %7811 = vmatmul.mubr.msk.f32.vlgmr.msra.gmra.mxu1 %vm747_vm1, %v1365_v18 }
 0x6be   :  { %7806 = vmatmul.mubr.msk.f32.vlgmr.msra.gmra.mxu0 %vm747_vm1, %v1364_v19  ;;  %7832 = vmatprep.mubr.msk.f32.mxu1 %vm9432_vm0, %v9431_v0 }
 0x6bf   :  { %7821 = vmatprep.mubr.msk.f32.mxu0 %vm9432_vm0, %v9431_v0  ;;  %7814 = vmatpush3.msra.mxu0 %v1005_v22  ;;  %v7416_v22 = vld [vmem:[%s10566_s29 + $0x28] sm:$0xff] }
 0x6c0   :  { %7815 = vmatprep.subr.mxu0 %v9431_v0  ;;  %7825 = vmatpush3.msra.mxu1 %v1800_v50 }
 0x6c1   :  { %7816 = vmatpush3.msra.mxu0 %v1004_v23  ;;  %7826 = vmatprep.subr.mxu1 %v9431_v0  ;;  %v7415_v23 = vld [vmem:[%s10566_s29 + $0x20] sm:$0xff] }
 0x6c2   :  { %7817 = vmatprep.subr.mxu0 %v9431_v0  ;;  %7827 = vmatpush3.msra.mxu1 %v1799_v51 }
 0x6c3   :  { %7818 = vmatpush3.msra.mxu0 %v1003_v24  ;;  %7828 = vmatprep.subr.mxu1 %v9431_v0 }
 0x6c4   :  { %7819 = vmatprep.subr.mxu0 %v9431_v0  ;;  %7829 = vmatpush3.msra.mxu1 %v1798_v52 }
 0x6c5   :  { %7820 = vmatpush3.msra.mxu0 %v1002_v26  ;;  %7830 = vmatprep.subr.mxu1 %v9431_v0 }
 0x6c6   :  { %7835 = vmatprep.subr.mxu0 %v9431_v0 }
 0x716   :  { %v1438_v20 = vpop.f32.mrf.mxu0 }
 0x718   :  { %v7797_v21 = vpop.f32.mrf.mxu0 }
 0x719   :  { %v7417_v21 = vld [vmem:[%s10566_s29 + $0x30] sm:$0xff] }
 0x779   :  { %v1514_v27 = vpop.f32.mrf.mxu1 }
 0x77a   :  { %1671 = vrot.lane.b32.xlu1 %v1514_v27, %s9393_s23 }
 0x77b   :  { %v7802_v28 = vpop.f32.mrf.mxu1 }
 0x77d   :  { %v1666_v29 = vpop.f32.mrf.mxu1 }
 0x77e   :  { %v1590_v30 = vpop.f32.mrf.mxu0  ;;  %1679 = vrot.lane.b32.xlu1 %v1666_v29, %s9438_s22  ;;  %v7413_v29 = vld [vmem:[#allocation31] ss:$0 sm:$0xff] }
 0x77f   :  { %1675 = vrot.lane.b32.xlu0 %v1590_v30, %s9396_s7  ;;  %v7812_v31 = vpop.f32.mrf.mxu1 }
 0x780   :  { %v7807_v32 = vpop.f32.mrf.mxu0  ;;  %v7414_v31 = vld [vmem:[#allocation33] ss:$0 sm:$0xff] }
 0x7ec   :  { %v1672_v33 = vpop.permute.xlu1 %1671 }
 0x7ed   :  { %v1682_v35 = vsel %vm747_vm1, %v1438_v20, %v1672_v33  ;;  %v7418_v20 = vld [vmem:[%s10566_s29 + $0x38] sm:$0xff] }
 0x7f0   :  { %v1680_v34 = vpop.permute.xlu1 %1679 }
 0x7f1   :  { %v1676_v36 = vpop.permute.xlu0 %1675 }
 0x7f2   :  { %v1684_v37 = vsel %vm1683_vm5, %v1682_v35, %v1676_v36 }
 0x7f3   :  { %v1686_v38 = vsel %vm1685_vm6, %v1684_v37, %v1680_v34  ;;  %v7419_v34 = vld [vmem:[#allocation18 + $0x1] ss:$0 sm:$0xff] }
 0x7f4   :  { %7822 = vmatmul.mubr.msk.f32.vlgmr.msra.gmra.mxu0 %vm928_vm2, %v1686_v38 }
 0x7f5   :  { %7843 = vmatprep.mubr.msk.f32.mxu0 %vm9432_vm0, %v9431_v0  ;;  %7836 = vmatpush3.msra.mxu0 %v1805_v53 }
 0x7f6   :  { %7837 = vmatprep.subr.mxu0 %v9431_v0 }
 0x7f7   :  { %7838 = vmatpush3.msra.mxu0 %v1804_v63 }
 0x7f8   :  { %7839 = vmatprep.subr.mxu0 %v9431_v0 }
 0x7f9   :  { %7840 = vmatpush3.msra.mxu0 %v1803_v1 }
 0x7fa   :  { %7841 = vmatprep.subr.mxu0 %v9431_v0 }
 0x7fb   :  { %7842 = vmatpush3.msra.mxu0 %v1802_v2 }
 0x7fc   :  { %7857 = vmatprep.subr.mxu0 %v9431_v0 }
 0x8b4   :  { %v1762_v40 = vpop.f32.mrf.mxu0 }
 0x8b5   :  { %v1763_v41 = vadd.f32 %v7405_v39, %v1762_v40 }
 0x8b6   :  { %v7823_v42 = vpop.f32.mrf.mxu0 }
 0x8b7   :  { %v1766_v43 = vadd.f32 %v1763_v41, %v9832_v14  ;;  %v1797_v14 = vld [vmem:[#allocation25] sm:$0xff] }
 0x8b8   :  { %7831 = vmatpush3.msra.mxu1 %v1797_v14 }
 0x8b9   :  { %v1769_v44 = vsel %vm928_vm2, %v1766_v43, 0.0  ;;  %7846 = vmatprep.subr.mxu1 %v9431_v0 }
 0x8ba   :  { %1770 = vadd.xlane.f32.xlu0 %v1769_v44 }
 0x943   :  { %v1771_v45 = vpop.xlane.xlu0 %1770 }
 0x944   :  { %v1773_v46 = vmul.f32 0.03125, %v1771_v45 }
 0x946   :  { %v1774_v47 = vsub.f32 %v1766_v43, %v1773_v46 }
 0x948   :  { %v1775_v48 = vmul.f32 %v1774_v47, %v1774_v47 }
 0x94a   :  { %v1776_v49 = vsel %vm928_vm2, %v1775_v48, 0.0 }
 0x94b   :  { %1777 = vadd.xlane.f32.xlu1 %v1776_v49 }
 0x9d4   :  { %v1778_v54 = vpop.xlane.xlu1 %1777 }
 0x9d5   :  { %v1779_v55 = vmul.f32 0.03125, %v1778_v54 }
 0x9d7   :  { %v1780_v56 = vadd.f32 1e-05, %v1779_v55 }
 0x9d9   :  { %8370 = vrsqrt.f32 %v1780_v56 }
 0x9e6   :  { %v8371_v57 = vpop.eup %8370 }
 0x9e7   :  { %v1782_v59 = vmul.f32 %v8371_v57, %v1774_v47 }
 0x9e9   :  { %v1789_v61 = vmul.f32 %v7407_v58, %v1782_v59 }
 0x9eb   :  { %v1796_v62 = vadd.f32 %v7408_v60, %v1789_v61 }
 0x9ed   :  { %7833 = vmatmul.mubr.msk.f32.vlgmr.msra.gmra.mxu1 %vm928_vm2, %v1796_v62 }
 0x9ee   :  { %7854 = vmatprep.mubr.msk.f32.mxu1 %vm9432_vm0, %v9431_v0  ;;  %7847 = vmatpush3.msra.mxu1 %v7418_v20 }
 0x9ef   :  { %7848 = vmatprep.subr.mxu1 %v9431_v0 }
 0x9f0   :  { %7849 = vmatpush3.msra.mxu1 %v7417_v21 }
 0x9f1   :  { %7850 = vmatprep.subr.mxu1 %v9431_v0 }
 0x9f2   :  { %7851 = vmatpush3.msra.mxu1 %v7416_v22 }
 0x9f3   :  { %7852 = vmatprep.subr.mxu1 %v9431_v0 }
 0x9f4   :  { %7853 = vmatpush3.msra.mxu1 %v7415_v23 }
 0x9f5   :  { %7862 = vmatprep.subr.mxu1 %v9431_v0 }
 0xaad   :  { %v1882_v4 = vpop.f32.mrf.mxu1 }
 0xaae   :  { %v1883_v5 = vadd.f32 %v7409_v3, %v1882_v4 }
 0xaaf   :  { %v7834_v6 = vpop.f32.mrf.mxu1 }
 0xab0   :  { %v1886_v7 = vmax.f32 %v1883_v5, 0.0 }
 0xab2   :  { %7844 = vmatmul.mubr.msk.f32.vlgmr.msra.gmra.mxu0 %vm928_vm2, %v1886_v7 }
 0xab3   :  { %7859 = vmatprep.mubr.msk.f32.mxu0 %vm9432_vm0, %v9431_v0 }
 0xb72   :  { %v1962_v9 = vpop.f32.mrf.mxu0 }
 0xb73   :  { %v1963_v10 = vadd.f32 %v7411_v8, %v1962_v9 }
 0xb74   :  { %v7845_v11 = vpop.f32.mrf.mxu0 }
 0xb75   :  { %v1966_v12 = vadd.f32 %v1963_v10, %v1796_v62 }
 0xb77   :  { %v1969_v13 = vsel %vm928_vm2, %v1966_v12, 0.0 }
 0xb78   :  { %1970 = vadd.xlane.f32.xlu0 %v1969_v13 }
 0xc01   :  { %v1971_v15 = vpop.xlane.xlu0 %1970 }
 0xc02   :  { %v1972_v16 = vmul.f32 0.03125, %v1971_v15 }
 0xc04   :  { %v1973_v17 = vsub.f32 %v1966_v12, %v1972_v16 }
 0xc06   :  { %v1974_v18 = vmul.f32 %v1973_v17, %v1973_v17 }
 0xc08   :  { %v1975_v19 = vsel %vm928_vm2, %v1974_v18, 0.0 }
 0xc09   :  { %1976 = vadd.xlane.f32.xlu0 %v1975_v19 }
 0xc92   :  { %v1977_v24 = vpop.xlane.xlu0 %1976 }
 0xc93   :  { %v1978_v26 = vmul.f32 0.03125, %v1977_v24 }
 0xc95   :  { %v1979_v27 = vadd.f32 1e-05, %v1978_v26 }
 0xc97   :  { %8372 = vrsqrt.f32 %v1979_v27 }
 0xca4   :  { %v8373_v28 = vpop.eup %8372 }
 0xca5   :  { %v1981_v30 = vmul.f32 %v8373_v28, %v1973_v17 }
 0xca7   :  { %v1988_v32 = vmul.f32 %v7413_v29, %v1981_v30 }
 0xca9   :  { %v9949_v33 = vadd.f32 %v7414_v31, %v1988_v32 }
 0xcab   :  { %7855 = vmatmul.mubr.msk.f32.vlgmr.msra.gmra.mxu1 %vm928_vm2, %v9949_v33 }
 0xcac   :  { %7864 = vmatprep.mubr.msk.f32.mxu1 %vm9432_vm0, %v9431_v0 }
 0xd6b   :  { %v2078_v35 = vpop.f32.mrf.mxu1 }
 0xd6c   :  { %v2079_v36 = vadd.f32 %v7419_v34, %v2078_v35 }
 0xd6d   :  { %v7856_v37 = vpop.f32.mrf.mxu1 }
 0xd6e   :  { %2092 = vrot.lane.b32.xlu0 %v2079_v36, %s9436_s16  ;;  %2090 = vrot.lane.b32.xlu1 %v2079_v36, %s9434_s30 }
 0xd72   :  { %2094 = vrot.lane.b32.xlu1 %v2079_v36, %s9433_s15 }
 0xd76   :  { %2096 = vrot.lane.b32.xlu1 %v2079_v36, %s9435_s9 }
 0xde0   :  { %v9959_v38 = vpop.permute.xlu0 %2092  ;;  %v2091_v39 = vpop.permute.xlu1 %2090 }
 0xde1   :  { %2248 = vrot.lane.b32.xlu1 %v9959_v38, %s9435_s9  ;;  %2172 = vrot.lane.b32.xlu0 %v2091_v39, %s9435_s9 }
 0xde4   :  { %v9964_v40 = vpop.permute.xlu1 %2094 }
 0xde5   :  { %2324 = vrot.lane.b32.xlu0 %v9964_v40, %s9435_s9 }
 0xde8   :  { %v2097_v41 = vpop.permute.xlu1 %2096 }
 0xde9   :  { %7858 = vmatpush3.xpose.msk.msra.mxu0 %vm747_vm1, %v2097_v41  ;;  %v2083_v41 = vld [vmem:[#allocation19 + $0x20] sm:$0xff] }
 0xdea   :  { %7867 = vmatprep.subr.mxu0 %v9431_v0 }
 0xdec   :  { %7860 = vmatmul.mubr.msk.f32.vlgmr.msra.gmra.mxu0 %vm747_vm1, %v2079_v36 }
 0xded   :  { %7869 = vmatprep.mubr.msk.f32.mxu0 %vm9432_vm0, %v9431_v0 }
 0xe53   :  { %v2173_v42 = vpop.permute.xlu0 %2172  ;;  %v2249_v43 = vpop.permute.xlu1 %2248 }
 0xe54   :  { %7863 = vmatpush3.xpose.msk.msra.mxu1 %vm747_vm1, %v2173_v42  ;;  %7868 = vmatpush3.xpose.msk.msra.mxu0 %vm747_vm1, %v2249_v43 }
 0xe55   :  { %7872 = vmatprep.subr.mxu1 %v9431_v0  ;;  %7877 = vmatprep.subr.mxu0 %v9431_v0 }
 0xe57   :  { %7865 = vmatmul.mubr.msk.f32.vlgmr.msra.gmra.mxu1 %vm747_vm1, %v2091_v39  ;;  %v2325_v44 = vpop.permute.xlu0 %2324  ;;  %7870 = vmatmul.mubr.msk.f32.vlgmr.msra.gmra.mxu0 %vm747_vm1, %v9959_v38 }
 0xe58   :  { %7873 = vmatpush3.xpose.msk.msra.mxu1 %vm747_vm1, %v2325_v44  ;;  %7874 = vmatprep.mubr.msk.f32.mxu1 %vm9432_vm0, %v9431_v0 }
 0xe59   :  { %7882 = vmatprep.subr.mxu1 %v9431_v0  ;;  %7879 = vmatprep.mubr.msk.f32.mxu0 %vm9432_vm0, %v9431_v0 }
 0xe5b   :  { %7875 = vmatmul.mubr.msk.f32.vlgmr.msra.gmra.mxu1 %vm747_vm1, %v9964_v40 }
 0xe5c   :  { %7884 = vmatprep.mubr.msk.f32.mxu1 %vm9432_vm0, %v9431_v0 }
 0xeac   :  { %v2168_v45 = vpop.f32.mrf.mxu0 }
 0xead   :  { %v2400_v46 = vmul.f32 0.35355338, %v2168_v45 }
 0xeae   :  { %v7861_v47 = vpop.f32.mrf.mxu0 }
 0xeaf   :  { %v2404_v48 = vsel %vm747_vm1, %v2400_v46, -inf }
 0xeb0   :  { %2405 = vmax.xlane.f32.xlu1 %v2404_v48 }
 0xf17   :  { %v2244_v49 = vpop.f32.mrf.mxu1  ;;  %v2320_v50 = vpop.f32.mrf.mxu0 }
 0xf18   :  { %v2401_v51 = vmul.f32 0.35355338, %v2244_v49  ;;  %v2402_v53 = vmul.f32 0.35355338, %v2320_v50 }
 0xf19   :  { %v7866_v52 = vpop.f32.mrf.mxu1  ;;  %v7871_v14 = vpop.f32.mrf.mxu0 }
 0xf1a   :  { %v2407_v54 = vsel %vm747_vm1, %v2401_v51, -inf  ;;  %v2410_v59 = vsel %vm747_vm1, %v2402_v53, -inf }
 0xf1b   :  { %2408 = vmax.xlane.f32.xlu0 %v2407_v54  ;;  %v2396_v55 = vpop.f32.mrf.mxu1 }
 0xf1c   :  { %v2403_v56 = vmul.f32 0.35355338, %v2396_v55 }
 0xf1d   :  { %v7876_v57 = vpop.f32.mrf.mxu1 }
 0xf1e   :  { %v2413_v58 = vsel %vm747_vm1, %v2403_v56, -inf }
 0xf1f   :  { %2414 = vmax.xlane.f32.xlu1 %v2413_v58  ;;  %2411 = vmax.xlane.f32.xlu0 %v2410_v59 }
 0xf30   :  { %2524 = vrot.lane.b32.xlu1 %v2091_v39, %s9437_s18  ;;  %v2085_v39 = vld [vmem:[#allocation19 + $0x30] sm:$0xff] }
 0xf35   :  { %2448 = vrot.lane.b32.xlu0 %v2079_v36, %s9437_s18 }
 0xf39   :  { %v2406_v60 = vpop.xlane.xlu1 %2405 }
 0xf3a   :  { %v2416_v61 = vsub.f32 %v2400_v46, %v2406_v60 }
 0xf3c   :  { %v2420_v62 = vmul.f32 1.442695, %v2416_v61 }
 0xf3e   :  { %8374 = vpow2.f32 %v2420_v62 }
 0xf4b   :  { %v8375_v63 = vpop.eup %8374 }
 0xf4c   :  { %v2428_v1 = vsel %vm747_vm1, %v8375_v63, 0.0 }
 0xf54   :  { %2429 = vadd.xlane.f32.xlu0 %v2428_v1  ;;  %v2882_v1 = vld [vmem:[#allocation25 + $0x38] sm:$0xff] }
 0xfa4   :  { %v2409_v2 = vpop.xlane.xlu0 %2408 }
 0xfa5   :  { %v2417_v3 = vsub.f32 %v2401_v51, %v2409_v2  ;;  %v2881_v2 = vld [vmem:[#allocation25 + $0x30] sm:$0xff] }
 0xfa7   :  { %v2422_v4 = vmul.f32 1.442695, %v2417_v3  ;;  %v2880_v3 = vld [vmem:[#allocation25 + $0x28] sm:$0xff] }
 0xfa8   :  { %v2415_v5 = vpop.xlane.xlu1 %2414  ;;  %v2412_v6 = vpop.xlane.xlu0 %2411 }
 0xfa9   :  { %8376 = vpow2.f32 %v2422_v4  ;;  %v2419_v7 = vsub.f32 %v2403_v56, %v2415_v5  ;;  %v2418_v8 = vsub.f32 %v2402_v53, %v2412_v6  ;;  %v7433_v53 = vld [vmem:[#allocation21 + $0x1] ss:$0 sm:$0xff] }
 0xfaa   :  { %v2889_v4 = vld [vmem:[#allocation28 + $0x38] sm:$0xff] }
 0xfab   :  { %v2426_v9 = vmul.f32 1.442695, %v2419_v7  ;;  %v2424_v10 = vmul.f32 1.442695, %v2418_v8  ;;  %v7388_v8 = vld [vmem:[#allocation9] ss:$0 sm:$0xff] }
 0xfac   :  { %v2525_v11 = vpop.permute.xlu1 %2524  ;;  %v2449_v12 = vpop.permute.xlu0 %2448 }
 0xfad   :  { %8378 = vpow2.f32 %v2426_v9  ;;  %7878 = vmatpush3.msra.mxu0 %v2449_v12  ;;  %7883 = vmatpush3.msra.mxu1 %v2525_v11  ;;  %v905_v11 = vadd.f32 %v7388_v8, %v9860_v25  ;;  %v731_v25 = vld [vmem:[%s10569_s8] sm:$0xff] }
 0xfae   :  { %8380 = vpow2.f32 %v2424_v10  ;;  %7887 = vmatprep.subr.mxu0 %v9431_v0  ;;  %7892 = vmatprep.subr.mxu1 %v9431_v0  ;;  %v7435_v10 = vld [vmem:[#allocation22 + $0x1] ss:$0 sm:$0xff] }
 0xfb6   :  { %v8377_v13 = vpop.eup %8376 }
 0xfb7   :  { %v2431_v15 = vsel %vm747_vm1, %v8377_v13, 0.0 }
 0xfb8   :  { %2432 = vadd.xlane.f32.xlu1 %v2431_v15 }
 0xfba   :  { %v8379_v16 = vpop.eup %8378 }
 0xfbb   :  { %v8381_v17 = vpop.eup %8380  ;;  %v2437_v18 = vsel %vm747_vm1, %v8379_v16, 0.0 }
 0xfbc   :  { %2438 = vadd.xlane.f32.xlu1 %v2437_v18  ;;  %v2434_v19 = vsel %vm747_vm1, %v8381_v17, 0.0  ;;  %v3113_v18 = vld [vmem:[#allocation34 + $0x18] sm:$0xff] }
 0xfbd   :  { %2435 = vadd.xlane.f32.xlu0 %v2434_v19  ;;  %v3112_v19 = vld [vmem:[#allocation34 + $0x10] sm:$0xff] }
 0xfcd   :  { %2600 = vrot.lane.b32.xlu1 %v9959_v38, %s9437_s18  ;;  %v2086_v38 = vld [vmem:[#allocation19 + $0x38] sm:$0xff] }
 0xfd3   :  { %2676 = vrot.lane.b32.xlu0 %v9964_v40, %s9437_s18  ;;  %v2084_v40 = vld [vmem:[#allocation19 + $0x28] sm:$0xff] }
 0xfdd   :  { %v2430_v20 = vpop.xlane.xlu0 %2429 }
 0xfde   :  { %8382 = vrcp.f32 %v2430_v20 }
 0xfeb   :  { %v8383_v21 = vpop.eup %8382 }
 0xfec   :  { %v2444_v22 = vmul.f32 %v8383_v21, %v8375_v63  ;;  %v3111_v21 = vld [vmem:[#allocation34 + $0x8] sm:$0xff] }
 0xfee   :  { %7880 = vmatmul.mubr.msk.f32.vlgmr.msra.gmra.mxu0 %vm747_vm1, %v2444_v22  ;;  %v3110_v22 = vld [vmem:[#allocation34] sm:$0xff] }
 0xfef   :  { %7889 = vmatprep.mubr.msk.f32.mxu0 %vm9432_vm0, %v9431_v0 }
0x1041   :  { %v2433_v23 = vpop.xlane.xlu1 %2432 }
0x1042   :  { %8384 = vrcp.f32 %v2433_v23 }
0x1045   :  { %v2439_v24 = vpop.xlane.xlu1 %2438 }
0x1046   :  { %8386 = vrcp.f32 %v2439_v24  ;;  %v2436_v26 = vpop.xlane.xlu0 %2435  ;;  %v2888_v24 = vld [vmem:[#allocation28 + $0x30] sm:$0xff] }
0x1047   :  { %8388 = vrcp.f32 %v2436_v26  ;;  %v2887_v26 = vld [vmem:[#allocation28 + $0x28] sm:$0xff] }
0x1049   :  { %v2601_v27 = vpop.permute.xlu1 %2600 }
0x104a   :  { %7888 = vmatpush3.msra.mxu0 %v2601_v27  ;;  %v2677_v30 = vpop.permute.xlu0 %2676  ;;  %v2886_v27 = vld [vmem:[#allocation28 + $0x20] sm:$0xff] }
0x104b   :  { %7897 = vmatprep.subr.mxu0 %v9431_v0 }
0x104f   :  { %v8385_v28 = vpop.eup %8384 }
0x1050   :  { %v2445_v29 = vmul.f32 %v8385_v28, %v8377_v13  ;;  %v7436_v13 = vld [vmem:[#allocation24 + $0x1] ss:$0 sm:$0xff]  ;;  %v7437_v28 = vld [vmem:[#allocation27 + $0x1] ss:$0 sm:$0xff] }
0x1052   :  { %7885 = vmatmul.mubr.msk.f32.vlgmr.msra.gmra.mxu1 %vm747_vm1, %v2445_v29 }
0x1053   :  { %v8387_v31 = vpop.eup %8386  ;;  %7893 = vmatpush3.msra.mxu1 %v2677_v30  ;;  %7894 = vmatprep.mubr.msk.f32.mxu1 %vm9432_vm0, %v9431_v0 }
0x1054   :  { %v8389_v32 = vpop.eup %8388  ;;  %v2447_v34 = vmul.f32 %v8387_v31, %v8379_v16  ;;  %7908 = vmatprep.subr.mxu1 %v9431_v0  ;;  %v908_v16 = vmax.f32 %v905_v11, 0.0 }
0x1055   :  { %v2446_v35 = vmul.f32 %v8389_v32, %v8381_v17 }
0x1056   :  { %7895 = vmatmul.mubr.msk.f32.vlgmr.msra.gmra.mxu1 %vm747_vm1, %v2447_v34  ;;  %v909_v20 = vmul.f32 5.656854, %v908_v16  ;;  %v7445_v34 = vld [vmem:[#allocation36] ss:$0 sm:$0xff] }
0x1057   :  { %7890 = vmatmul.mubr.msk.f32.vlgmr.msra.gmra.mxu0 %vm747_vm1, %v2446_v35  ;;  %7916 = vmatprep.mubr.msk.f32.mxu1 %vm9432_vm0, %v9431_v0 }
0x1058   :  { %7905 = vmatprep.mubr.msk.f32.mxu0 %vm9432_vm0, %v9431_v0  ;;  %7898 = vmatpush3.msra.mxu0 %v2086_v38  ;;  %v10051_v23 = vadd.f32 %v909_v20, %v731_v25 }
0x1059   :  { %7899 = vmatprep.subr.mxu0 %v9431_v0  ;;  %7909 = vmatpush3.msra.mxu1 %v2882_v1 }
0x105a   :  { %7900 = vmatpush3.msra.mxu0 %v2085_v39  ;;  %7910 = vmatprep.subr.mxu1 %v9431_v0 }
0x105b   :  { %7901 = vmatprep.subr.mxu0 %v9431_v0  ;;  %7911 = vmatpush3.msra.mxu1 %v2881_v2 }
0x105c   :  { %7902 = vmatpush3.msra.mxu0 %v2084_v40  ;;  %7912 = vmatprep.subr.mxu1 %v9431_v0 }
0x105d   :  { %7903 = vmatprep.subr.mxu0 %v9431_v0  ;;  %7913 = vmatpush3.msra.mxu1 %v2880_v3 }
0x105e   :  { %7904 = vmatpush3.msra.mxu0 %v2083_v41  ;;  %7914 = vmatprep.subr.mxu1 %v9431_v0 }
0x105f   :  { %7919 = vmatprep.subr.mxu0 %v9431_v0 }
0x10ae   :  { %v2520_v36 = vpop.f32.mrf.mxu0 }
0x10b0   :  { %v7881_v37 = vpop.f32.mrf.mxu0 }
0x1112   :  { %v2596_v42 = vpop.f32.mrf.mxu1 }
0x1113   :  { %2753 = vrot.lane.b32.xlu1 %v2596_v42, %s9393_s23 }
0x1114   :  { %v7886_v43 = vpop.f32.mrf.mxu1 }
0x1116   :  { %v2748_v44 = vpop.f32.mrf.mxu1 }
0x1117   :  { %v2672_v45 = vpop.f32.mrf.mxu0  ;;  %2761 = vrot.lane.b32.xlu1 %v2748_v44, %s9438_s22 }
0x1118   :  { %2757 = vrot.lane.b32.xlu0 %v2672_v45, %s9396_s7  ;;  %v7896_v46 = vpop.f32.mrf.mxu1 }
0x1119   :  { %v7891_v47 = vpop.f32.mrf.mxu0 }
0x111a   :  { %v911_v47 = vlaneseq }
0x1185   :  { %v2754_v48 = vpop.permute.xlu1 %2753 }
0x1186   :  { %v2764_v50 = vsel %vm747_vm1, %v2520_v36, %v2754_v48  ;;  %v912_v48 = vshrl.u32 %v911_v47, 7 }
0x1189   :  { %v2762_v49 = vpop.permute.xlu1 %2761 }
0x118a   :  { %v2758_v51 = vpop.permute.xlu0 %2757 }
0x118b   :  { %v2765_v52 = vsel %vm1683_vm5, %v2764_v50, %v2758_v51 }
0x118c   :  { %v2766_v14 = vsel %vm1685_vm6, %v2765_v52, %v2762_v49  ;;  %v914_v49 = vand.u32 127, %v911_v47 }
0x118d   :  { %7906 = vmatmul.mubr.msk.f32.vlgmr.msra.gmra.mxu0 %vm928_vm2, %v2766_v14 }
0x118e   :  { %7927 = vmatprep.mubr.msk.f32.mxu0 %vm9432_vm0, %v9431_v0  ;;  %7920 = vmatpush3.msra.mxu0 %v2889_v4  ;;  %vm915_vm7 = vcmp.gt.s32.totalorder %v914_v49, %v912_v48  ;;  %v3197_v49 = vld [vmem:[#allocation37 + $0x18] sm:$0xff] }
0x118f   :  { %7921 = vmatprep.subr.mxu0 %v9431_v0  ;;  %v10110_v51 = vsel %vm915_vm7, -1e+30, %v9431_v0 }
0x1190   :  { %7922 = vmatpush3.msra.mxu0 %v2888_v24 }
0x1191   :  { %7923 = vmatprep.subr.mxu0 %v9431_v0 }
0x1192   :  { %7924 = vmatpush3.msra.mxu0 %v2887_v26 }
0x1193   :  { %7925 = vmatprep.subr.mxu0 %v9431_v0 }
0x1194   :  { %7926 = vmatpush3.msra.mxu0 %v2886_v27 }
0x1195   :  { %7941 = vmatprep.subr.mxu0 %v9431_v0 }
0x124d   :  { %v2842_v54 = vpop.f32.mrf.mxu0 }
0x124e   :  { %v2843_v55 = vadd.f32 %v7433_v53, %v2842_v54 }
0x124f   :  { %v7907_v56 = vpop.f32.mrf.mxu0 }
0x1250   :  { %v2846_v57 = vadd.f32 %v2843_v55, %v9949_v33  ;;  %v2879_v33 = vld [vmem:[#allocation25 + $0x20] sm:$0xff] }
0x1251   :  { %7915 = vmatpush3.msra.mxu1 %v2879_v33 }
0x1252   :  { %v2851_v58 = vsel %vm928_vm2, %v2846_v57, 0.0  ;;  %7930 = vmatprep.subr.mxu1 %v9431_v0 }
0x1253   :  { %2852 = vadd.xlane.f32.xlu0 %v2851_v58 }
0x12dc   :  { %v2853_v59 = vpop.xlane.xlu0 %2852 }
0x12dd   :  { %v2854_v60 = vmul.f32 0.03125, %v2853_v59 }
0x12df   :  { %v2855_v61 = vsub.f32 %v2846_v57, %v2854_v60 }
0x12e1   :  { %v2856_v62 = vmul.f32 %v2855_v61, %v2855_v61 }
0x12e3   :  { %v2857_v63 = vsel %vm928_vm2, %v2856_v62, 0.0 }
0x12e4   :  { %2858 = vadd.xlane.f32.xlu1 %v2857_v63 }
0x136d   :  { %v2859_v5 = vpop.xlane.xlu1 %2858 }
0x136e   :  { %v2860_v6 = vmul.f32 0.03125, %v2859_v5 }
0x1370   :  { %v2861_v7 = vadd.f32 1e-05, %v2860_v6 }
0x1372   :  { %8390 = vrsqrt.f32 %v2861_v7 }
0x137f   :  { %v8391_v9 = vpop.eup %8390 }
0x1380   :  { %v2863_v12 = vmul.f32 %v8391_v9, %v2855_v61 }
0x1382   :  { %v2870_v15 = vmul.f32 %v7435_v10, %v2863_v12 }
0x1384   :  { %v10042_v17 = vadd.f32 %v7436_v13, %v2870_v15 }
0x1386   :  { %7917 = vmatmul.mubr.msk.f32.vlgmr.msra.gmra.mxu1 %vm928_vm2, %v10042_v17 }
0x1387   :  { %7931 = vmatpush3.msra.mxu1 %v3113_v18  ;;  %7938 = vmatprep.mubr.msk.f32.mxu1 %vm9432_vm0, %v9431_v0 }
0x1388   :  { %7932 = vmatprep.subr.mxu1 %v9431_v0 }
0x1389   :  { %7933 = vmatpush3.msra.mxu1 %v3112_v19 }
0x138a   :  { %7934 = vmatprep.subr.mxu1 %v9431_v0 }
0x138b   :  { %7935 = vmatpush3.msra.mxu1 %v3111_v21 }
0x138c   :  { %7936 = vmatprep.subr.mxu1 %v9431_v0 }
0x138d   :  { %7937 = vmatpush3.msra.mxu1 %v3110_v22 }
0x138e   :  { %7939 = vmatmul.mubr.msk.f32.vlgmr.msra.gmra.mxu1 %vm928_vm2, %v10051_v23  ;;  %7946 = vmatprep.subr.mxu1 %v9431_v0 }
0x138f   :  { %7948 = vmatprep.mubr.msk.f32.mxu1 %vm9432_vm0, %v9431_v0 }
0x1446   :  { %v2967_v29 = vpop.f32.mrf.mxu1 }
0x1447   :  { %v2968_v30 = vadd.f32 %v7437_v28, %v2967_v29 }
0x1448   :  { %v7918_v31 = vpop.f32.mrf.mxu1 }
0x1449   :  { %v2971_v32 = vmax.f32 %v2968_v30, 0.0 }
0x144b   :  { %7928 = vmatmul.mubr.msk.f32.vlgmr.msra.gmra.mxu0 %vm928_vm2, %v2971_v32 }
0x144c   :  { %7943 = vmatprep.mubr.msk.f32.mxu0 %vm9432_vm0, %v9431_v0 }
0x144e   :  { %v3190_v35 = vpop.f32.mrf.mxu1 }
0x144f   :  { %v10065_v36 = vadd.f32 %v7445_v34, %v3190_v35 }
0x1450   :  { %v7940_v37 = vpop.f32.mrf.mxu1 }
0x1451   :  { %3202 = vrot.lane.b32.xlu1 %v10065_v36, %s9436_s16  ;;  %3200 = vrot.lane.b32.xlu0 %v10065_v36, %s9434_s30 }
0x1455   :  { %3206 = vrot.lane.b32.xlu1 %v10065_v36, %s9435_s9  ;;  %3204 = vrot.lane.b32.xlu0 %v10065_v36, %s9433_s15 }
0x14c3   :  { %v10075_v38 = vpop.permute.xlu1 %3202  ;;  %v3201_v39 = vpop.permute.xlu0 %3200 }
0x14c4   :  { %3358 = vrot.lane.b32.xlu1 %v10075_v38, %s9435_s9  ;;  %3282 = vrot.lane.b32.xlu0 %v3201_v39, %s9435_s9 }
0x14c7   :  { %v3207_v40 = vpop.permute.xlu1 %3206  ;;  %v10080_v41 = vpop.permute.xlu0 %3204 }
0x14c8   :  { %7942 = vmatpush3.xpose.msk.msra.mxu0 %vm747_vm1, %v3207_v40  ;;  %3434 = vrot.lane.b32.xlu0 %v10080_v41, %s9435_s9 }
0x14c9   :  { %7951 = vmatprep.subr.mxu0 %v9431_v0 }
0x14cb   :  { %7944 = vmatmul.mubr.msk.f32.vlgmr.msra.gmra.mxu0 %vm747_vm1, %v10065_v36 }
0x14cc   :  { %7953 = vmatprep.mubr.msk.f32.mxu0 %vm9432_vm0, %v9431_v0 }
0x150b   :  { %v10090_v42 = vpop.f32.mrf.mxu0 }
0x150d   :  { %v7929_v43 = vpop.f32.mrf.mxu0 }
0x1536   :  { %v3359_v44 = vpop.permute.xlu1 %3358  ;;  %v3283_v45 = vpop.permute.xlu0 %3282 }
0x1537   :  { %7947 = vmatpush3.xpose.msk.msra.mxu1 %vm747_vm1, %v3283_v45  ;;  %7952 = vmatpush3.xpose.msk.msra.mxu0 %vm747_vm1, %v3359_v44 }
0x1538   :  { %7956 = vmatprep.subr.mxu1 %v9431_v0  ;;  %7961 = vmatprep.subr.mxu0 %v9431_v0 }
0x153a   :  { %7949 = vmatmul.mubr.msk.f32.vlgmr.msra.gmra.mxu1 %vm747_vm1, %v3201_v39  ;;  %7954 = vmatmul.mubr.msk.f32.vlgmr.msra.gmra.mxu0 %vm747_vm1, %v10075_v38  ;;  %v3435_v46 = vpop.permute.xlu0 %3434 }
0x153b   :  { %7957 = vmatpush3.xpose.msk.msra.mxu1 %vm747_vm1, %v3435_v46  ;;  %7958 = vmatprep.mubr.msk.f32.mxu1 %vm9432_vm0, %v9431_v0 }
0x153c   :  { %7966 = vmatprep.subr.mxu1 %v9431_v0  ;;  %7963 = vmatprep.mubr.msk.f32.mxu0 %vm9432_vm0, %v9431_v0 }
0x153e   :  { %7959 = vmatmul.mubr.msk.f32.vlgmr.msra.gmra.mxu1 %vm747_vm1, %v10080_v41 }
0x153f   :  { %7968 = vmatprep.mubr.msk.f32.mxu1 %vm9432_vm0, %v9431_v0 }
0x158b   :  { %v3278_v50 = vpop.f32.mrf.mxu0 }
0x158c   :  { %v3510_v52 = vmul.f32 0.35355338, %v3278_v50  ;;  %v3196_v50 = vld [vmem:[#allocation37 + $0x10] sm:$0xff] }
0x158d   :  { %v7945_v14 = vpop.f32.mrf.mxu0 }
0x158e   :  { %v3514_v53 = vadd.f32 %v3510_v52, %v10110_v51  ;;  %v3195_v52 = vld [vmem:[#allocation37 + $0x8] sm:$0xff]  ;;  %v3194_v14 = vld [vmem:[#allocation37] sm:$0xff] }
0x1590   :  { %v3518_v54 = vsel %vm747_vm1, %v3514_v53, -inf }
0x1591   :  { %3519 = vmax.xlane.f32.xlu1 %v3518_v54 }
0x15fa   :  { %v3354_v55 = vpop.f32.mrf.mxu1  ;;  %v3430_v56 = vpop.f32.mrf.mxu0 }
0x15fb   :  { %v3511_v57 = vmul.f32 0.35355338, %v3354_v55  ;;  %v3512_v58 = vmul.f32 0.35355338, %v3430_v56 }
0x15fc   :  { %v7950_v59 = vpop.f32.mrf.mxu1  ;;  %v7955_v60 = vpop.f32.mrf.mxu0 }
0x15fd   :  { %v3515_v61 = vadd.f32 %v3511_v57, %v10110_v51  ;;  %v3516_v2 = vadd.f32 %v3512_v58, %v10110_v51  ;;  %v7439_v59 = vld [vmem:[#allocation30 + $0x1] ss:$0 sm:$0xff] }
0x15fe   :  { %v3506_v62 = vpop.f32.mrf.mxu1  ;;  %v3048_v60 = vadd.f32 %v7439_v59, %v10090_v42 }
0x15ff   :  { %v3513_v63 = vmul.f32 0.35355338, %v3506_v62  ;;  %v3521_v1 = vsel %vm747_vm1, %v3515_v61, -inf  ;;  %v3524_v5 = vsel %vm747_vm1, %v3516_v2, -inf }
0x1600   :  { %3522 = vmax.xlane.f32.xlu0 %v3521_v1  ;;  %v7960_v3 = vpop.f32.mrf.mxu1 }
0x1601   :  { %v3517_v33 = vadd.f32 %v3513_v63, %v10110_v51 }
0x1603   :  { %v3527_v4 = vsel %vm747_vm1, %v3517_v33, -inf }
0x1604   :  { %3528 = vmax.xlane.f32.xlu1 %v3527_v4  ;;  %3525 = vmax.xlane.f32.xlu0 %v3524_v5 }
0x1615   :  { %3638 = vrot.lane.b32.xlu1 %v3201_v39, %s9437_s18 }
0x161a   :  { %3562 = vrot.lane.b32.xlu0 %v10065_v36, %s9437_s18  ;;  %v3520_v6 = vpop.xlane.xlu1 %3519 }
0x161b   :  { %v3530_v7 = vsub.f32 %v3514_v53, %v3520_v6 }
0x161d   :  { %v3534_v8 = vmul.f32 1.442695, %v3530_v7 }
0x161f   :  { %8392 = vpow2.f32 %v3534_v8 }
0x162c   :  { %v8393_v9 = vpop.eup %8392 }
0x162d   :  { %v3542_v10 = vsel %vm747_vm1, %v8393_v9, 0.0 }
0x1639   :  { %3543 = vadd.xlane.f32.xlu0 %v3542_v10 }
0x1689   :  { %v3523_v11 = vpop.xlane.xlu0 %3522 }
0x168a   :  { %v3531_v12 = vsub.f32 %v3515_v61, %v3523_v11  ;;  %v3051_v61 = vadd.f32 %v3048_v60, %v10042_v17 }
0x168c   :  { %v3536_v13 = vmul.f32 1.442695, %v3531_v12  ;;  %v3056_v62 = vsel %vm928_vm2, %v3051_v61, 0.0 }
0x168d   :  { %v3529_v15 = vpop.xlane.xlu1 %3528  ;;  %v3526_v16 = vpop.xlane.xlu0 %3525 }
0x168e   :  { %8394 = vpow2.f32 %v3536_v13  ;;  %v3533_v18 = vsub.f32 %v3517_v33, %v3529_v15  ;;  %v3532_v19 = vsub.f32 %v3516_v2, %v3526_v16  ;;  %v7459_v15 = vld [vmem:[#allocation39] ss:$0 sm:$0xff]  ;;  %v7441_v16 = vld [vmem:[#allocation31 + $0x1] ss:$0 sm:$0xff] }
0x1690   :  { %v3540_v20 = vmul.f32 1.442695, %v3533_v18  ;;  %v3538_v21 = vmul.f32 1.442695, %v3532_v19  ;;  %v7442_v19 = vld [vmem:[#allocation33 + $0x1] ss:$0 sm:$0xff] }
0x1691   :  { %v3639_v25 = vpop.permute.xlu1 %3638  ;;  %v3563_v22 = vpop.permute.xlu0 %3562 }
0x1692   :  { %8396 = vpow2.f32 %v3540_v20  ;;  %7962 = vmatpush3.msra.mxu0 %v3563_v22  ;;  %7967 = vmatpush3.msra.mxu1 %v3639_v25 }
0x1693   :  { %8398 = vpow2.f32 %v3538_v21  ;;  %7971 = vmatprep.subr.mxu0 %v9431_v0  ;;  %7976 = vmatprep.subr.mxu1 %v9431_v0 }
0x169b   :  { %v8395_v24 = vpop.eup %8394 }
0x169c   :  { %v3545_v26 = vsel %vm747_vm1, %v8395_v24, 0.0 }
0x169d   :  { %3546 = vadd.xlane.f32.xlu1 %v3545_v26 }
0x169f   :  { %v8397_v27 = vpop.eup %8396 }
0x16a0   :  { %v8399_v28 = vpop.eup %8398  ;;  %v3551_v29 = vsel %vm747_vm1, %v8397_v27, 0.0 }
0x16a1   :  { %3552 = vadd.xlane.f32.xlu1 %v3551_v29  ;;  %v3548_v30 = vsel %vm747_vm1, %v8399_v28, 0.0 }
0x16a2   :  { %3549 = vadd.xlane.f32.xlu0 %v3548_v30 }
0x16b2   :  { %3714 = vrot.lane.b32.xlu1 %v10075_v38, %s9437_s18 }
0x16b8   :  { %3790 = vrot.lane.b32.xlu0 %v10080_v41, %s9437_s18 }
0x16c2   :  { %v3544_v31 = vpop.xlane.xlu0 %3543 }
0x16c3   :  { %8400 = vrcp.f32 %v3544_v31 }
0x16d0   :  { %v8401_v32 = vpop.eup %8400 }
0x16d1   :  { %v3558_v34 = vmul.f32 %v8401_v32, %v8393_v9 }
0x16d3   :  { %7964 = vmatmul.mubr.msk.f32.vlgmr.msra.gmra.mxu0 %vm747_vm1, %v3558_v34 }
0x16d4   :  { %7973 = vmatprep.mubr.msk.f32.mxu0 %vm9432_vm0, %v9431_v0 }
0x1726   :  { %v3547_v35 = vpop.xlane.xlu1 %3546 }
0x1727   :  { %8402 = vrcp.f32 %v3547_v35 }
0x172a   :  { %v3553_v36 = vpop.xlane.xlu1 %3552 }
0x172b   :  { %8404 = vrcp.f32 %v3553_v36  ;;  %v3550_v37 = vpop.xlane.xlu0 %3549 }
0x172c   :  { %8406 = vrcp.f32 %v3550_v37 }
0x172e   :  { %v3715_v39 = vpop.permute.xlu1 %3714 }
0x172f   :  { %7972 = vmatpush3.msra.mxu0 %v3715_v39  ;;  %v3791_v41 = vpop.permute.xlu0 %3790  ;;  %v4077_v39 = vld [vmem:[#allocation46 + $0x18] sm:$0xff] }
0x1730   :  { %7981 = vmatprep.subr.mxu0 %v9431_v0 }
0x1734   :  { %v8403_v38 = vpop.eup %8402 }
0x1735   :  { %v3559_v40 = vmul.f32 %v8403_v38, %v8395_v24  ;;  %v3993_v38 = vld [vmem:[#allocation43 + $0x18] sm:$0xff] }
0x1737   :  { %7969 = vmatmul.mubr.msk.f32.vlgmr.msra.gmra.mxu1 %vm747_vm1, %v3559_v40  ;;  %v4075_v40 = vld [vmem:[#allocation46 + $0x8] sm:$0xff] }
0x1738   :  { %v8405_v43 = vpop.eup %8404  ;;  %7977 = vmatpush3.msra.mxu1 %v3791_v41  ;;  %7978 = vmatprep.mubr.msk.f32.mxu1 %vm9432_vm0, %v9431_v0  ;;  %v3992_v41 = vld [vmem:[#allocation43 + $0x10] sm:$0xff] }
0x1739   :  { %v8407_v44 = vpop.eup %8406  ;;  %v3561_v45 = vmul.f32 %v8405_v43, %v8397_v27  ;;  %7992 = vmatprep.subr.mxu1 %v9431_v0  ;;  %v4074_v43 = vld [vmem:[#allocation46] sm:$0xff] }
0x173a   :  { %v3560_v46 = vmul.f32 %v8407_v44, %v8399_v28  ;;  %v3991_v44 = vld [vmem:[#allocation43 + $0x8] sm:$0xff] }
0x173b   :  { %7979 = vmatmul.mubr.msk.f32.vlgmr.msra.gmra.mxu1 %vm747_vm1, %v3561_v45  ;;  %v3990_v45 = vld [vmem:[#allocation43] sm:$0xff] }
0x173c   :  { %7974 = vmatmul.mubr.msk.f32.vlgmr.msra.gmra.mxu0 %vm747_vm1, %v3560_v46  ;;  %8000 = vmatprep.mubr.msk.f32.mxu1 %vm9432_vm0, %v9431_v0 }
0x173d   :  { %7989 = vmatprep.mubr.msk.f32.mxu0 %vm9432_vm0, %v9431_v0  ;;  %7982 = vmatpush3.msra.mxu0 %v3197_v49 }
0x173e   :  { %7983 = vmatprep.subr.mxu0 %v9431_v0  ;;  %7993 = vmatpush3.msra.mxu1 %v3993_v38 }
0x173f   :  { %7984 = vmatpush3.msra.mxu0 %v3196_v50  ;;  %7994 = vmatprep.subr.mxu1 %v9431_v0 }
0x1740   :  { %7985 = vmatprep.subr.mxu0 %v9431_v0  ;;  %7995 = vmatpush3.msra.mxu1 %v3992_v41 }
0x1741   :  { %7986 = vmatpush3.msra.mxu0 %v3195_v52  ;;  %7996 = vmatprep.subr.mxu1 %v9431_v0 }
0x1742   :  { %7987 = vmatprep.subr.mxu0 %v9431_v0  ;;  %7997 = vmatpush3.msra.mxu1 %v3991_v44 }
0x1743   :  { %7988 = vmatpush3.msra.mxu0 %v3194_v14  ;;  %7998 = vmatprep.subr.mxu1 %v9431_v0 }
0x1744   :  { %8003 = vmatprep.subr.mxu0 %v9431_v0  ;;  %7999 = vmatpush3.msra.mxu1 %v3990_v45 }
0x1745   :  { %8014 = vmatprep.subr.mxu1 %v9431_v0 }
0x1793   :  { %v3634_v47 = vpop.f32.mrf.mxu0 }
0x1795   :  { %v7965_v48 = vpop.f32.mrf.mxu0 }
0x17f7   :  { %v3710_v53 = vpop.f32.mrf.mxu1 }
0x17f8   :  { %3867 = vrot.lane.b32.xlu1 %v3710_v53, %s9393_s23  ;;  %v7443_v53 = vld [vmem:[#allocation10] ss:$0 sm:$0xff] }
0x17f9   :  { %v7970_v54 = vpop.f32.mrf.mxu1 }
0x17fb   :  { %v3862_v55 = vpop.f32.mrf.mxu1 }
0x17fc   :  { %v3786_v56 = vpop.f32.mrf.mxu0  ;;  %3875 = vrot.lane.b32.xlu1 %v3862_v55, %s9438_s22  ;;  %v7444_v55 = vld [vmem:[#allocation12] ss:$0 sm:$0xff] }
0x17fd   :  { %3871 = vrot.lane.b32.xlu0 %v3786_v56, %s9396_s7  ;;  %v7980_v57 = vpop.f32.mrf.mxu1 }
0x17fe   :  { %v7975_v58 = vpop.f32.mrf.mxu0 }
0x17ff   :  { %v7461_v58 = vld [vmem:[#allocation40] ss:$0 sm:$0xff] }
0x181c   :  { %3057 = vadd.xlane.f32.xlu0 %v3056_v62 }
0x186a   :  { %v3868_v63 = vpop.permute.xlu1 %3867 }
0x186b   :  { %v3878_v2 = vsel %vm747_vm1, %v3634_v47, %v3868_v63 }
0x186e   :  { %v3876_v1 = vpop.permute.xlu1 %3875 }
0x186f   :  { %v3872_v3 = vpop.permute.xlu0 %3871 }
0x1870   :  { %v3879_v33 = vsel %vm1683_vm5, %v3878_v2, %v3872_v3 }
0x1871   :  { %v3880_v4 = vsel %vm1685_vm6, %v3879_v33, %v3876_v1  ;;  %v7465_v1 = vld [vmem:[#allocation48] ss:$0 sm:$0xff] }
0x1872   :  { %7990 = vmatmul.mubr.msk.f32.vlgmr.msra.gmra.mxu0 %vm928_vm2, %v3880_v4  ;;  %v7463_v4 = vld [vmem:[#allocation45] ss:$0 sm:$0xff] }
0x1873   :  { %8011 = vmatprep.mubr.msk.f32.mxu0 %vm9432_vm0, %v9431_v0  ;;  %8004 = vmatpush3.msra.mxu0 %v4077_v39 }
0x1874   :  { %8005 = vmatprep.subr.mxu0 %v9431_v0 }
0x18a5   :  { %v3058_v42 = vpop.xlane.xlu0 %3057 }
0x18a6   :  { %v3059_v5 = vmul.f32 0.03125, %v3058_v42 }
0x18a8   :  { %v3060_v17 = vsub.f32 %v3051_v61, %v3059_v5  ;;  %v7462_v61 = vld [vmem:[#allocation42] ss:$0 sm:$0xff] }
0x18aa   :  { %v3061_v6 = vmul.f32 %v3060_v17, %v3060_v17 }
0x18ac   :  { %v3062_v7 = vsel %vm928_vm2, %v3061_v6, 0.0 }
0x18ad   :  { %3063 = vadd.xlane.f32.xlu1 %v3062_v7 }
0x1932   :  { %v3956_v8 = vpop.f32.mrf.mxu0 }
0x1933   :  { %v3957_v20 = vadd.f32 %v7459_v15, %v3956_v8 }
0x1934   :  { %v7991_v9 = vpop.f32.mrf.mxu0 }
0x1935   :  { %v3960_v24 = vadd.f32 %v3957_v20, %v10051_v23  ;;  %v4076_v23 = vld [vmem:[#allocation46 + $0x10] sm:$0xff] }
0x1936   :  { %v3064_v10 = vpop.xlane.xlu1 %3063  ;;  %8006 = vmatpush3.msra.mxu0 %v4076_v23 }
0x1937   :  { %v3065_v11 = vmul.f32 0.03125, %v3064_v10  ;;  %v3963_v26 = vsel %vm928_vm2, %v3960_v24, 0.0  ;;  %8007 = vmatprep.subr.mxu0 %v9431_v0 }
0x1938   :  { %8008 = vmatpush3.msra.mxu0 %v4075_v40 }
0x1939   :  { %v3066_v12 = vadd.f32 1e-05, %v3065_v11  ;;  %8009 = vmatprep.subr.mxu0 %v9431_v0 }
0x193a   :  { %8010 = vmatpush3.msra.mxu0 %v4074_v43 }
0x193b   :  { %8408 = vrsqrt.f32 %v3066_v12  ;;  %8024 = vmatprep.subr.mxu0 %v9431_v0 }
0x1948   :  { %v8409_v13 = vpop.eup %8408 }
0x1949   :  { %v3068_v18 = vmul.f32 %v8409_v13, %v3060_v17 }
0x194b   :  { %v3075_v21 = vmul.f32 %v7441_v16, %v3068_v18 }
0x194d   :  { %v3082_v25 = vadd.f32 %v7442_v19, %v3075_v21 }
0x194f   :  { %v3083_v22 = vsel %vm928_vm2, %v3082_v25, 0.0 }
0x1950   :  { %3084 = vadd.xlane.f32.xlu0 %v3083_v22 }
0x1954   :  { %3964 = vadd.xlane.f32.xlu0 %v3963_v26 }
0x19d9   :  { %v3085_v27 = vpop.xlane.xlu0 %3084 }
0x19da   :  { %v3086_v28 = vmul.f32 0.03125, %v3085_v27 }
0x19dc   :  { %v3087_v29 = vsub.f32 %v3082_v25, %v3086_v28 }
0x19dd   :  { %v3965_v30 = vpop.xlane.xlu0 %3964 }
0x19de   :  { %v3966_v31 = vmul.f32 0.03125, %v3965_v30  ;;  %v3088_v32 = vmul.f32 %v3087_v29, %v3087_v29 }
0x19e0   :  { %v3967_v34 = vsub.f32 %v3960_v24, %v3966_v31  ;;  %v3089_v35 = vsel %vm928_vm2, %v3088_v32, 0.0 }
0x19e1   :  { %3090 = vadd.xlane.f32.xlu1 %v3089_v35 }
0x19e2   :  { %v3968_v36 = vmul.f32 %v3967_v34, %v3967_v34 }
0x19e4   :  { %v3969_v37 = vsel %vm928_vm2, %v3968_v36, 0.0 }
0x19e5   :  { %3970 = vadd.xlane.f32.xlu0 %v3969_v37 }
0x1a6a   :  { %v3091_v46 = vpop.xlane.xlu1 %3090 }
0x1a6b   :  { %v3092_v47 = vmul.f32 0.03125, %v3091_v46 }
0x1a6d   :  { %v3093_v48 = vadd.f32 1e-05, %v3092_v47 }
0x1a6e   :  { %v3971_v49 = vpop.xlane.xlu0 %3970 }
0x1a6f   :  { %8410 = vrsqrt.f32 %v3093_v48  ;;  %v3972_v50 = vmul.f32 0.03125, %v3971_v49 }
0x1a71   :  { %v3973_v52 = vadd.f32 1e-05, %v3972_v50 }
0x1a73   :  { %8412 = vrsqrt.f32 %v3973_v52 }
0x1a7c   :  { %v8411_v14 = vpop.eup %8410 }
0x1a7d   :  { %v3095_v54 = vmul.f32 %v8411_v14, %v3087_v29 }
0x1a7f   :  { %v3102_v56 = vmul.f32 %v7443_v53, %v3095_v54 }
0x1a80   :  { %v8413_v57 = vpop.eup %8412 }
0x1a81   :  { %v3975_v59 = vmul.f32 %v8413_v57, %v3967_v34  ;;  %v10177_v60 = vadd.f32 %v7444_v55, %v3102_v56 }
0x1a83   :  { %8012 = vmatmul.mubr.msk.f32.vlgmr.msra.gmra.mxu0 %vm928_vm2, %v10177_v60  ;;  %v3982_v62 = vmul.f32 %v7461_v58, %v3975_v59 }
0x1a84   :  { %8026 = vmatprep.mubr.msk.f32.mxu0 %vm9432_vm0, %v9431_v0 }
0x1a85   :  { %v10183_v63 = vadd.f32 %v7462_v61, %v3982_v62 }
0x1a87   :  { %8001 = vmatmul.mubr.msk.f32.vlgmr.msra.gmra.mxu1 %vm928_vm2, %v10183_v63 }
0x1a88   :  { %8016 = vmatprep.mubr.msk.f32.mxu1 %vm9432_vm0, %v9431_v0 }
0x1b43   :  { %v4154_v2 = vpop.f32.mrf.mxu0 }
0x1b44   :  { %v4155_v3 = vadd.f32 %v7465_v1, %v4154_v2 }
0x1b45   :  { %v8013_v33 = vpop.f32.mrf.mxu0 }
0x1b46   :  { %4171 = vrot.lane.b32.xlu1 %v4155_v3, %s9434_s30  ;;  %8015 = vmatpush3.xpose.msk.msra.mxu1 %vm747_vm1, %v4155_v3 }
0x1b47   :  { %v4070_v42 = vpop.f32.mrf.mxu1  ;;  %8019 = vmatprep.subr.mxu1 %v9431_v0 }
0x1b48   :  { %v4071_v5 = vadd.f32 %v7463_v4, %v4070_v42 }
0x1b49   :  { %v8002_v17 = vpop.f32.mrf.mxu1 }
0x1b4a   :  { %4164 = vrot.lane.b32.xlu0 %v4071_v5, %s9434_s30  ;;  %4173 = vrot.lane.b32.xlu1 %v4155_v3, %s9436_s16 }
0x1b4b   :  { %8017 = vmatmul.mubr.msk.f32.vlgmr.msra.gmra.mxu1 %vm747_vm1, %v4071_v5 }
0x1b4c   :  { %8021 = vmatprep.mubr.msk.f32.mxu1 %vm9432_vm0, %v9431_v0 }
0x1b4e   :  { %4166 = vrot.lane.b32.xlu0 %v4071_v5, %s9436_s16  ;;  %4175 = vrot.lane.b32.xlu1 %v4155_v3, %s9433_s15 }
0x1b52   :  { %4168 = vrot.lane.b32.xlu1 %v4071_v5, %s9433_s15 }
0x1bb8   :  { %v10200_v6 = vpop.permute.xlu1 %4171 }
0x1bb9   :  { %8020 = vmatpush3.xpose.msk.msra.mxu1 %vm747_vm1, %v10200_v6 }
0x1bba   :  { %8029 = vmatprep.subr.mxu1 %v9431_v0 }
0x1bbc   :  { %v4165_v7 = vpop.permute.xlu0 %4164  ;;  %v10205_v8 = vpop.permute.xlu1 %4173 }
0x1bbd   :  { %8022 = vmatmul.mubr.msk.f32.vlgmr.msra.gmra.mxu1 %vm747_vm1, %v4165_v7  ;;  %8025 = vmatpush3.xpose.msk.msra.mxu0 %vm747_vm1, %v10205_v8  ;;  %v4160_v7 = vld [vmem:[#allocation49 + $0x10] sm:$0xff] }
0x1bbe   :  { %8031 = vmatprep.mubr.msk.f32.mxu1 %vm9432_vm0, %v9431_v0  ;;  %8034 = vmatprep.subr.mxu0 %v9431_v0 }
0x1bc0   :  { %v4167_v9 = vpop.permute.xlu0 %4166  ;;  %v4176_v10 = vpop.permute.xlu1 %4175 }
0x1bc1   :  { %8027 = vmatmul.mubr.msk.f32.vlgmr.msra.gmra.mxu0 %vm747_vm1, %v4167_v9  ;;  %8030 = vmatpush3.xpose.msk.msra.mxu1 %vm747_vm1, %v4176_v10  ;;  %v4158_v9 = vld [vmem:[#allocation49] sm:$0xff] }
0x1bc2   :  { %8036 = vmatprep.mubr.msk.f32.mxu0 %vm9432_vm0, %v9431_v0  ;;  %8039 = vmatprep.subr.mxu1 %v9431_v0 }
0x1bc4   :  { %v4169_v11 = vpop.permute.xlu1 %4168 }
0x1bc5   :  { %8032 = vmatmul.mubr.msk.f32.vlgmr.msra.gmra.mxu1 %vm747_vm1, %v4169_v11 }
0x1bc6   :  { %8041 = vmatprep.mubr.msk.f32.mxu1 %vm9432_vm0, %v9431_v0 }
0x1c0b   :  { %v4247_v12 = vpop.f32.mrf.mxu1 }
0x1c0c   :  { %v4473_v13 = vmul.f32 0.35355338, %v4247_v12 }
0x1c0d   :  { %v8018_v15 = vpop.f32.mrf.mxu1 }
0x1c0e   :  { %v4477_v16 = vsel %vm747_vm1, %v4473_v13, -inf }
0x1c0f   :  { %4478 = vmax.xlane.f32.xlu0 %v4477_v16 }
0x1c7d   :  { %v4321_v18 = vpop.f32.mrf.mxu1 }
0x1c7e   :  { %v4474_v19 = vmul.f32 0.35355338, %v4321_v18 }
0x1c7f   :  { %v8023_v20 = vpop.f32.mrf.mxu1 }
0x1c80   :  { %v4480_v21 = vsel %vm747_vm1, %v4474_v19, -inf }
0x1c81   :  { %4481 = vmax.xlane.f32.xlu1 %v4480_v21  ;;  %v4395_v25 = vpop.f32.mrf.mxu0 }
0x1c82   :  { %v4475_v22 = vmul.f32 0.35355338, %v4395_v25 }
0x1c83   :  { %v8028_v24 = vpop.f32.mrf.mxu0 }
0x1c84   :  { %v4483_v26 = vsel %vm747_vm1, %v4475_v22, -inf  ;;  %v7479_v24 = vld [vmem:[#allocation51] ss:$0 sm:$0xff] }
0x1c85   :  { %v4469_v27 = vpop.f32.mrf.mxu1  ;;  %4484 = vmax.xlane.f32.xlu0 %v4483_v26 }
0x1c86   :  { %v4476_v28 = vmul.f32 0.35355338, %v4469_v27 }
0x1c87   :  { %v8033_v29 = vpop.f32.mrf.mxu1 }
0x1c88   :  { %v4486_v30 = vsel %vm747_vm1, %v4476_v28, -inf }
0x1c89   :  { %4487 = vmax.xlane.f32.xlu0 %v4486_v30 }
0x1c92   :  { %4521 = vrot.lane.b32.xlu1 %v4155_v3, %s9435_s9 }
0x1c98   :  { %v4479_v31 = vpop.xlane.xlu0 %4478 }
0x1c99   :  { %v4489_v32 = vsub.f32 %v4473_v13, %v4479_v31 }
0x1c9b   :  { %v4493_v34 = vmul.f32 1.442695, %v4489_v32 }
0x1c9d   :  { %8414 = vpow2.f32 %v4493_v34 }
0x1caa   :  { %v8415_v35 = vpop.eup %8414 }
0x1cab   :  { %v4501_v36 = vsel %vm747_vm1, %v8415_v35, 0.0 }
0x1cb6   :  { %4502 = vadd.xlane.f32.xlu1 %v4501_v36 }
0x1d0a   :  { %v4482_v37 = vpop.xlane.xlu1 %4481 }
0x1d0b   :  { %v4490_v39 = vsub.f32 %v4474_v19, %v4482_v37  ;;  %v4952_v37 = vld [vmem:[#allocation55 + $0x18] sm:$0xff] }
0x1d0d   :  { %v4495_v23 = vmul.f32 1.442695, %v4490_v39  ;;  %v4951_v39 = vld [vmem:[#allocation55 + $0x10] sm:$0xff] }
0x1d0e   :  { %v4522_v38 = vpop.permute.xlu1 %4521  ;;  %v4485_v40 = vpop.xlane.xlu0 %4484 }
0x1d0f   :  { %8416 = vpow2.f32 %v4495_v23  ;;  %v4491_v41 = vsub.f32 %v4475_v22, %v4485_v40  ;;  %8035 = vmatpush3.msra.mxu0 %v4522_v38  ;;  %v4950_v23 = vld [vmem:[#allocation55 + $0x8] sm:$0xff]  ;;  %v4957_v38 = vld [vmem:[#allocation58 + $0x18] sm:$0xff] }
0x1d10   :  { %8044 = vmatprep.subr.mxu0 %v9431_v0 }
0x1d11   :  { %v4497_v43 = vmul.f32 1.442695, %v4491_v41 }
0x1d12   :  { %v4488_v44 = vpop.xlane.xlu0 %4487 }
0x1d13   :  { %8418 = vpow2.f32 %v4497_v43  ;;  %v4492_v45 = vsub.f32 %v4476_v28, %v4488_v44 }
0x1d15   :  { %v4499_v46 = vmul.f32 1.442695, %v4492_v45  ;;  %v7481_v45 = vld [vmem:[#allocation52] ss:$0 sm:$0xff] }
0x1d17   :  { %8420 = vpow2.f32 %v4499_v46 }
0x1d1c   :  { %v8417_v47 = vpop.eup %8416 }
0x1d1d   :  { %v4504_v48 = vsel %vm747_vm1, %v8417_v47, 0.0 }
0x1d1e   :  { %4505 = vadd.xlane.f32.xlu0 %v4504_v48 }
0x1d20   :  { %v8419_v49 = vpop.eup %8418 }
0x1d21   :  { %v4507_v50 = vsel %vm747_vm1, %v8419_v49, 0.0 }
0x1d22   :  { %4508 = vadd.xlane.f32.xlu1 %v4507_v50  ;;  %v4956_v50 = vld [vmem:[#allocation58 + $0x10] sm:$0xff] }
0x1d24   :  { %v8421_v52 = vpop.eup %8420 }
0x1d25   :  { %v4510_v14 = vsel %vm747_vm1, %v8421_v52, 0.0 }
0x1d26   :  { %4511 = vadd.xlane.f32.xlu0 %v4510_v14  ;;  %v4954_v14 = vld [vmem:[#allocation58] sm:$0xff] }
0x1d33   :  { %4673 = vrot.lane.b32.xlu1 %v10205_v8, %s9435_s9  ;;  %v4159_v8 = vld [vmem:[#allocation49 + $0x8] sm:$0xff] }
0x1d37   :  { %4749 = vrot.lane.b32.xlu1 %v4176_v10, %s9435_s9 }
0x1d3c   :  { %4597 = vrot.lane.b32.xlu0 %v10200_v6, %s9435_s9  ;;  %v4161_v6 = vld [vmem:[#allocation49 + $0x18] sm:$0xff] }
0x1d3f   :  { %v4503_v53 = vpop.xlane.xlu1 %4502 }
0x1d40   :  { %8422 = vrcp.f32 %v4503_v53  ;;  %v7483_v53 = vld [vmem:[#allocation57] ss:$0 sm:$0xff] }
0x1d4d   :  { %v8423_v54 = vpop.eup %8422 }
0x1d4e   :  { %v4517_v55 = vmul.f32 %v8423_v54, %v8415_v35 }
0x1d50   :  { %8037 = vmatmul.mubr.msk.f32.vlgmr.msra.gmra.mxu0 %vm747_vm1, %v4517_v55 }
0x1d51   :  { %8046 = vmatprep.mubr.msk.f32.mxu0 %vm9432_vm0, %v9431_v0 }
0x1da7   :  { %v4506_v56 = vpop.xlane.xlu0 %4505 }
0x1da8   :  { %8424 = vrcp.f32 %v4506_v56 }
0x1dab   :  { %v4509_v57 = vpop.xlane.xlu1 %4508 }
0x1dac   :  { %8426 = vrcp.f32 %v4509_v57 }
0x1daf   :  { %v4674_v58 = vpop.permute.xlu1 %4673  ;;  %v4512_v59 = vpop.xlane.xlu0 %4511 }
0x1db0   :  { %8428 = vrcp.f32 %v4512_v59  ;;  %8045 = vmatpush3.msra.mxu0 %v4674_v58  ;;  %v7485_v58 = vld [vmem:[#allocation60] ss:$0 sm:$0xff] }
0x1db1   :  { %8054 = vmatprep.subr.mxu0 %v9431_v0 }
0x1db3   :  { %v4598_v61 = vpop.permute.xlu0 %4597  ;;  %v4750_v2 = vpop.permute.xlu1 %4749 }
0x1db4   :  { %8040 = vmatpush3.msra.mxu1 %v4598_v61 }
0x1db5   :  { %v8425_v62 = vpop.eup %8424  ;;  %8049 = vmatprep.subr.mxu1 %v9431_v0 }
0x1db6   :  { %v4518_v1 = vmul.f32 %v8425_v62, %v8417_v47  ;;  %v7482_v47 = vld [vmem:[#allocation54] ss:$0 sm:$0xff] }
0x1db8   :  { %8042 = vmatmul.mubr.msk.f32.vlgmr.msra.gmra.mxu1 %vm747_vm1, %v4518_v1 }
0x1db9   :  { %v8427_v3 = vpop.eup %8426  ;;  %8050 = vmatpush3.msra.mxu1 %v4750_v2  ;;  %8051 = vmatprep.mubr.msk.f32.mxu1 %vm9432_vm0, %v9431_v0 }
0x1dba   :  { %v4519_v33 = vmul.f32 %v8427_v3, %v8419_v49  ;;  %8065 = vmatprep.subr.mxu1 %v9431_v0 }
0x1dbc   :  { %8047 = vmatmul.mubr.msk.f32.vlgmr.msra.gmra.mxu0 %vm747_vm1, %v4519_v33 }
0x1dbd   :  { %v8429_v4 = vpop.eup %8428  ;;  %8062 = vmatprep.mubr.msk.f32.mxu0 %vm9432_vm0, %v9431_v0  ;;  %8055 = vmatpush3.msra.mxu0 %v4161_v6  ;;  %v5151_v6 = vld [vmem:[#allocation34 + $0x30] sm:$0xff] }
0x1dbe   :  { %v4520_v42 = vmul.f32 %v8429_v4, %v8421_v52  ;;  %8056 = vmatprep.subr.mxu0 %v9431_v0  ;;  %v4955_v52 = vld [vmem:[#allocation58 + $0x8] sm:$0xff] }
0x1dbf   :  { %8057 = vmatpush3.msra.mxu0 %v4160_v7  ;;  %v5150_v7 = vld [vmem:[#allocation34 + $0x28] sm:$0xff] }
0x1dc0   :  { %8052 = vmatmul.mubr.msk.f32.vlgmr.msra.gmra.mxu1 %vm747_vm1, %v4520_v42  ;;  %8058 = vmatprep.subr.mxu0 %v9431_v0 }
0x1dc1   :  { %8073 = vmatprep.mubr.msk.f32.mxu1 %vm9432_vm0, %v9431_v0  ;;  %8059 = vmatpush3.msra.mxu0 %v4159_v8  ;;  %v5149_v8 = vld [vmem:[#allocation34 + $0x20] sm:$0xff] }
0x1dc2   :  { %8060 = vmatprep.subr.mxu0 %v9431_v0  ;;  %8066 = vmatpush3.msra.mxu1 %v4952_v37 }
0x1dc3   :  { %8061 = vmatpush3.msra.mxu0 %v4158_v9  ;;  %8067 = vmatprep.subr.mxu1 %v9431_v0 }
0x1dc4   :  { %8076 = vmatprep.subr.mxu0 %v9431_v0  ;;  %8068 = vmatpush3.msra.mxu1 %v4951_v39 }
0x1dc5   :  { %8069 = vmatprep.subr.mxu1 %v9431_v0 }
0x1dc6   :  { %8070 = vmatpush3.msra.mxu1 %v4950_v23 }
0x1dc7   :  { %8071 = vmatprep.subr.mxu1 %v9431_v0 }
0x1e10   :  { %v4593_v5 = vpop.f32.mrf.mxu0 }
0x1e12   :  { %v8038_v17 = vpop.f32.mrf.mxu0 }
0x1e13   :  { %v5152_v17 = vld [vmem:[#allocation34 + $0x38] sm:$0xff] }
0x1e78   :  { %v4669_v10 = vpop.f32.mrf.mxu1 }
0x1e79   :  { %4826 = vrot.lane.b32.xlu0 %v4669_v10, %s9393_s23 }
0x1e7a   :  { %v8043_v11 = vpop.f32.mrf.mxu1 }
0x1e7c   :  { %v4745_v12 = vpop.f32.mrf.mxu0 }
0x1e7d   :  { %4830 = vrot.lane.b32.xlu1 %v4745_v12, %s9396_s7 }
0x1e7e   :  { %v8048_v13 = vpop.f32.mrf.mxu0 }
0x1e7f   :  { %v7487_v13 = vld [vmem:[#allocation61] ss:$0 sm:$0xff] }
0x1e80   :  { %v4821_v15 = vpop.f32.mrf.mxu1 }
0x1e81   :  { %4834 = vrot.lane.b32.xlu0 %v4821_v15, %s9438_s22 }
0x1e82   :  { %v8053_v16 = vpop.f32.mrf.mxu1 }
0x1e83   :  { %v7488_v16 = vld [vmem:[#allocation63] ss:$0 sm:$0xff] }
0x1eeb   :  { %v4827_v18 = vpop.permute.xlu0 %4826 }
0x1eec   :  { %v4837_v20 = vsel %vm747_vm1, %v4593_v5, %v4827_v18 }
0x1eef   :  { %v4831_v19 = vpop.permute.xlu1 %4830 }
0x1ef0   :  { %v4838_v21 = vsel %vm1683_vm5, %v4837_v20, %v4831_v19  ;;  %v7489_v20 = vld [vmem:[#allocation36 + $0x1] ss:$0 sm:$0xff] }
0x1ef3   :  { %v4835_v25 = vpop.permute.xlu0 %4834 }
0x1ef4   :  { %v4839_v22 = vsel %vm1685_vm6, %v4838_v21, %v4835_v25 }
0x1ef5   :  { %8063 = vmatmul.mubr.msk.f32.vlgmr.msra.gmra.mxu0 %vm928_vm2, %v4839_v22 }
0x1ef6   :  { %8084 = vmatprep.mubr.msk.f32.mxu0 %vm9432_vm0, %v9431_v0  ;;  %8077 = vmatpush3.msra.mxu0 %v4957_v38 }
0x1ef7   :  { %8078 = vmatprep.subr.mxu0 %v9431_v0 }
0x1ef8   :  { %8079 = vmatpush3.msra.mxu0 %v4956_v50 }
0x1ef9   :  { %8080 = vmatprep.subr.mxu0 %v9431_v0 }
0x1efa   :  { %8081 = vmatpush3.msra.mxu0 %v4955_v52 }
0x1efb   :  { %8082 = vmatprep.subr.mxu0 %v9431_v0 }
0x1efc   :  { %8083 = vmatpush3.msra.mxu0 %v4954_v14 }
0x1efd   :  { %8098 = vmatprep.subr.mxu0 %v9431_v0 }
0x1fb5   :  { %v4915_v26 = vpop.f32.mrf.mxu0 }
0x1fb6   :  { %v4916_v27 = vadd.f32 %v7479_v24, %v4915_v26 }
0x1fb7   :  { %v8064_v28 = vpop.f32.mrf.mxu0 }
0x1fb8   :  { %v4919_v29 = vadd.f32 %v4916_v27, %v10183_v63  ;;  %v4949_v63 = vld [vmem:[#allocation55] sm:$0xff] }
0x1fb9   :  { %8072 = vmatpush3.msra.mxu1 %v4949_v63 }
0x1fba   :  { %v4922_v30 = vsel %vm928_vm2, %v4919_v29, 0.0  ;;  %8087 = vmatprep.subr.mxu1 %v9431_v0 }
0x1fbb   :  { %4923 = vadd.xlane.f32.xlu1 %v4922_v30 }
0x2044   :  { %v4924_v31 = vpop.xlane.xlu1 %4923 }
0x2045   :  { %v4925_v32 = vmul.f32 0.03125, %v4924_v31 }
0x2047   :  { %v4926_v34 = vsub.f32 %v4919_v29, %v4925_v32 }
0x2049   :  { %v4927_v35 = vmul.f32 %v4926_v34, %v4926_v34 }
0x204b   :  { %v4928_v36 = vsel %vm928_vm2, %v4927_v35, 0.0 }
0x204c   :  { %4929 = vadd.xlane.f32.xlu0 %v4928_v36 }
0x20d5   :  { %v4930_v40 = vpop.xlane.xlu0 %4929 }
0x20d6   :  { %v4931_v41 = vmul.f32 0.03125, %v4930_v40 }
0x20d8   :  { %v4932_v43 = vadd.f32 1e-05, %v4931_v41 }
0x20da   :  { %8430 = vrsqrt.f32 %v4932_v43 }
0x20e7   :  { %v8431_v44 = vpop.eup %8430 }
0x20e8   :  { %v4934_v46 = vmul.f32 %v8431_v44, %v4926_v34 }
0x20ea   :  { %v4941_v48 = vmul.f32 %v7481_v45, %v4934_v46 }
0x20ec   :  { %v4948_v49 = vadd.f32 %v7482_v47, %v4941_v48 }
0x20ee   :  { %8074 = vmatmul.mubr.msk.f32.vlgmr.msra.gmra.mxu1 %vm928_vm2, %v4948_v49 }
0x20ef   :  { %8095 = vmatprep.mubr.msk.f32.mxu1 %vm9432_vm0, %v9431_v0  ;;  %8088 = vmatpush3.msra.mxu1 %v5152_v17 }
0x20f0   :  { %8089 = vmatprep.subr.mxu1 %v9431_v0 }
0x20f1   :  { %8090 = vmatpush3.msra.mxu1 %v5151_v6 }
0x20f2   :  { %8091 = vmatprep.subr.mxu1 %v9431_v0 }
0x20f3   :  { %8092 = vmatpush3.msra.mxu1 %v5150_v7 }
0x20f4   :  { %8093 = vmatprep.subr.mxu1 %v9431_v0 }
0x20f5   :  { %8094 = vmatpush3.msra.mxu1 %v5149_v8 }
0x20f6   :  { %8103 = vmatprep.subr.mxu1 %v9431_v0 }
0x21ae   :  { %v5034_v54 = vpop.f32.mrf.mxu1 }
0x21af   :  { %v5035_v55 = vadd.f32 %v7483_v53, %v5034_v54 }
0x21b0   :  { %v8075_v56 = vpop.f32.mrf.mxu1 }
0x21b1   :  { %v5038_v57 = vmax.f32 %v5035_v55, 0.0 }
0x21b3   :  { %8085 = vmatmul.mubr.msk.f32.vlgmr.msra.gmra.mxu0 %vm928_vm2, %v5038_v57 }
0x21b4   :  { %8100 = vmatprep.mubr.msk.f32.mxu0 %vm9432_vm0, %v9431_v0 }
0x2273   :  { %v5114_v59 = vpop.f32.mrf.mxu0 }
0x2274   :  { %v5115_v61 = vadd.f32 %v7485_v58, %v5114_v59 }
0x2275   :  { %v8086_v62 = vpop.f32.mrf.mxu0 }
0x2276   :  { %v5118_v1 = vadd.f32 %v5115_v61, %v4948_v49 }
0x2278   :  { %v5121_v2 = vsel %vm928_vm2, %v5118_v1, 0.0 }
0x2279   :  { %5122 = vadd.xlane.f32.xlu0 %v5121_v2 }
0x2302   :  { %v5123_v3 = vpop.xlane.xlu0 %5122 }
0x2303   :  { %v5124_v33 = vmul.f32 0.03125, %v5123_v3 }
0x2305   :  { %v5125_v4 = vsub.f32 %v5118_v1, %v5124_v33 }
0x2307   :  { %v5126_v42 = vmul.f32 %v5125_v4, %v5125_v4 }
0x2309   :  { %v5127_v5 = vsel %vm928_vm2, %v5126_v42, 0.0 }
0x230a   :  { %5128 = vadd.xlane.f32.xlu1 %v5127_v5 }
0x2393   :  { %v5129_v9 = vpop.xlane.xlu1 %5128 }
0x2394   :  { %v5130_v10 = vmul.f32 0.03125, %v5129_v9 }
0x2396   :  { %v5131_v11 = vadd.f32 1e-05, %v5130_v10 }
0x2398   :  { %8432 = vrsqrt.f32 %v5131_v11 }
0x23a5   :  { %v8433_v12 = vpop.eup %8432 }
0x23a6   :  { %v5133_v15 = vmul.f32 %v8433_v12, %v5125_v4 }
0x23a8   :  { %v5140_v18 = vmul.f32 %v7487_v13, %v5133_v15 }
0x23aa   :  { %v10287_v19 = vadd.f32 %v7488_v16, %v5140_v18 }
0x23ac   :  { %8096 = vmatmul.mubr.msk.f32.vlgmr.msra.gmra.mxu1 %vm928_vm2, %v10287_v19 }
0x23ad   :  { %8105 = vmatprep.mubr.msk.f32.mxu1 %vm9432_vm0, %v9431_v0 }
0x246c   :  { %v5230_v21 = vpop.f32.mrf.mxu1 }
0x246d   :  { %v5231_v25 = vadd.f32 %v7489_v20, %v5230_v21 }
0x246e   :  { %v8097_v22 = vpop.f32.mrf.mxu1 }
0x246f   :  { %5244 = vrot.lane.b32.xlu1 %v5231_v25, %s9436_s16  ;;  %5242 = vrot.lane.b32.xlu0 %v5231_v25, %s9434_s30 }
0x2473   :  { %5246 = vrot.lane.b32.xlu1 %v5231_v25, %s9433_s15  ;;  %5248 = vrot.lane.b32.xlu0 %v5231_v25, %s9435_s9 }
0x24e1   :  { %v10297_v24 = vpop.permute.xlu1 %5244  ;;  %v10299_v26 = vpop.permute.xlu0 %5242 }
0x24e2   :  { %5400 = vrot.lane.b32.xlu0 %v10297_v24, %s9435_s9  ;;  %5324 = vrot.lane.b32.xlu1 %v10299_v26, %s9435_s9 }
0x24e5   :  { %v10305_v27 = vpop.permute.xlu1 %5246  ;;  %v5249_v28 = vpop.permute.xlu0 %5248 }
0x24e6   :  { %5476 = vrot.lane.b32.xlu1 %v10305_v27, %s9435_s9  ;;  %8099 = vmatpush3.xpose.msk.msra.mxu0 %vm747_vm1, %v5249_v28  ;;  %v5237_v28 = vld [vmem:[#allocation37 + $0x30] sm:$0xff] }
0x24e7   :  { %8108 = vmatprep.subr.mxu0 %v9431_v0 }
0x24e9   :  { %8101 = vmatmul.mubr.msk.f32.vlgmr.msra.gmra.mxu0 %vm747_vm1, %v5231_v25 }
0x24ea   :  { %8110 = vmatprep.mubr.msk.f32.mxu0 %vm9432_vm0, %v9431_v0 }
0x2554   :  { %v5325_v29 = vpop.permute.xlu1 %5324  ;;  %v5401_v30 = vpop.permute.xlu0 %5400 }
0x2555   :  { %8104 = vmatpush3.xpose.msk.msra.mxu1 %vm747_vm1, %v5325_v29  ;;  %8109 = vmatpush3.xpose.msk.msra.mxu0 %vm747_vm1, %v5401_v30 }
0x2556   :  { %8113 = vmatprep.subr.mxu1 %v9431_v0  ;;  %8118 = vmatprep.subr.mxu0 %v9431_v0 }
0x2558   :  { %8106 = vmatmul.mubr.msk.f32.vlgmr.msra.gmra.mxu1 %vm747_vm1, %v10299_v26  ;;  %v5477_v31 = vpop.permute.xlu1 %5476  ;;  %8111 = vmatmul.mubr.msk.f32.vlgmr.msra.gmra.mxu0 %vm747_vm1, %v10297_v24 }
0x2559   :  { %8114 = vmatpush3.xpose.msk.msra.mxu1 %vm747_vm1, %v5477_v31  ;;  %8115 = vmatprep.mubr.msk.f32.mxu1 %vm9432_vm0, %v9431_v0  ;;  %v5236_v31 = vld [vmem:[#allocation37 + $0x28] sm:$0xff] }
0x255a   :  { %8120 = vmatprep.mubr.msk.f32.mxu0 %vm9432_vm0, %v9431_v0  ;;  %8123 = vmatprep.subr.mxu1 %v9431_v0 }
0x255c   :  { %8116 = vmatmul.mubr.msk.f32.vlgmr.msra.gmra.mxu1 %vm747_vm1, %v10305_v27 }
0x255d   :  { %8125 = vmatprep.mubr.msk.f32.mxu1 %vm9432_vm0, %v9431_v0 }
0x25a9   :  { %v5320_v32 = vpop.f32.mrf.mxu0 }
0x25aa   :  { %v5552_v34 = vmul.f32 0.35355338, %v5320_v32  ;;  %v5235_v32 = vld [vmem:[#allocation37 + $0x20] sm:$0xff] }
0x25ab   :  { %v8102_v35 = vpop.f32.mrf.mxu0 }
0x25ac   :  { %v5556_v36 = vadd.f32 %v5552_v34, %v10110_v51 }
0x25ae   :  { %v5560_v37 = vsel %vm747_vm1, %v5556_v36, -inf }
0x25af   :  { %5561 = vmax.xlane.f32.xlu0 %v5560_v37 }
0x2618   :  { %v5396_v39 = vpop.f32.mrf.mxu1  ;;  %v5472_v23 = vpop.f32.mrf.mxu0 }
0x2619   :  { %v5553_v63 = vmul.f32 0.35355338, %v5396_v39  ;;  %v5554_v38 = vmul.f32 0.35355338, %v5472_v23 }
0x261a   :  { %v8107_v40 = vpop.f32.mrf.mxu1  ;;  %v8112_v41 = vpop.f32.mrf.mxu0 }
0x261b   :  { %v5557_v43 = vadd.f32 %v5553_v63, %v10110_v51  ;;  %v5558_v44 = vadd.f32 %v5554_v38, %v10110_v51 }
0x261c   :  { %v5548_v45 = vpop.f32.mrf.mxu1 }
0x261d   :  { %v5555_v46 = vmul.f32 0.35355338, %v5548_v45  ;;  %v5563_v47 = vsel %vm747_vm1, %v5557_v43, -inf  ;;  %v5566_v48 = vsel %vm747_vm1, %v5558_v44, -inf }
0x261e   :  { %5564 = vmax.xlane.f32.xlu1 %v5563_v47  ;;  %v8117_v49 = vpop.f32.mrf.mxu1  ;;  %5567 = vmax.xlane.f32.xlu0 %v5566_v48  ;;  %v6122_v47 = vld [vmem:[#allocation46 + $0x28] sm:$0xff]  ;;  %v6121_v48 = vld [vmem:[#allocation46 + $0x20] sm:$0xff] }
0x261f   :  { %v5559_v50 = vadd.f32 %v5555_v46, %v10110_v51  ;;  %v6123_v46 = vld [vmem:[#allocation46 + $0x30] sm:$0xff]  ;;  %v7503_v49 = vld [vmem:[#allocation39 + $0x1] ss:$0 sm:$0xff] }
0x2621   :  { %v5569_v52 = vsel %vm747_vm1, %v5559_v50, -inf }
0x2622   :  { %5570 = vmax.xlane.f32.xlu0 %v5569_v52 }
0x262f   :  { %5604 = vrot.lane.b32.xlu1 %v5231_v25, %s9437_s18 }
0x2638   :  { %v5562_v14 = vpop.xlane.xlu0 %5561 }
0x2639   :  { %v5572_v53 = vsub.f32 %v5556_v36, %v5562_v14 }
0x263b   :  { %v5576_v54 = vmul.f32 1.442695, %v5572_v53 }
0x263d   :  { %8434 = vpow2.f32 %v5576_v54 }
0x264a   :  { %v8435_v55 = vpop.eup %8434 }
0x264b   :  { %v5584_v56 = vsel %vm747_vm1, %v8435_v55, 0.0 }
0x2653   :  { %5585 = vadd.xlane.f32.xlu1 %v5584_v56 }
0x26a7   :  { %v5565_v57 = vpop.xlane.xlu1 %5564  ;;  %v5568_v58 = vpop.xlane.xlu0 %5567 }
0x26a8   :  { %v5573_v59 = vsub.f32 %v5557_v43, %v5565_v57  ;;  %v5574_v61 = vsub.f32 %v5558_v44, %v5568_v58  ;;  %v6124_v44 = vld [vmem:[#allocation46 + $0x38] sm:$0xff]  ;;  %v7509_v57 = vld [vmem:[#allocation48 + $0x1] ss:$0 sm:$0xff] }
0x26aa   :  { %v5578_v62 = vmul.f32 1.442695, %v5573_v59  ;;  %v5580_v1 = vmul.f32 1.442695, %v5574_v61 }
0x26ab   :  { %v5605_v51 = vpop.permute.xlu1 %5604  ;;  %v5571_v2 = vpop.xlane.xlu0 %5570 }
0x26ac   :  { %8436 = vpow2.f32 %v5578_v62  ;;  %v5575_v3 = vsub.f32 %v5559_v50, %v5571_v2  ;;  %8119 = vmatpush3.msra.mxu0 %v5605_v51  ;;  %v6038_v51 = vld [vmem:[#allocation43 + $0x38] sm:$0xff]  ;;  %v6037_v2 = vld [vmem:[#allocation43 + $0x30] sm:$0xff] }
0x26ad   :  { %8438 = vpow2.f32 %v5580_v1  ;;  %8128 = vmatprep.subr.mxu0 %v9431_v0 }
0x26ae   :  { %v5582_v33 = vmul.f32 1.442695, %v5575_v3  ;;  %v6036_v3 = vld [vmem:[#allocation43 + $0x28] sm:$0xff] }
0x26b0   :  { %8440 = vpow2.f32 %v5582_v33  ;;  %v6035_v33 = vld [vmem:[#allocation43 + $0x20] sm:$0xff] }
0x26b9   :  { %v8437_v4 = vpop.eup %8436 }
0x26ba   :  { %v8439_v42 = vpop.eup %8438  ;;  %v5587_v5 = vsel %vm747_vm1, %v8437_v4, 0.0 }
0x26bb   :  { %5588 = vadd.xlane.f32.xlu0 %v5587_v5  ;;  %v5590_v17 = vsel %vm747_vm1, %v8439_v42, 0.0 }
0x26bc   :  { %5591 = vadd.xlane.f32.xlu1 %v5590_v17 }
0x26bd   :  { %v8441_v6 = vpop.eup %8440 }
0x26be   :  { %v5593_v7 = vsel %vm747_vm1, %v8441_v6, 0.0 }
0x26bf   :  { %5594 = vadd.xlane.f32.xlu0 %v5593_v7 }
0x26cd   :  { %5756 = vrot.lane.b32.xlu1 %v10297_v24, %s9437_s18 }
0x26d1   :  { %5832 = vrot.lane.b32.xlu1 %v10305_v27, %s9437_s18  ;;  %v5238_v27 = vld [vmem:[#allocation37 + $0x38] sm:$0xff] }
0x26d5   :  { %5680 = vrot.lane.b32.xlu0 %v10299_v26, %s9437_s18 }
0x26dc   :  { %v5586_v8 = vpop.xlane.xlu1 %5585 }
0x26dd   :  { %8442 = vrcp.f32 %v5586_v8  ;;  %v7506_v8 = vld [vmem:[#allocation42 + $0x1] ss:$0 sm:$0xff] }
0x26ea   :  { %v8443_v9 = vpop.eup %8442 }
0x26eb   :  { %v5600_v10 = vmul.f32 %v8443_v9, %v8435_v55 }
0x26ed   :  { %8121 = vmatmul.mubr.msk.f32.vlgmr.msra.gmra.mxu0 %vm747_vm1, %v5600_v10 }
0x26ee   :  { %8130 = vmatprep.mubr.msk.f32.mxu0 %vm9432_vm0, %v9431_v0 }
0x2744   :  { %v5589_v11 = vpop.xlane.xlu0 %5588 }
0x2745   :  { %v5592_v12 = vpop.xlane.xlu1 %5591  ;;  %8444 = vrcp.f32 %v5589_v11  ;;  %v7507_v11 = vld [vmem:[#allocation45 + $0x1] ss:$0 sm:$0xff] }
0x2746   :  { %8446 = vrcp.f32 %v5592_v12 }
0x2748   :  { %v5595_v13 = vpop.xlane.xlu0 %5594 }
0x2749   :  { %v5757_v15 = vpop.permute.xlu1 %5756  ;;  %8448 = vrcp.f32 %v5595_v13 }
0x274a   :  { %8129 = vmatpush3.msra.mxu0 %v5757_v15 }
0x274b   :  { %8138 = vmatprep.subr.mxu0 %v9431_v0 }
0x274c   :  { %v5681_v16 = vpop.permute.xlu0 %5680 }
0x274d   :  { %8124 = vmatpush3.msra.mxu1 %v5681_v16  ;;  %v5833_v22 = vpop.permute.xlu1 %5832 }
0x274e   :  { %8133 = vmatprep.subr.mxu1 %v9431_v0 }
0x2752   :  { %v8445_v18 = vpop.eup %8444 }
0x2753   :  { %v8447_v20 = vpop.eup %8446  ;;  %v5601_v21 = vmul.f32 %v8445_v18, %v8437_v4 }
0x2754   :  { %v5602_v25 = vmul.f32 %v8447_v20, %v8439_v42 }
0x2755   :  { %8126 = vmatmul.mubr.msk.f32.vlgmr.msra.gmra.mxu1 %vm747_vm1, %v5601_v21 }
0x2756   :  { %v8449_v24 = vpop.eup %8448  ;;  %8131 = vmatmul.mubr.msk.f32.vlgmr.msra.gmra.mxu0 %vm747_vm1, %v5602_v25  ;;  %8134 = vmatpush3.msra.mxu1 %v5833_v22 }
0x2757   :  { %8135 = vmatprep.mubr.msk.f32.mxu1 %vm9432_vm0, %v9431_v0  ;;  %v5603_v26 = vmul.f32 %v8449_v24, %v8441_v6  ;;  %8146 = vmatprep.mubr.msk.f32.mxu0 %vm9432_vm0, %v9431_v0  ;;  %v7505_v6 = vld [vmem:[#allocation40 + $0x1] ss:$0 sm:$0xff] }
0x2758   :  { %8149 = vmatprep.subr.mxu1 %v9431_v0  ;;  %8139 = vmatpush3.msra.mxu0 %v5238_v27 }
0x2759   :  { %8136 = vmatmul.mubr.msk.f32.vlgmr.msra.gmra.mxu1 %vm747_vm1, %v5603_v26  ;;  %8140 = vmatprep.subr.mxu0 %v9431_v0 }
0x275a   :  { %8157 = vmatprep.mubr.msk.f32.mxu1 %vm9432_vm0, %v9431_v0  ;;  %8141 = vmatpush3.msra.mxu0 %v5237_v28 }
0x275b   :  { %8142 = vmatprep.subr.mxu0 %v9431_v0  ;;  %8150 = vmatpush3.msra.mxu1 %v6038_v51 }
0x275c   :  { %8143 = vmatpush3.msra.mxu0 %v5236_v31  ;;  %8151 = vmatprep.subr.mxu1 %v9431_v0 }
0x275d   :  { %8144 = vmatprep.subr.mxu0 %v9431_v0  ;;  %8152 = vmatpush3.msra.mxu1 %v6037_v2 }
0x275e   :  { %8145 = vmatpush3.msra.mxu0 %v5235_v32  ;;  %8153 = vmatprep.subr.mxu1 %v9431_v0 }
0x275f   :  { %8160 = vmatprep.subr.mxu0 %v9431_v0  ;;  %8154 = vmatpush3.msra.mxu1 %v6036_v3 }
0x2760   :  { %8155 = vmatprep.subr.mxu1 %v9431_v0 }
0x2761   :  { %8156 = vmatpush3.msra.mxu1 %v6035_v33 }
0x2762   :  { %8171 = vmatprep.subr.mxu1 %v9431_v0 }
0x27ad   :  { %v5676_v29 = vpop.f32.mrf.mxu0 }
0x27af   :  { %v8122_v30 = vpop.f32.mrf.mxu0 }
0x2815   :  { %v5752_v34 = vpop.f32.mrf.mxu1 }
0x2816   :  { %v5828_v35 = vpop.f32.mrf.mxu0  ;;  %5909 = vrot.lane.b32.xlu0 %v5752_v34, %s9393_s23 }
0x2817   :  { %5913 = vrot.lane.b32.xlu1 %v5828_v35, %s9396_s7  ;;  %v8127_v36 = vpop.f32.mrf.mxu1 }
0x2818   :  { %v8132_v37 = vpop.f32.mrf.mxu0 }
0x2819   :  { %v5904_v39 = vpop.f32.mrf.mxu1 }
0x281a   :  { %5917 = vrot.lane.b32.xlu0 %v5904_v39, %s9438_s22 }
0x281b   :  { %v8137_v23 = vpop.f32.mrf.mxu1 }
0x2888   :  { %v5910_v63 = vpop.permute.xlu0 %5909 }
0x2889   :  { %v5920_v38 = vsel %vm747_vm1, %v5676_v29, %v5910_v63  ;;  %v5914_v40 = vpop.permute.xlu1 %5913 }
0x288a   :  { %v5921_v41 = vsel %vm1683_vm5, %v5920_v38, %v5914_v40 }
0x288c   :  { %v5918_v43 = vpop.permute.xlu0 %5917 }
0x288d   :  { %v5922_v45 = vsel %vm1685_vm6, %v5921_v41, %v5918_v43 }
0x288e   :  { %8147 = vmatmul.mubr.msk.f32.vlgmr.msra.gmra.mxu0 %vm928_vm2, %v5922_v45 }
0x288f   :  { %8161 = vmatpush3.msra.mxu0 %v6124_v44  ;;  %8168 = vmatprep.mubr.msk.f32.mxu0 %vm9432_vm0, %v9431_v0 }
0x2890   :  { %8162 = vmatprep.subr.mxu0 %v9431_v0 }
0x2891   :  { %8163 = vmatpush3.msra.mxu0 %v6123_v46 }
0x2892   :  { %8164 = vmatprep.subr.mxu0 %v9431_v0 }
0x2893   :  { %8165 = vmatpush3.msra.mxu0 %v6122_v47 }
0x2894   :  { %8166 = vmatprep.subr.mxu0 %v9431_v0 }
0x2895   :  { %8167 = vmatpush3.msra.mxu0 %v6121_v48 }
0x2896   :  { %8169 = vmatmul.mubr.msk.f32.vlgmr.msra.gmra.mxu0 %vm928_vm2, %v10177_v60  ;;  %8181 = vmatprep.subr.mxu0 %v9431_v0 }
0x2897   :  { %8183 = vmatprep.mubr.msk.f32.mxu0 %vm9432_vm0, %v9431_v0 }
0x294e   :  { %v5998_v50 = vpop.f32.mrf.mxu0 }
0x294f   :  { %v5999_v52 = vadd.f32 %v7503_v49, %v5998_v50 }
0x2950   :  { %v8148_v14 = vpop.f32.mrf.mxu0 }
0x2951   :  { %v6002_v53 = vadd.f32 %v5999_v52, %v10287_v19 }
0x2953   :  { %v6007_v54 = vsel %vm928_vm2, %v6002_v53, 0.0 }
0x2954   :  { %6008 = vadd.xlane.f32.xlu1 %v6007_v54 }
0x2956   :  { %v6199_v55 = vpop.f32.mrf.mxu0 }
0x2957   :  { %v10390_v58 = vadd.f32 %v7509_v57, %v6199_v55 }
0x2958   :  { %v8170_v56 = vpop.f32.mrf.mxu0 }
0x2965   :  { %6220 = vrot.lane.b32.xlu1 %v10390_v58, %s9436_s16 }
0x29dd   :  { %v6009_v60 = vpop.xlane.xlu1 %6008 }
0x29de   :  { %v6010_v59 = vmul.f32 0.03125, %v6009_v60 }
0x29e0   :  { %v6011_v61 = vsub.f32 %v6002_v53, %v6010_v59 }
0x29e1   :  { %v10394_v62 = vpop.permute.xlu1 %6220 }
0x29e2   :  { %8182 = vmatpush3.xpose.msk.msra.mxu0 %vm747_vm1, %v10394_v62  ;;  %v6012_v19 = vmul.f32 %v6011_v61, %v6011_v61 }
0x29e3   :  { %8191 = vmatprep.subr.mxu0 %v9431_v0 }
0x29e4   :  { %v6013_v1 = vsel %vm928_vm2, %v6012_v19, 0.0 }
0x29e5   :  { %6014 = vadd.xlane.f32.xlu0 %v6013_v1 }
0x29fb   :  { %6218 = vrot.lane.b32.xlu0 %v10390_v58, %s9434_s30 }
0x29ff   :  { %6222 = vrot.lane.b32.xlu0 %v10390_v58, %s9433_s15 }
0x2a6e   :  { %v6015_v4 = vpop.xlane.xlu0 %6014 }
0x2a6f   :  { %v6016_v42 = vmul.f32 0.03125, %v6015_v4 }
0x2a71   :  { %v6017_v5 = vadd.f32 1e-05, %v6016_v42 }
0x2a72   :  { %v6219_v16 = vpop.permute.xlu0 %6218 }
0x2a73   :  { %8450 = vrsqrt.f32 %v6017_v5 }
0x2a76   :  { %v10425_v18 = vpop.permute.xlu0 %6222 }
0x2a80   :  { %v8451_v17 = vpop.eup %8450 }
0x2a81   :  { %v6019_v7 = vmul.f32 %v8451_v17, %v6011_v61 }
0x2a83   :  { %v6026_v9 = vmul.f32 %v7505_v6, %v6019_v7 }
0x2a85   :  { %v10408_v10 = vadd.f32 %v7506_v8, %v6026_v9 }
0x2a87   :  { %8158 = vmatmul.mubr.msk.f32.vlgmr.msra.gmra.mxu1 %vm928_vm2, %v10408_v10 }
0x2a88   :  { %8172 = vmatpush3.xpose.msk.msra.mxu1 %vm747_vm1, %v10390_v58  ;;  %8173 = vmatprep.mubr.msk.f32.mxu1 %vm9432_vm0, %v9431_v0 }
0x2a89   :  { %8176 = vmatprep.subr.mxu1 %v9431_v0 }
0x2b47   :  { %v6116_v12 = vpop.f32.mrf.mxu1 }
0x2b48   :  { %v6117_v13 = vadd.f32 %v7507_v11, %v6116_v12  ;;  %v6207_v12 = vld [vmem:[#allocation49 + $0x38] sm:$0xff] }
0x2b49   :  { %v8159_v15 = vpop.f32.mrf.mxu1 }
0x2b4a   :  { %6211 = vrot.lane.b32.xlu1 %v6117_v13, %s9434_s30  ;;  %6215 = vrot.lane.b32.xlu0 %v6117_v13, %s9433_s15  ;;  %v6205_v15 = vld [vmem:[#allocation49 + $0x28] sm:$0xff] }
0x2b4b   :  { %8174 = vmatmul.mubr.msk.f32.vlgmr.msra.gmra.mxu1 %vm747_vm1, %v6117_v13 }
0x2b4c   :  { %8177 = vmatpush3.xpose.msk.msra.mxu1 %vm747_vm1, %v6219_v16  ;;  %8178 = vmatprep.mubr.msk.f32.mxu1 %vm9432_vm0, %v9431_v0 }
0x2b4d   :  { %8186 = vmatprep.subr.mxu1 %v9431_v0 }
0x2b4e   :  { %6213 = vrot.lane.b32.xlu1 %v6117_v13, %s9436_s16  ;;  %v6206_v13 = vld [vmem:[#allocation49 + $0x30] sm:$0xff] }
0x2bbc   :  { %v6212_v20 = vpop.permute.xlu1 %6211  ;;  %v6216_v21 = vpop.permute.xlu0 %6215 }
0x2bbd   :  { %8179 = vmatmul.mubr.msk.f32.vlgmr.msra.gmra.mxu1 %vm747_vm1, %v6212_v20 }
0x2bbe   :  { %8187 = vmatpush3.xpose.msk.msra.mxu1 %vm747_vm1, %v10425_v18  ;;  %8188 = vmatprep.mubr.msk.f32.mxu1 %vm9432_vm0, %v9431_v0 }
0x2bbf   :  { %8196 = vmatprep.subr.mxu1 %v9431_v0 }
0x2bc0   :  { %v6214_v25 = vpop.permute.xlu1 %6213 }
0x2bc1   :  { %8184 = vmatmul.mubr.msk.f32.vlgmr.msra.gmra.mxu0 %vm747_vm1, %v6214_v25  ;;  %8189 = vmatmul.mubr.msk.f32.vlgmr.msra.gmra.mxu1 %vm747_vm1, %v6216_v21 }
0x2bc2   :  { %8193 = vmatprep.mubr.msk.f32.mxu0 %vm9432_vm0, %v9431_v0  ;;  %8198 = vmatprep.mubr.msk.f32.mxu1 %vm9432_vm0, %v9431_v0 }
0x2c0b   :  { %v6294_v22 = vpop.f32.mrf.mxu1 }
0x2c0c   :  { %v6520_v24 = vmul.f32 0.35355338, %v6294_v22 }
0x2c0d   :  { %v8175_v26 = vpop.f32.mrf.mxu1 }
0x2c0e   :  { %v6524_v27 = vsel %vm747_vm1, %v6520_v24, -inf }
0x2c0f   :  { %6525 = vmax.xlane.f32.xlu1 %v6524_v27 }
0x2c7d   :  { %v6368_v28 = vpop.f32.mrf.mxu1 }
0x2c7e   :  { %v6521_v29 = vmul.f32 0.35355338, %v6368_v28 }
0x2c7f   :  { %v8180_v30 = vpop.f32.mrf.mxu1 }
0x2c80   :  { %v6527_v31 = vsel %vm747_vm1, %v6521_v29, -inf }
0x2c81   :  { %6528 = vmax.xlane.f32.xlu0 %v6527_v31  ;;  %v6442_v32 = vpop.f32.mrf.mxu0  ;;  %v6516_v34 = vpop.f32.mrf.mxu1 }
0x2c82   :  { %v6522_v35 = vmul.f32 0.35355338, %v6442_v32  ;;  %v6523_v36 = vmul.f32 0.35355338, %v6516_v34  ;;  %v7523_v32 = vld [vmem:[#allocation51 + $0x1] ss:$0 sm:$0xff] }
0x2c83   :  { %v8185_v37 = vpop.f32.mrf.mxu0  ;;  %v8190_v39 = vpop.f32.mrf.mxu1 }
0x2c84   :  { %v6533_v23 = vsel %vm747_vm1, %v6523_v36, -inf  ;;  %v6530_v63 = vsel %vm747_vm1, %v6522_v35, -inf }
0x2c85   :  { %6534 = vmax.xlane.f32.xlu1 %v6533_v23  ;;  %6531 = vmax.xlane.f32.xlu0 %v6530_v63 }
0x2c96   :  { %6644 = vrot.lane.b32.xlu1 %v6219_v16, %s9435_s9  ;;  %v6204_v16 = vld [vmem:[#allocation49 + $0x20] sm:$0xff] }
0x2c98   :  { %v6526_v38 = vpop.xlane.xlu1 %6525 }
0x2c99   :  { %v6536_v40 = vsub.f32 %v6520_v24, %v6526_v38 }
0x2c9b   :  { %6568 = vrot.lane.b32.xlu0 %v10390_v58, %s9435_s9  ;;  %v6540_v41 = vmul.f32 1.442695, %v6536_v40 }
0x2c9d   :  { %8452 = vpow2.f32 %v6540_v41 }
0x2caa   :  { %v8453_v43 = vpop.eup %8452 }
0x2cab   :  { %v6548_v44 = vsel %vm747_vm1, %v8453_v43, 0.0 }
0x2cba   :  { %6549 = vadd.xlane.f32.xlu0 %v6548_v44  ;;  %v7001_v44 = vld [vmem:[#allocation55 + $0x30] sm:$0xff] }
0x2d0a   :  { %v6529_v45 = vpop.xlane.xlu0 %6528 }
0x2d0b   :  { %v6537_v46 = vsub.f32 %v6521_v29, %v6529_v45  ;;  %v7000_v45 = vld [vmem:[#allocation55 + $0x28] sm:$0xff] }
0x2d0d   :  { %v6542_v47 = vmul.f32 1.442695, %v6537_v46  ;;  %v7009_v46 = vld [vmem:[#allocation58 + $0x38] sm:$0xff] }
0x2d0e   :  { %v6535_v48 = vpop.xlane.xlu1 %6534  ;;  %v6532_v49 = vpop.xlane.xlu0 %6531 }
0x2d0f   :  { %8454 = vpow2.f32 %v6542_v47  ;;  %v6539_v50 = vsub.f32 %v6523_v36, %v6535_v48  ;;  %v6538_v52 = vsub.f32 %v6522_v35, %v6532_v49 }
0x2d11   :  { %v6546_v14 = vmul.f32 1.442695, %v6539_v50  ;;  %v6544_v53 = vmul.f32 1.442695, %v6538_v52  ;;  %v7525_v52 = vld [vmem:[#allocation52 + $0x1] ss:$0 sm:$0xff] }
0x2d12   :  { %v6645_v54 = vpop.permute.xlu1 %6644  ;;  %v6569_v55 = vpop.permute.xlu0 %6568 }
0x2d13   :  { %8456 = vpow2.f32 %v6546_v14  ;;  %8192 = vmatpush3.msra.mxu0 %v6569_v55  ;;  %8197 = vmatpush3.msra.mxu1 %v6645_v54 }
0x2d14   :  { %8458 = vpow2.f32 %v6544_v53  ;;  %8201 = vmatprep.subr.mxu0 %v9431_v0  ;;  %8206 = vmatprep.subr.mxu1 %v9431_v0  ;;  %v7526_v53 = vld [vmem:[#allocation54 + $0x1] ss:$0 sm:$0xff] }
0x2d1c   :  { %v8455_v56 = vpop.eup %8454 }
0x2d1d   :  { %v6551_v57 = vsel %vm747_vm1, %v8455_v56, 0.0 }
0x2d1e   :  { %6552 = vadd.xlane.f32.xlu1 %v6551_v57  ;;  %v7007_v57 = vld [vmem:[#allocation58 + $0x28] sm:$0xff] }
0x2d20   :  { %v8457_v58 = vpop.eup %8456 }
0x2d21   :  { %v8459_v60 = vpop.eup %8458  ;;  %v6557_v59 = vsel %vm747_vm1, %v8457_v58, 0.0 }
0x2d22   :  { %6558 = vadd.xlane.f32.xlu1 %v6557_v59  ;;  %v6554_v61 = vsel %vm747_vm1, %v8459_v60, 0.0 }
0x2d23   :  { %6555 = vadd.xlane.f32.xlu0 %v6554_v61 }
0x2d33   :  { %6720 = vrot.lane.b32.xlu1 %v10394_v62, %s9435_s9 }
0x2d39   :  { %6796 = vrot.lane.b32.xlu0 %v10425_v18, %s9435_s9 }
0x2d43   :  { %v6550_v19 = vpop.xlane.xlu0 %6549 }
0x2d44   :  { %8460 = vrcp.f32 %v6550_v19 }
0x2d51   :  { %v8461_v1 = vpop.eup %8460 }
0x2d52   :  { %v6564_v51 = vmul.f32 %v8461_v1, %v8453_v43  ;;  %v7002_v43 = vld [vmem:[#allocation55 + $0x38] sm:$0xff] }
0x2d54   :  { %8194 = vmatmul.mubr.msk.f32.vlgmr.msra.gmra.mxu0 %vm747_vm1, %v6564_v51  ;;  %v7529_v51 = vld [vmem:[#allocation60 + $0x1] ss:$0 sm:$0xff] }
0x2d55   :  { %8203 = vmatprep.mubr.msk.f32.mxu0 %vm9432_vm0, %v9431_v0 }
0x2da7   :  { %v6553_v2 = vpop.xlane.xlu1 %6552 }
0x2da8   :  { %8462 = vrcp.f32 %v6553_v2 }
0x2dab   :  { %v6559_v3 = vpop.xlane.xlu1 %6558 }
0x2dac   :  { %8464 = vrcp.f32 %v6559_v3  ;;  %v6556_v33 = vpop.xlane.xlu0 %6555 }
0x2dad   :  { %8466 = vrcp.f32 %v6556_v33 }
0x2daf   :  { %v6721_v4 = vpop.permute.xlu1 %6720 }
0x2db0   :  { %8202 = vmatpush3.msra.mxu0 %v6721_v4  ;;  %v6797_v5 = vpop.permute.xlu0 %6796 }
0x2db1   :  { %8211 = vmatprep.subr.mxu0 %v9431_v0 }
0x2db5   :  { %v8463_v62 = vpop.eup %8462 }
0x2db6   :  { %v6565_v42 = vmul.f32 %v8463_v62, %v8455_v56  ;;  %v7008_v56 = vld [vmem:[#allocation58 + $0x30] sm:$0xff] }
0x2db8   :  { %8199 = vmatmul.mubr.msk.f32.vlgmr.msra.gmra.mxu1 %vm747_vm1, %v6565_v42 }
0x2db9   :  { %v8465_v17 = vpop.eup %8464  ;;  %8207 = vmatpush3.msra.mxu1 %v6797_v5  ;;  %8208 = vmatprep.mubr.msk.f32.mxu1 %vm9432_vm0, %v9431_v0 }
0x2dba   :  { %v8467_v6 = vpop.eup %8466  ;;  %v6567_v7 = vmul.f32 %v8465_v17, %v8457_v58  ;;  %8222 = vmatprep.subr.mxu1 %v9431_v0  ;;  %v7006_v58 = vld [vmem:[#allocation58 + $0x20] sm:$0xff] }
0x2dbb   :  { %v6566_v8 = vmul.f32 %v8467_v6, %v8459_v60  ;;  %v7527_v60 = vld [vmem:[#allocation57 + $0x1] ss:$0 sm:$0xff] }
0x2dbc   :  { %8209 = vmatmul.mubr.msk.f32.vlgmr.msra.gmra.mxu1 %vm747_vm1, %v6567_v7 }
0x2dbd   :  { %8204 = vmatmul.mubr.msk.f32.vlgmr.msra.gmra.mxu0 %vm747_vm1, %v6566_v8  ;;  %8230 = vmatprep.mubr.msk.f32.mxu1 %vm9432_vm0, %v9431_v0 }
0x2dbe   :  { %8219 = vmatprep.mubr.msk.f32.mxu0 %vm9432_vm0, %v9431_v0  ;;  %8212 = vmatpush3.msra.mxu0 %v6207_v12 }
0x2dbf   :  { %8213 = vmatprep.subr.mxu0 %v9431_v0  ;;  %8223 = vmatpush3.msra.mxu1 %v7002_v43 }
0x2dc0   :  { %8214 = vmatpush3.msra.mxu0 %v6206_v13  ;;  %8224 = vmatprep.subr.mxu1 %v9431_v0  ;;  %v7531_v13 = vld [vmem:[#allocation61 + $0x1] ss:$0 sm:$0xff] }
0x2dc1   :  { %8215 = vmatprep.subr.mxu0 %v9431_v0  ;;  %8225 = vmatpush3.msra.mxu1 %v7001_v44 }
0x2dc2   :  { %8216 = vmatpush3.msra.mxu0 %v6205_v15  ;;  %8226 = vmatprep.subr.mxu1 %v9431_v0 }
0x2dc3   :  { %8217 = vmatprep.subr.mxu0 %v9431_v0  ;;  %8227 = vmatpush3.msra.mxu1 %v7000_v45 }
0x2dc4   :  { %8218 = vmatpush3.msra.mxu0 %v6204_v16  ;;  %8228 = vmatprep.subr.mxu1 %v9431_v0  ;;  %v7532_v16 = vld [vmem:[#allocation63 + $0x1] ss:$0 sm:$0xff] }
0x2dc5   :  { %8233 = vmatprep.subr.mxu0 %v9431_v0 }
0x2e14   :  { %v6640_v9 = vpop.f32.mrf.mxu0 }
0x2e16   :  { %v8195_v11 = vpop.f32.mrf.mxu0 }
0x2e78   :  { %v6716_v18 = vpop.f32.mrf.mxu1 }
0x2e79   :  { %6873 = vrot.lane.b32.xlu1 %v6716_v18, %s9393_s23  ;;  %s10570_s23 = sld [smem:[#allocation93_spill]] }
0x2e7a   :  { %v8200_v20 = vpop.f32.mrf.mxu1 }
0x2e7c   :  { %v6868_v21 = vpop.f32.mrf.mxu1 }
0x2e7d   :  { %v6792_v25 = vpop.f32.mrf.mxu0  ;;  %6881 = vrot.lane.b32.xlu1 %v6868_v21, %s9438_s22 }
0x2e7e   :  { %6877 = vrot.lane.b32.xlu0 %v6792_v25, %s9396_s7  ;;  %v8210_v22 = vpop.f32.mrf.mxu1 }
0x2e7f   :  { %v8205_v24 = vpop.f32.mrf.mxu0 }
0x2eeb   :  { %v6874_v26 = vpop.permute.xlu1 %6873 }
0x2eec   :  { %v6884_v28 = vsel %vm747_vm1, %v6640_v9, %v6874_v26 }
0x2eef   :  { %v6882_v27 = vpop.permute.xlu1 %6881 }
0x2ef0   :  { %v6878_v29 = vpop.permute.xlu0 %6877 }
0x2ef1   :  { %v6885_v30 = vsel %vm1683_vm5, %v6884_v28, %v6878_v29  ;;  %v739_v28 = vld [vmem:[%s10570_s23 + $0x18] sm:$0xff]  ;;  %v738_v29 = vld [vmem:[%s10570_s23 + $0x10] sm:$0xff] }
0x2ef2   :  { %v6886_v31 = vsel %vm1685_vm6, %v6885_v30, %v6882_v27  ;;  %v737_v30 = vld [vmem:[%s10570_s23 + $0x8] sm:$0xff] }
0x2ef3   :  { %8220 = vmatmul.mubr.msk.f32.vlgmr.msra.gmra.mxu0 %vm928_vm2, %v6886_v31  ;;  %v736_v31 = vld [vmem:[%s10570_s23] sm:$0xff] }
0x2ef4   :  { %8241 = vmatprep.mubr.msk.f32.mxu0 %vm9432_vm0, %v9431_v0  ;;  %8234 = vmatpush3.msra.mxu0 %v7009_v46 }
0x2ef5   :  { %8235 = vmatprep.subr.mxu0 %v9431_v0 }
0x2ef6   :  { %8236 = vmatpush3.msra.mxu0 %v7008_v56 }
0x2ef7   :  { %8237 = vmatprep.subr.mxu0 %v9431_v0 }
0x2ef8   :  { %8238 = vmatpush3.msra.mxu0 %v7007_v57 }
0x2ef9   :  { %8239 = vmatprep.subr.mxu0 %v9431_v0 }
0x2efa   :  { %8240 = vmatpush3.msra.mxu0 %v7006_v58 }
0x2fb3   :  { %v6962_v34 = vpop.f32.mrf.mxu0 }
0x2fb4   :  { %v6963_v35 = vadd.f32 %v7523_v32, %v6962_v34 }
0x2fb5   :  { %v8221_v36 = vpop.f32.mrf.mxu0 }
0x2fb6   :  { %v6966_v37 = vadd.f32 %v6963_v35, %v10408_v10  ;;  %v6999_v10 = vld [vmem:[#allocation55 + $0x20] sm:$0xff] }
0x2fb7   :  { %8229 = vmatpush3.msra.mxu1 %v6999_v10 }
0x2fb8   :  { %v6971_v39 = vsel %vm928_vm2, %v6966_v37, 0.0  ;;  %8244 = vmatprep.subr.mxu1 %v9431_v0 }
0x2fb9   :  { %6972 = vadd.xlane.f32.xlu0 %v6971_v39 }
0x3042   :  { %v6973_v23 = vpop.xlane.xlu0 %6972 }
0x3043   :  { %v6974_v63 = vmul.f32 0.03125, %v6973_v23  ;;  %v7534_v23 = vld [vmem:[#allocation15] ss:$0 sm:$0xff] }
0x3045   :  { %v6975_v38 = vsub.f32 %v6966_v37, %v6974_v63  ;;  %v7533_v37 = vld [vmem:[#allocation13] ss:$0 sm:$0xff] }
0x3047   :  { %v6976_v40 = vmul.f32 %v6975_v38, %v6975_v38 }
0x3049   :  { %v6977_v41 = vsel %vm928_vm2, %v6976_v40, 0.0  ;;  %v7535_v40 = vld [vmem:[#allocation16] ss:$0 sm:$0xff] }
0x304a   :  { %6978 = vadd.xlane.f32.xlu1 %v6977_v41 }
0x30d3   :  { %v6979_v47 = vpop.xlane.xlu1 %6978 }
0x30d4   :  { %v6980_v48 = vmul.f32 0.03125, %v6979_v47 }
0x30d6   :  { %v6981_v49 = vadd.f32 1e-05, %v6980_v48 }
0x30d8   :  { %8468 = vrsqrt.f32 %v6981_v49 }
0x30e5   :  { %v8469_v50 = vpop.eup %8468 }
0x30e6   :  { %v6983_v14 = vmul.f32 %v8469_v50, %v6975_v38 }
0x30e8   :  { %v6990_v54 = vmul.f32 %v7525_v52, %v6983_v14 }
0x30ea   :  { %v6997_v55 = vadd.f32 %v7526_v53, %v6990_v54 }
0x30ec   :  { %8231 = vmatmul.mubr.msk.f32.vlgmr.msra.gmra.mxu1 %vm928_vm2, %v6997_v55 }
0x30ed   :  { %8252 = vmatprep.mubr.msk.f32.mxu1 %vm9432_vm0, %v9431_v0  ;;  %8245 = vmatpush3.msra.mxu1 %v739_v28 }
0x30ee   :  { %8246 = vmatprep.subr.mxu1 %v9431_v0 }
0x30ef   :  { %8247 = vmatpush3.msra.mxu1 %v738_v29 }
0x30f0   :  { %8248 = vmatprep.subr.mxu1 %v9431_v0 }
0x30f1   :  { %8249 = vmatpush3.msra.mxu1 %v737_v30 }
0x30f2   :  { %8250 = vmatprep.subr.mxu1 %v9431_v0 }
0x30f3   :  { %8251 = vmatpush3.msra.mxu1 %v736_v31 }
0x31ac   :  { %v7087_v59 = vpop.f32.mrf.mxu1 }
0x31ad   :  { %v7088_v61 = vadd.f32 %v7527_v60, %v7087_v59 }
0x31ae   :  { %v8232_v19 = vpop.f32.mrf.mxu1 }
0x31af   :  { %v7091_v1 = vmax.f32 %v7088_v61, 0.0 }
0x31b1   :  { %8242 = vmatmul.mubr.msk.f32.vlgmr.msra.gmra.mxu0 %vm928_vm2, %v7091_v1 }
0x3271   :  { %v7167_v2 = vpop.f32.mrf.mxu0 }
0x3272   :  { %v7168_v3 = vadd.f32 %v7529_v51, %v7167_v2 }
0x3273   :  { %v8243_v33 = vpop.f32.mrf.mxu0 }
0x3274   :  { %v7171_v4 = vadd.f32 %v7168_v3, %v6997_v55 }
0x3276   :  { %v7176_v62 = vsel %vm928_vm2, %v7171_v4, 0.0 }
0x3277   :  { %7177 = vadd.xlane.f32.xlu0 %v7176_v62 }
0x3300   :  { %v7178_v42 = vpop.xlane.xlu0 %7177 }
0x3301   :  { %v7179_v5 = vmul.f32 0.03125, %v7178_v42 }
0x3303   :  { %v7180_v17 = vsub.f32 %v7171_v4, %v7179_v5 }
0x3305   :  { %v7181_v6 = vmul.f32 %v7180_v17, %v7180_v17 }
0x3307   :  { %v7182_v7 = vsel %vm928_vm2, %v7181_v6, 0.0 }
0x3308   :  { %7183 = vadd.xlane.f32.xlu0 %v7182_v7 }
0x3391   :  { %v7184_v8 = vpop.xlane.xlu0 %7183 }
0x3392   :  { %v7185_v9 = vmul.f32 0.03125, %v7184_v8 }
0x3394   :  { %v7186_v11 = vadd.f32 1e-05, %v7185_v9 }
0x3396   :  { %8470 = vrsqrt.f32 %v7186_v11 }
0x33a3   :  { %v8471_v12 = vpop.eup %8470 }
0x33a4   :  { %v7188_v15 = vmul.f32 %v8471_v12, %v7180_v17 }
0x33a6   :  { %v7195_v18 = vmul.f32 %v7531_v13, %v7188_v15 }
0x33a8   :  { %v7202_v20 = vadd.f32 %v7532_v16, %v7195_v18 }
0x33aa   :  { %v7203_v21 = vsel %vm928_vm2, %v7202_v20, 0.0 }
0x33ab   :  { %7204 = vadd.xlane.f32.xlu1 %v7203_v21 }
0x3434   :  { %v7205_v25 = vpop.xlane.xlu1 %7204 }
0x3435   :  { %v7206_v22 = vmul.f32 0.03125, %v7205_v25 }
0x3437   :  { %v7207_v24 = vsub.f32 %v7202_v20, %v7206_v22 }
0x3439   :  { %v7208_v26 = vmul.f32 %v7207_v24, %v7207_v24 }
0x343b   :  { %v7209_v27 = vsel %vm928_vm2, %v7208_v26, 0.0 }
0x343c   :  { %7210 = vadd.xlane.f32.xlu0 %v7209_v27 }
0x34c5   :  { %v7211_v32 = vpop.xlane.xlu0 %7210 }
0x34c6   :  { %v7212_v34 = vmul.f32 0.03125, %v7211_v32 }
0x34c8   :  { %v7213_v35 = vadd.f32 1e-05, %v7212_v34 }
0x34ca   :  { %8472 = vrsqrt.f32 %v7213_v35 }
0x34d7   :  { %v8473_v36 = vpop.eup %8472 }
0x34d8   :  { %v7215_v39 = vmul.f32 %v8473_v36, %v7207_v24 }
0x34da   :  { %v7222_v63 = vmul.f32 %v7533_v37, %v7215_v39 }
0x34dc   :  { %v7229_v38 = vadd.f32 %v7534_v23, %v7222_v63 }
0x34de   :  { %8253 = vmatmul.mubr.msk.f32.vlgmr.msra.gmra.mxu1 %vm928_vm2, %v7229_v38 }
0x359e   :  { %v7305_v41 = vpop.f32.mrf.mxu1 }
0x359f   :  { %v7306_v43 = vadd.f32 %v7535_v40, %v7305_v41 }
0x35a0   :  { %v8254_v44 = vpop.f32.mrf.mxu1 }
0x35a1   :  { %v7309_v45 = vsub.f32 0.0, %v7306_v43 }
0x35a3   :  { %v7310_v0 = vmul.f32 1.442695, %v7309_v45 }
0x35a5   :  { %8474 = vpow2.f32 %v7310_v0 }
0x35b2   :  { %v8475_v10 = vpop.eup %8474 }
0x35b3   :  { %v7312_v46 = vadd.f32 1.0, %v8475_v10 }
0x35b5   :  { %8476 = vrcp.f32 %v7312_v46 }
0x35c2   :  { %v8477_v47 = vpop.eup %8476 }
0x35c3   :  { %7314 = vst [vmem:[%s9677_s17] sm:$0xff] %v8477_v47 }
0x35c4   :  { %7319 = vsyncpa [#allocation3], 1 }
0x35c5   :  { %7320 = vsyncpa [#allocation5], 1 }
0x35c6   :  { %7321 = vsyncpa [#allocation8], 1 }
0x35c7   :  { %7322 = vsyncpa [#allocation11], 1 }
0x35c8   :  { %7323 = vsyncpa [#allocation14], 1 }
0x35c9   :  { %7324 = vsyncpa [#allocation17], 1 }
0x35ca   :  { %7325 = vsyncpa [#allocation20], 1 }
0x35cb   :  { %7326 = vsyncpa [#allocation23], 1 }
0x35cc   :  { %7327 = vsyncpa [#allocation26], 1 }
0x35cd   :  { %7328 = vsyncpa [#allocation29], 1 }
0x35ce   :  { %7329 = vsyncpa [#allocation32], 1 }
0x35cf   :  { %7330 = vsyncpa [#allocation35], 1 }
0x35d0   :  { %7331 = vsyncpa [#allocation38], 1 }
0x35d1   :  { %7332 = vsyncpa [#allocation41], 1 }
0x35d2   :  { %7333 = vsyncpa [#allocation44], 1 }
0x35d3   :  { %7334 = vsyncpa [#allocation47], 1 }
0x35d4   :  { %7335 = vsyncpa [#allocation50], 1 }
0x35d5   :  { %7336 = vsyncpa [#allocation53], 1 }
0x35d6   :  { %7337 = vsyncpa [#allocation56], 1 }
0x35d7   :  { %7338 = vsyncpa [#allocation59], 1 }
0x35d8   :  { %7339 = vsyncpa [#allocation62], 1 }

</bundles_post_ra>
